<compile_context>
chip_gen: v6e
topology: v6e:2x2x1
jax: 0.10.0
libtpu: 0.0.40
codegen_flags: <defaults>
</compile_context>

<pallas_src>
import jax
import jax.numpy as jnp
from jax import lax
from jax.experimental import pallas as pl
from jax.experimental.pallas import tpu as pltpu


def paconv_kernel(xp_ref, w23_ref, b2_ref, w4_ref, out_ref):
    # xp_ref : (1, H+2, W+2, C)  zero-padded NHWC input (one batch element)
    # w23_ref: (9C, 2C)          fused [k3 | k2] weight, tap-major rows
    # b2_ref : (1, C)            1x1 conv bias (f32)
    # w4_ref : (9C, C)           3x3 conv weight, tap-major rows
    # out_ref: (1, H, W, C)
    H, W, C = out_ref.shape[1], out_ref.shape[2], out_ref.shape[3]
    mm_dtype = w23_ref.dtype            # matmul operand dtype (f32 or bf16)

    xp = xp_ref[0]                      # (H+2, W+2, C)

    # ---- im2col for x: one (H*W, 9C) patch matrix (single pass of copies) --
    taps = [xp[dh:dh + H, dw:dw + W, :] for dh in range(3) for dw in range(3)]
    p1 = jnp.concatenate(taps, axis=-1).reshape(H * W, 9 * C)

    # ---- fused [k3(x) | k2(x)]: one MXU pass, f32 accumulation -------------
    r = jnp.dot(p1.astype(mm_dtype), w23_ref[...],
                preferred_element_type=jnp.float32)        # (H*W, 2C)
    y = jax.nn.sigmoid(r[:, C:] + b2_ref[...])             # sigmoid(k2(x))
    z = (r[:, :C] * y).reshape(H, W, C)                    # k3(x) * y  (f32)

    # ---- zero-pad z via two concats (no scratch, no per-step full zero) ----
    zr = jnp.zeros((1, W, C), jnp.float32)
    zc = jnp.zeros((H + 2, 1, C), jnp.float32)
    zp = jnp.concatenate([zr, z, zr], axis=0)              # (H+2, W,   C)
    zp = jnp.concatenate([zc, zp, zc], axis=1)             # (H+2, W+2, C)

    # ---- im2col for z and the single k4 matmul -----------------------------
    taps2 = [zp[dh:dh + H, dw:dw + W, :] for dh in range(3) for dw in range(3)]
    p2 = jnp.concatenate(taps2, axis=-1).reshape(H * W, 9 * C)
    o = jnp.dot(p2.astype(mm_dtype), w4_ref[...],
                preferred_element_type=jnp.float32)        # (H*W, C)

    out_ref[0] = o.reshape(H, W, C).astype(out_ref.dtype)


def paconv_pallas(x_nchw, w2, b2, w3, w4, *, compute_dtype=jnp.float32):
    """x_nchw: (N, C, H, W); w2: (C, C, 1, 1); b2: (C,); w3, w4: (C, C, 3, 3).

    compute_dtype controls the MXU operand dtype (jnp.float32 or jnp.bfloat16);
    accumulation and the sigmoid/multiply stay in f32 either way.
    """
    N, C, H, W = x_nchw.shape

    x = jnp.transpose(x_nchw, (0, 2, 3, 1))               # NCHW -> NHWC
    xp = jnp.pad(x, ((0, 0), (1, 1), (1, 1), (0, 0)))     # (N, H+2, W+2, C)

    # Fused [k3 | k2] weight: rows are tap-major ((dh*3+dw)*C + cin).
    w3t = jnp.transpose(w3, (2, 3, 1, 0)).reshape(9 * C, C)   # (9C_in, C_out)
    w2m = jnp.transpose(w2[:, :, 0, 0], (1, 0))               # (C_in, C_out)
    w23 = jnp.zeros((9 * C, 2 * C), x_nchw.dtype)
    w23 = w23.at[:, :C].set(w3t)                              # k3 -> cols [0, C)
    w23 = w23.at[4 * C:5 * C, C:].set(w2m)                    # k2 -> center tap
    w23 = w23.astype(compute_dtype)

    w4t = jnp.transpose(w4, (2, 3, 1, 0)).reshape(9 * C, C).astype(compute_dtype)
    b2m = b2.reshape(1, C).astype(jnp.float32)

    # TODO(synk): for large spatial extents (e.g. SR-sized H, W with C=64) add
    # an H-tile grid axis with a 1-row halo so the working set fits v7x's
    # 64 MiB VMEM and both TensorCores get spatial parallelism.
    out_nhwc = pl.pallas_call(
        paconv_kernel,
        out_shape=jax.ShapeDtypeStruct((N, H, W, C), x_nchw.dtype),
        grid_spec=pltpu.PrefetchScalarGridSpec(
            num_scalar_prefetch=0,
            grid=(N,),
            in_specs=[
                pl.BlockSpec((1, H + 2, W + 2, C), lambda n: (n, 0, 0, 0)),
                pl.BlockSpec((9 * C, 2 * C), lambda n: (0, 0)),
                pl.BlockSpec((1, C), lambda n: (0, 0)),
                pl.BlockSpec((9 * C, C), lambda n: (0, 0)),
            ],
            out_specs=pl.BlockSpec((1, H, W, C), lambda n: (n, 0, 0, 0)),
        ),
        compiler_params=pltpu.CompilerParams(
            dimension_semantics=("parallel",)),
    )(xp, w23, b2m, w4t)

    return jnp.transpose(out_nhwc, (0, 3, 1, 2))           # back to NCHW


def paconv_reference(x, w2, b2, w3, w4):
    """Pure-JAX reference mimicking the PyTorch forward (NCHW / OIHW)."""
    dn = ('NCHW', 'OIHW', 'NCHW')
    y = lax.conv_general_dilated(x, w2, (1, 1), 'SAME', dimension_numbers=dn)
    y = jax.nn.sigmoid(y + b2.reshape(1, -1, 1, 1))
    t = lax.conv_general_dilated(x, w3, (1, 1), 'SAME', dimension_numbers=dn)
    out = t * y
    out = lax.conv_general_dilated(out, w4, (1, 1), 'SAME', dimension_numbers=dn)
    return out


if __name__ == "__main__":
    N, nf, H, W = 2, 4, 16, 16
    key = jax.random.PRNGKey(0)
    kx, k2w, k2b, k3w, k4w = jax.random.split(key, 5)

    x = jax.random.normal(kx, (N, nf, H, W), jnp.float32)
    # Shapes per PAConv.__init__ with k_size=3
    w2 = jax.random.normal(k2w, (nf, nf, 1, 1), jnp.float32) * 0.2
    b2 = jax.random.normal(k2b, (nf,), jnp.float32) * 0.1
    w3 = jax.random.normal(k3w, (nf, nf, 3, 3), jnp.float32) * 0.2
    w4 = jax.random.normal(k4w, (nf, nf, 3, 3), jnp.float32) * 0.2

    ref = jax.block_until_ready(paconv_reference(x, w2, b2, w3, w4))

    # f32 matmul path: bit-accurate semantics vs. the PyTorch module.
    out_f32 = jax.block_until_ready(paconv_pallas(x, w2, b2, w3, w4))
    assert out_f32.shape == (N, nf, H, W), out_f32.shape
    assert jnp.allclose(out_f32, ref, atol=1e-4, rtol=1e-4), float(
        jnp.max(jnp.abs(out_f32 - ref)))

    # bf16 matmul operands (f32 accumulation): the fast MXU path.
    out_bf16 = jax.block_until_ready(
        paconv_pallas(x, w2, b2, w3, w4, compute_dtype=jnp.bfloat16))
    assert jnp.allclose(out_bf16, ref, atol=1e-1, rtol=1e-1), float(
        jnp.max(jnp.abs(out_bf16 - ref)))

    print("KERNEL_OK")
</pallas_src>

<mosaic_0001>
module attributes {stable_mosaic.version = 11 : i64} {
  func.func @paconv_kernel(%arg0: i32, %arg1: memref<1x18x18x4xf32, #tpu.memory_space<vmem>>, %arg2: memref<36x8xf32, #tpu.memory_space<vmem>>, %arg3: memref<1x4xf32, #tpu.memory_space<vmem>>, %arg4: memref<36x4xf32, #tpu.memory_space<vmem>>, %arg5: memref<1x16x16x4xf32, #tpu.memory_space<vmem>>) attributes {dimension_semantics = [#tpu.dimension_semantics<parallel>], iteration_bounds = array<i64: 2>, scalar_prefetch = 0 : i64, scratch_operands = 0 : i64, tpu.core_type = #tpu.core_type<tc>, window_params = [{transform_indices = @transform_0, window_bounds = array<i64: 1, 18, 18, 4>}, {pipeline_mode = #tpu.pipeline_mode<synchronous>, transform_indices = @transform_1, window_bounds = array<i64: 36, 8>}, {pipeline_mode = #tpu.pipeline_mode<synchronous>, transform_indices = @transform_2, window_bounds = array<i64: 1, 4>}, {pipeline_mode = #tpu.pipeline_mode<synchronous>, transform_indices = @transform_3, window_bounds = array<i64: 36, 4>}, {transform_indices = @transform_4, window_bounds = array<i64: 1, 16, 16, 4>}]} {
    %c0 = arith.constant 0 : index
    %c0_0 = arith.constant 0 : index
    %c0_1 = arith.constant 0 : index
    %c0_2 = arith.constant 0 : index
    %0 = vector.load %arg1[%c0, %c0_0, %c0_1, %c0_2] : memref<1x18x18x4xf32, #tpu.memory_space<vmem>>, vector<1x18x18x4xf32>
    %1 = vector.shape_cast %0 : vector<1x18x18x4xf32> to vector<18x18x4xf32>
    %2 = vector.extract_strided_slice %1 {offsets = [0, 0, 0], sizes = [16, 16, 4], strides = [1, 1, 1]} : vector<18x18x4xf32> to vector<16x16x4xf32>
    %3 = vector.extract_strided_slice %1 {offsets = [0, 1, 0], sizes = [16, 16, 4], strides = [1, 1, 1]} : vector<18x18x4xf32> to vector<16x16x4xf32>
    %4 = vector.extract_strided_slice %1 {offsets = [0, 2, 0], sizes = [16, 16, 4], strides = [1, 1, 1]} : vector<18x18x4xf32> to vector<16x16x4xf32>
    %5 = vector.extract_strided_slice %1 {offsets = [1, 0, 0], sizes = [16, 16, 4], strides = [1, 1, 1]} : vector<18x18x4xf32> to vector<16x16x4xf32>
    %6 = vector.extract_strided_slice %1 {offsets = [1, 1, 0], sizes = [16, 16, 4], strides = [1, 1, 1]} : vector<18x18x4xf32> to vector<16x16x4xf32>
    %7 = vector.extract_strided_slice %1 {offsets = [1, 2, 0], sizes = [16, 16, 4], strides = [1, 1, 1]} : vector<18x18x4xf32> to vector<16x16x4xf32>
    %8 = vector.extract_strided_slice %1 {offsets = [2, 0, 0], sizes = [16, 16, 4], strides = [1, 1, 1]} : vector<18x18x4xf32> to vector<16x16x4xf32>
    %9 = vector.extract_strided_slice %1 {offsets = [2, 1, 0], sizes = [16, 16, 4], strides = [1, 1, 1]} : vector<18x18x4xf32> to vector<16x16x4xf32>
    %10 = vector.extract_strided_slice %1 {offsets = [2, 2, 0], sizes = [16, 16, 4], strides = [1, 1, 1]} : vector<18x18x4xf32> to vector<16x16x4xf32>
    %11 = tpu.concatenate %2, %3, %4, %5, %6, %7, %8, %9, %10 in 2 : vector<16x16x4xf32>, vector<16x16x4xf32>, vector<16x16x4xf32>, vector<16x16x4xf32>, vector<16x16x4xf32>, vector<16x16x4xf32>, vector<16x16x4xf32>, vector<16x16x4xf32>, vector<16x16x4xf32> -> vector<16x16x36xf32>
    %12 = vector.shape_cast %11 : vector<16x16x36xf32> to vector<256x36xf32>
    %c0_3 = arith.constant 0 : index
    %c0_4 = arith.constant 0 : index
    %13 = vector.load %arg2[%c0_3, %c0_4] : memref<36x8xf32, #tpu.memory_space<vmem>>, vector<36x8xf32>
    %cst = arith.constant dense<0.000000e+00> : vector<256x8xf32>
    %14 = tpu.matmul %12, %13, %cst {dimension_numbers = #tpu.dot_dimension_numbers<[1], [0], [0], [1], [0, 0, 1, 1], [], []>} : vector<256x36xf32>, vector<36x8xf32>, vector<256x8xf32> -> vector<256x8xf32>
    %15 = vector.extract_strided_slice %14 {offsets = [0, 4], sizes = [256, 4], strides = [1, 1]} : vector<256x8xf32> to vector<256x4xf32>
    %c0_5 = arith.constant 0 : index
    %c0_6 = arith.constant 0 : index
    %16 = vector.load %arg3[%c0_5, %c0_6] : memref<1x4xf32, #tpu.memory_space<vmem>>, vector<1x4xf32>
    %17 = vector.broadcast %16 : vector<1x4xf32> to vector<256x4xf32>
    %18 = arith.addf %15, %17 : vector<256x4xf32>
    %19 = arith.negf %18 : vector<256x4xf32>
    %20 = math.exp %19 : vector<256x4xf32>
    %cst_7 = arith.constant 1.000000e+00 : f32
    %21 = vector.broadcast %cst_7 : f32 to vector<256x4xf32>
    %22 = arith.addf %21, %20 : vector<256x4xf32>
    %23 = arith.divf %21, %22 : vector<256x4xf32>
    %24 = vector.extract_strided_slice %14 {offsets = [0, 0], sizes = [256, 4], strides = [1, 1]} : vector<256x8xf32> to vector<256x4xf32>
    %25 = arith.mulf %24, %23 : vector<256x4xf32>
    %26 = vector.shape_cast %25 : vector<256x4xf32> to vector<16x16x4xf32>
    %cst_8 = arith.constant 0.000000e+00 : f32
    %27 = vector.broadcast %cst_8 : f32 to vector<1x16x4xf32>
    %cst_9 = arith.constant 0.000000e+00 : f32
    %28 = vector.broadcast %cst_9 : f32 to vector<18x1x4xf32>
    %29 = tpu.concatenate %27, %26, %27 in 0 : vector<1x16x4xf32>, vector<16x16x4xf32>, vector<1x16x4xf32> -> vector<18x16x4xf32>
    %30 = tpu.concatenate %28, %29, %28 in 1 : vector<18x1x4xf32>, vector<18x16x4xf32>, vector<18x1x4xf32> -> vector<18x18x4xf32>
    %31 = vector.extract_strided_slice %30 {offsets = [0, 0, 0], sizes = [16, 16, 4], strides = [1, 1, 1]} : vector<18x18x4xf32> to vector<16x16x4xf32>
    %32 = vector.extract_strided_slice %30 {offsets = [0, 1, 0], sizes = [16, 16, 4], strides = [1, 1, 1]} : vector<18x18x4xf32> to vector<16x16x4xf32>
    %33 = vector.extract_strided_slice %30 {offsets = [0, 2, 0], sizes = [16, 16, 4], strides = [1, 1, 1]} : vector<18x18x4xf32> to vector<16x16x4xf32>
    %34 = vector.extract_strided_slice %30 {offsets = [1, 0, 0], sizes = [16, 16, 4], strides = [1, 1, 1]} : vector<18x18x4xf32> to vector<16x16x4xf32>
    %35 = vector.extract_strided_slice %30 {offsets = [1, 1, 0], sizes = [16, 16, 4], strides = [1, 1, 1]} : vector<18x18x4xf32> to vector<16x16x4xf32>
    %36 = vector.extract_strided_slice %30 {offsets = [1, 2, 0], sizes = [16, 16, 4], strides = [1, 1, 1]} : vector<18x18x4xf32> to vector<16x16x4xf32>
    %37 = vector.extract_strided_slice %30 {offsets = [2, 0, 0], sizes = [16, 16, 4], strides = [1, 1, 1]} : vector<18x18x4xf32> to vector<16x16x4xf32>
    %38 = vector.extract_strided_slice %30 {offsets = [2, 1, 0], sizes = [16, 16, 4], strides = [1, 1, 1]} : vector<18x18x4xf32> to vector<16x16x4xf32>
    %39 = vector.extract_strided_slice %30 {offsets = [2, 2, 0], sizes = [16, 16, 4], strides = [1, 1, 1]} : vector<18x18x4xf32> to vector<16x16x4xf32>
    %40 = tpu.concatenate %31, %32, %33, %34, %35, %36, %37, %38, %39 in 2 : vector<16x16x4xf32>, vector<16x16x4xf32>, vector<16x16x4xf32>, vector<16x16x4xf32>, vector<16x16x4xf32>, vector<16x16x4xf32>, vector<16x16x4xf32>, vector<16x16x4xf32>, vector<16x16x4xf32> -> vector<16x16x36xf32>
    %41 = vector.shape_cast %40 : vector<16x16x36xf32> to vector<256x36xf32>
    %c0_10 = arith.constant 0 : index
    %c0_11 = arith.constant 0 : index
    %42 = vector.load %arg4[%c0_10, %c0_11] : memref<36x4xf32, #tpu.memory_space<vmem>>, vector<36x4xf32>
    %cst_12 = arith.constant dense<0.000000e+00> : vector<256x4xf32>
    %43 = tpu.matmul %41, %42, %cst_12 {dimension_numbers = #tpu.dot_dimension_numbers<[1], [0], [0], [1], [0, 0, 1, 1], [], []>} : vector<256x36xf32>, vector<36x4xf32>, vector<256x4xf32> -> vector<256x4xf32>
    %44 = vector.shape_cast %43 : vector<256x4xf32> to vector<16x16x4xf32>
    %c0_13 = arith.constant 0 : index
    %c0_14 = arith.constant 0 : index
    %c0_15 = arith.constant 0 : index
    %c0_16 = arith.constant 0 : index
    %45 = vector.load %arg5[%c0_13, %c0_14, %c0_15, %c0_16] : memref<1x16x16x4xf32, #tpu.memory_space<vmem>>, vector<1x16x16x4xf32>
    %46 = vector.shape_cast %45 : vector<1x16x16x4xf32> to vector<16x16x4xf32>
    %47 = vector.shape_cast %44 : vector<16x16x4xf32> to vector<1x16x16x4xf32>
    tpu.vector_store %arg5[%c0_13, %c0_14, %c0_15, %c0_16], %47 {strides = array<i32>} : memref<1x16x16x4xf32, #tpu.memory_space<vmem>>, vector<1x16x16x4xf32>,
    return
  }
  func.func @transform_0(%arg0: i32) -> (i32, i32, i32, i32) {
    %c0_i32 = arith.constant 0 : i32
    %c0_i32_0 = arith.constant 0 : i32
    %c0_i32_1 = arith.constant 0 : i32
    %c0_i32_2 = arith.constant 0 : i32
    return %arg0, %c0_i32, %c0_i32_0, %c0_i32_1 : i32, i32, i32, i32
  }
  func.func @transform_1(%arg0: i32) -> (i32, i32) {
    %c0_i32 = arith.constant 0 : i32
    %c0_i32_0 = arith.constant 0 : i32
    %c0_i32_1 = arith.constant 0 : i32
    return %c0_i32, %c0_i32_0 : i32, i32
  }
  func.func @transform_2(%arg0: i32) -> (i32, i32) {
    %c0_i32 = arith.constant 0 : i32
    %c0_i32_0 = arith.constant 0 : i32
    %c0_i32_1 = arith.constant 0 : i32
    return %c0_i32, %c0_i32_0 : i32, i32
  }
  func.func @transform_3(%arg0: i32) -> (i32, i32) {
    %c0_i32 = arith.constant 0 : i32
    %c0_i32_0 = arith.constant 0 : i32
    %c0_i32_1 = arith.constant 0 : i32
    return %c0_i32, %c0_i32_0 : i32, i32
  }
  func.func @transform_4(%arg0: i32) -> (i32, i32, i32, i32) {
    %c0_i32 = arith.constant 0 : i32
    %c0_i32_0 = arith.constant 0 : i32
    %c0_i32_1 = arith.constant 0 : i32
    %c0_i32_2 = arith.constant 0 : i32
    return %arg0, %c0_i32, %c0_i32_0, %c0_i32_1 : i32, i32, i32, i32
  }
}

</mosaic_0001>

<bundles_post_ra>
// kernel: tpu_custom_call.1
= control target key start
LH: loop header
LB: loop body
LE: loop exit
PB: predicated region body
PF: predicated region fallthrough
CT: control target
= control target key end

     0   :  { %s4602_s15 = smov 0   ;;  %s8390_s0 = inlined_call_operand.vmem [shape: f32[2,18,18,4], index: 0, kind: input, shape index: {}]   ;;  %s8391_s1 = inlined_call_operand.vmem [shape: f32[36,8], index: 1, kind: input, shape index: {}]   ;;  %s8392_s2 = inlined_call_operand.vmem [shape: f32[1,4], index: 2, kind: input, shape index: {}]   ;;  %s8393_s3 = inlined_call_operand.vmem [shape: f32[36,4], index: 3, kind: input, shape index: {}]   ;;  %s8394_s4 = inlined_call_operand.vmem [shape: f32[2,16,16,4], index: 4, kind: output, shape index: {}]  }
   0x1 LB: > { %s4055_s16 = sadd.s32 4294967295, %s4565_s15   ;;  %p4059_p0 = scmp.ge.s32.totalorder %s4565_s15, 1  ;;  %s4565_s15 = sphi %s4602_s15, %s14_s15  }
   0x2   : > { %p162_p1 = scmp.lt.s32.totalorder %s4565_s15, 3 }
   0x4   : > { %p163_p2 = pnand %p4059_p0, %p162_p1 }
   0x6   : > { %166 = sbr.rel (%p163_p2) target bundleno = 1748 (0x6d4), region = 36 }
   0xb   : > { %p188_p3 = scmp.lt.s32.totalorder %s4055_s16, 1  ;;  %vm300_vm0 = vcmask 1046528   ;;  %s4567_s21 = smov 4   ;;  %vm477_vm1 = vcmask 1045504   ;;  %vm1622_vm2 = vcmask 1043456   ;;  %vm1256_vm3 = vcmask 31744  }
   0xc   : > { %s4568_s22 = smov 8   ;;  %s4569_s23 = smov 12   ;;  %vm1289_vm4 = vcmask 64512   ;;  %vm1322_vm5 = vcmask 97280   ;;  %vm1355_vm6 = vcmask 130048   ;;  %vm1388_vm7 = vcmask 162816  }
   0xd   : > { %s9298_s16 = smov (!%p188_p3, %s4055_s16), 1  ;;  %s4570_s24 = smov 16   ;;  %vm1421_vm8 = vcmask 195584   ;;  %vm1454_vm9 = vcmask 228352   ;;  %vm1487_vm10 = vcmask 261120   ;;  %vm1525_vm11 = vcmask 293888  }
   0xe   : > { %s4355_s17 = smul.u32 432, %s9298_s16  ;;  %s4571_s25 = smov 20   ;;  %vm2277_vm12 = vcmask 1040384  }
   0xf   : > { %s4572_s26 = smov 24   ;;  %s4573_s27 = smov 28  }
  0x10   : > { %s4616_s20 = scalar_lea.vmem %s8390_s0, %s4355_s17  ;;  %s4574_s12 = smov 32  }
  0x11   : > { %v4619_v0 = vld [vmem:[%s4616_s20 + $0x18] sm:$0xff]  ;;  %v4622_v1 = vld [vmem:[%s4616_s20 + $0x20] sm:$0xff]  ;;  %v4630_v5 = vld [vmem:[%s4616_s20 + $0x8] sm:$0xff]  ;;  %s4575_s17 = smov 124  }
  0x12   : > { %v4625_v2 = vld [vmem:[%s4616_s20] sm:$0xff]  ;;  %v306_v3 = vrot.slane %v4619_v0, 1  ;;  %v307_v4 = vrot.slane %v4622_v1, 1  ;;  %v4634_v7 = vld [vmem:[%s4616_s20 + $0x28] sm:$0x3]  ;;  %v302_v8 = vrot.slane %v4630_v5, 1 }
  0x13   : > { %v301_v6 = vrot.slane %v4625_v2, 1  ;;  %v309_v9 = vrot.slane %v4634_v7, 1  ;;  %v4639_v10 = vld [vmem:[%s4616_s20 + $0x10] sm:$0x3]  ;;  %v4642_v11 = vld [vmem:[%s4616_s20 + $0x38] sm:$0xff]  ;;  %v4672_v24 = vld [vmem:[%s4616_s20 + $0x48] sm:$0xff] }
  0x14   : > { %v4645_v12 = vsel %vm300_vm0, %v306_v3, %v307_v4  ;;  %v304_v13 = vrot.slane %v4639_v10, 1  ;;  %v4649_v14 = vld [vmem:[%s4616_s20 + $0x40] sm:$0x3]  ;;  %v4652_v15 = vld [vmem:[%s4616_s20 + $0x30] sm:$0xff]  ;;  %v312_v18 = vrot.slane %v4642_v11, 1  ;;  %v316_v29 = vrot.slane %v4672_v24, 1 }
  0x15   : > { %385 = vrot.lane.b32.xlu1 %v4645_v12, %s4567_s21  ;;  %v303_v16 = vsel %vm300_vm0, %v301_v6, %v302_v8  ;;  %v4659_v17 = vsel %vm300_vm0, %v307_v4, %v309_v9  ;;  %v314_v19 = vrot.slane %v4649_v14, 1  ;;  %v311_v21 = vrot.slane %v4652_v15, 1  ;;  %v4666_v22 = vld [vmem:[%s4616_s20 + $0x50] sm:$0xff]  ;;  %v4669_v23 = vld [vmem:[%s4616_s20 + $0x58] sm:$0x3]  ;;  %v4687_v30 = vld [vmem:[%s4616_s20 + $0x68] sm:$0xff] }
  0x16   : > { %381 = vrot.lane.b32.xlu0 %v303_v16, %s4567_s21  ;;  %v305_v20 = vsel %vm300_vm0, %v302_v8, %v304_v13  ;;  %v317_v26 = vrot.slane %v4666_v22, 1  ;;  %v319_v27 = vrot.slane %v4669_v23, 1  ;;  %v4690_v31 = vld [vmem:[%s4616_s20 + $0x70] sm:$0x3]  ;;  %v4693_v32 = vld [vmem:[%s4616_s20 + $0x60] sm:$0xff]  ;;  %v322_v34 = vrot.slane %v4687_v30, 1 }
  0x17   : > { %v4678_v25 = vsel %vm300_vm0, %v312_v18, %v314_v19  ;;  %v4683_v28 = vsel %vm300_vm0, %v311_v21, %v312_v18  ;;  %v324_v35 = vrot.slane %v4690_v31, 1  ;;  %v321_v37 = vrot.slane %v4693_v32, 1  ;;  %v4709_v38 = vld [vmem:[%s4616_s20 + $0x80] sm:$0xff]  ;;  %v4712_v39 = vld [vmem:[%s4616_s20 + $0x88] sm:$0x3]  ;;  %v4715_v40 = vld [vmem:[%s4616_s20 + $0x78] sm:$0xff] }
  0x18   : > { %v4700_v33 = vsel %vm300_vm0, %v317_v26, %v319_v27  ;;  %v4705_v36 = vsel %vm300_vm0, %v316_v29, %v317_v26  ;;  %v327_v42 = vrot.slane %v4709_v38, 1  ;;  %v329_v43 = vrot.slane %v4712_v39, 1  ;;  %v4731_v46 = vld [vmem:[%s4616_s20 + $0x98] sm:$0xff]  ;;  %v4734_v47 = vld [vmem:[%s4616_s20 + $0xa0] sm:$0x3]  ;;  %v4737_v48 = vld [vmem:[%s4616_s20 + $0x90] sm:$0xff] }
  0x19   : > { %387 = vrot.lane.b32.xlu1 %v4659_v17, %s4567_s21  ;;  %8598 = vst [vmem:[#allocation2_spill] sm:$0xff] %v4705_v36  ;;  %v4722_v41 = vsel %vm300_vm0, %v322_v34, %v324_v35  ;;  %v4727_v44 = vsel %vm300_vm0, %v321_v37, %v322_v34  ;;  %v326_v45 = vrot.slane %v4715_v40, 1  ;;  %v332_v50 = vrot.slane %v4731_v46, 1  ;;  %v4753_v54 = vld [vmem:[%s4616_s20 + $0xb0] sm:$0xff]  ;;  %v4756_v55 = vld [vmem:[%s4616_s20 + $0xb8] sm:$0x3] }
  0x1a   : > { %383 = vrot.lane.b32.xlu0 %v305_v20, %s4567_s21  ;;  %8599 = vst [vmem:[#allocation3_spill] sm:$0xff] %v4722_v41  ;;  %8600 = vst [vmem:[#allocation4_spill] sm:$0xff] %v4727_v44  ;;  %v4744_v49 = vsel %vm300_vm0, %v327_v42, %v329_v43  ;;  %v334_v51 = vrot.slane %v4734_v47, 1  ;;  %v331_v53 = vrot.slane %v4737_v48, 1  ;;  %v4759_v56 = vld [vmem:[%s4616_s20 + $0xa8] sm:$0xff]  ;;  %v337_v58 = vrot.slane %v4753_v54, 1 }
  0x1b   : > { %8601 = vst [vmem:[#allocation5_spill] sm:$0xff] %v4744_v49  ;;  %v4749_v52 = vsel %vm300_vm0, %v326_v45, %v327_v42  ;;  %v339_v59 = vrot.slane %v4756_v55, 1  ;;  %v336_v61 = vrot.slane %v4759_v56, 1  ;;  %v4775_v62 = vld [vmem:[%s4616_s20 + $0xc8] sm:$0xff]  ;;  %v4778_v63 = vld [vmem:[%s4616_s20 + $0xd0] sm:$0x3] }
  0x1c   : > { %8602 = vst [vmem:[#allocation6_spill] sm:$0xff] %v4749_v52  ;;  %v4766_v57 = vsel %vm300_vm0, %v332_v50, %v334_v51  ;;  %v4771_v60 = vsel %vm300_vm0, %v331_v53, %v332_v50  ;;  %v4781_v3 = vld [vmem:[%s4616_s20 + $0xc0] sm:$0xff]  ;;  %v342_v6 = vrot.slane %v4775_v62, 1  ;;  %v344_v8 = vrot.slane %v4778_v63, 1  ;;  %v4800_v18 = vld [vmem:[%s4616_s20 + $0xe8] sm:$0x3] }
  0x1d   : > { %391 = vrot.lane.b32.xlu1 %v4678_v25, %s4567_s21  ;;  %8603 = vst [vmem:[#allocation7_spill] sm:$0xff] %v4766_v57  ;;  %8604 = vst [vmem:[#allocation8_spill] sm:$0xff] %v4771_v60  ;;  %v4788_v4 = vsel %vm300_vm0, %v337_v58, %v339_v59  ;;  %v4793_v9 = vsel %vm300_vm0, %v336_v61, %v337_v58  ;;  %v341_v13 = vrot.slane %v4781_v3, 1  ;;  %v4797_v16 = vld [vmem:[%s4616_s20 + $0xe0] sm:$0xff]  ;;  %v4803_v19 = vld [vmem:[%s4616_s20 + $0xd8] sm:$0xff]  ;;  %v349_v26 = vrot.slane %v4800_v18, 1 }
  0x1e   : > { %389 = vrot.lane.b32.xlu0 %v4683_v28, %s4567_s21  ;;  %8605 = vst [vmem:[#allocation9_spill] sm:$0xff] %v4788_v4  ;;  %8606 = vst [vmem:[#allocation10_spill] sm:$0xff] %v4793_v9  ;;  %v4810_v20 = vsel %vm300_vm0, %v342_v6, %v344_v8  ;;  %v347_v21 = vrot.slane %v4797_v16, 1  ;;  %v346_v29 = vrot.slane %v4803_v19, 1  ;;  %v4819_v34 = vld [vmem:[%s4616_s20 + $0xf8] sm:$0xff]  ;;  %v4825_v37 = vld [vmem:[%s4616_s20 + $0xf0] sm:$0xff] }
  0x1f   : > { %8607 = vst [vmem:[#allocation11_spill] sm:$0xff] %v4810_v20  ;;  %v4815_v27 = vsel %vm300_vm0, %v341_v13, %v342_v6  ;;  %v4822_v35 = vld [vmem:[%s4616_s20 + $0x100] sm:$0x3]  ;;  %v352_v43 = vrot.slane %v4819_v34, 1  ;;  %v351_v51 = vrot.slane %v4825_v37, 1  ;;  %v4841_v53 = vld [vmem:[%s4616_s20 + $0x110] sm:$0xff] }
  0x20   : > { %8608 = vst [vmem:[#allocation12_spill] sm:$0xff] %v4815_v27  ;;  %v4832_v42 = vsel %vm300_vm0, %v347_v21, %v349_v26  ;;  %v354_v45 = vrot.slane %v4822_v35, 1  ;;  %v4837_v50 = vsel %vm300_vm0, %v346_v29, %v347_v21  ;;  %v4844_v58 = vld [vmem:[%s4616_s20 + $0x118] sm:$0x3]  ;;  %v4847_v59 = vld [vmem:[%s4616_s20 + $0x108] sm:$0xff]  ;;  %v357_v6 = vrot.slane %v4841_v53, 1 }
  0x21   : > { %395 = vrot.lane.b32.xlu1 %v4700_v33, %s4567_s21  ;;  %8609 = vst [vmem:[#allocation13_spill] sm:$0xff] %v4832_v42  ;;  %8610 = vst [vmem:[#allocation14_spill] sm:$0xff] %v4837_v50  ;;  %v359_v8 = vrot.slane %v4844_v58, 1  ;;  %v4859_v13 = vsel %vm300_vm0, %v351_v51, %v352_v43  ;;  %v356_v21 = vrot.slane %v4847_v59, 1  ;;  %v4863_v26 = vld [vmem:[%s4616_s20 + $0x128] sm:$0xff] }
  0x22   : > { %393 = vrot.lane.b32.xlu0 %v4705_v36, %s4567_s21  ;;  %v4854_v61 = vsel %vm300_vm0, %v352_v43, %v354_v45  ;;  %8612 = vst [vmem:[#allocation16_spill] sm:$0xff] %v4859_v13  ;;  %v4866_v29 = vld [vmem:[%s4616_s20 + $0x130] sm:$0x3]  ;;  %v362_v43 = vrot.slane %v4863_v26, 1 }
  0x23   : > { %8611 = vst [vmem:[#allocation15_spill] sm:$0xff] %v4854_v61  ;;  %v4876_v45 = vsel %vm300_vm0, %v357_v6, %v359_v8  ;;  %v364_v51 = vrot.slane %v4866_v29, 1 }
  0x24   : > { %8613 = vst [vmem:[#allocation17_spill] sm:$0xff] %v4876_v45 }
  0x25   : > { %399 = vrot.lane.b32.xlu1 %v4722_v41, %s4567_s21  ;;  %v4898_v8 = vsel %vm300_vm0, %v362_v43, %v364_v51 }
  0x26   : > { %397 = vrot.lane.b32.xlu0 %v4727_v44, %s4567_s21  ;;  %8615 = vst [vmem:[#allocation19_spill] sm:$0xff] %v4898_v8  ;;  %v4932_v44 = vld [vmem:[%s4616_s20 + $0x178] sm:$0x3] }
  0x29   : > { %403 = vrot.lane.b32.xlu1 %v4744_v49, %s4567_s21  ;;  %v4929_v49 = vld [vmem:[%s4616_s20 + $0x170] sm:$0xff] }
  0x2a   : > { %401 = vrot.lane.b32.xlu0 %v4749_v52, %s4567_s21 }
  0x2d   : > { %407 = vrot.lane.b32.xlu1 %v4766_v57, %s4567_s21 }
  0x2e   : > { %405 = vrot.lane.b32.xlu0 %v4771_v60, %s4567_s21  ;;  %v4907_v60 = vld [vmem:[%s4616_s20 + $0x158] sm:$0xff] }
  0x31   : > { %411 = vrot.lane.b32.xlu1 %v4788_v4, %s4567_s21 }
  0x32   : > { %409 = vrot.lane.b32.xlu0 %v4793_v9, %s4567_s21 }
  0x35   : > { %415 = vrot.lane.b32.xlu1 %v4810_v20, %s4567_s21  ;;  %v4885_v20 = vld [vmem:[%s4616_s20 + $0x140] sm:$0xff] }
  0x36   : > { %413 = vrot.lane.b32.xlu0 %v4815_v27, %s4567_s21 }
  0x39   : > { %419 = vrot.lane.b32.xlu1 %v4832_v42, %s4567_s21  ;;  %v4881_v42 = vsel %vm300_vm0, %v356_v21, %v357_v6  ;;  %v367_v6 = vrot.slane %v4885_v20, 1 }
  0x3a   : > { %417 = vrot.lane.b32.xlu0 %v4837_v50, %s4567_s21  ;;  %v4869_v50 = vld [vmem:[%s4616_s20 + $0x120] sm:$0xff]  ;;  %8614 = vst [vmem:[#allocation18_spill] sm:$0xff] %v4881_v42 }
  0x3b   : > { %v361_v27 = vrot.slane %v4869_v50, 1 }
  0x3d   : > { %423 = vrot.lane.b32.xlu1 %v4854_v61, %s4567_s21  ;;  %v4888_v61 = vld [vmem:[%s4616_s20 + $0x148] sm:$0x3]  ;;  %v4903_v9 = vsel %vm300_vm0, %v361_v27, %v362_v43  ;;  %v372_v27 = vrot.slane %v4907_v60, 1 }
  0x3e   : > { %421 = vrot.lane.b32.xlu0 %v4859_v13, %s4567_s21  ;;  %v4891_v13 = vld [vmem:[%s4616_s20 + $0x138] sm:$0xff]  ;;  %v369_v21 = vrot.slane %v4888_v61, 1  ;;  %8616 = vst [vmem:[#allocation20_spill] sm:$0xff] %v4903_v9 }
  0x3f   : > { %v366_v4 = vrot.slane %v4891_v13, 1 }
  0x40   : > { %v4920_v51 = vsel %vm300_vm0, %v367_v6, %v369_v21 }
  0x41   : > { %427 = vrot.lane.b32.xlu1 %v4876_v45, %s4567_s21  ;;  %v4910_v45 = vld [vmem:[%s4616_s20 + $0x160] sm:$0x3]  ;;  %8617 = vst [vmem:[#allocation21_spill] sm:$0xff] %v4920_v51  ;;  %v4925_v57 = vsel %vm300_vm0, %v366_v4, %v367_v6  ;;  %v377_v4 = vrot.slane %v4929_v49, 1  ;;  %v379_v6 = vrot.slane %v4932_v44, 1 }
  0x42   : > { %425 = vrot.lane.b32.xlu0 %v4881_v42, %s4567_s21  ;;  %v4913_v42 = vld [vmem:[%s4616_s20 + $0x150] sm:$0xff]  ;;  %v374_v43 = vrot.slane %v4910_v45, 1  ;;  %8618 = vst [vmem:[#allocation22_spill] sm:$0xff] %v4925_v57 }
  0x43   : > { %v371_v52 = vrot.slane %v4913_v42, 1 }
  0x44   : > { %v4942_v21 = vsel %vm300_vm0, %v372_v27, %v374_v43  ;;  %v479_v43 = vrot.slane %v4630_v5, 2  ;;  %v486_v5 = vrot.slane %v4634_v7, 2  ;;  %v488_v7 = vrot.slane %v4652_v15, 2 }
  0x45   : > { %431 = vrot.lane.b32.xlu1 %v4898_v8, %s4567_s21  ;;  %v4935_v8 = vld [vmem:[%s4616_s20 + $0x168] sm:$0xff]  ;;  %8619 = vst [vmem:[#allocation23_spill] sm:$0xff] %v4942_v21 }
  0x46   : > { %429 = vrot.lane.b32.xlu0 %v4903_v9, %s4567_s21  ;;  %v4947_v9 = vsel %vm300_vm0, %v371_v52, %v372_v27  ;;  %v376_v41 = vrot.slane %v4935_v8, 1  ;;  %v478_v52 = vrot.slane %v4625_v2, 2 }
  0x47   : > { %8620 = vst [vmem:[#allocation24_spill] sm:$0xff] %v4947_v9 }
  0x48   : > { %v4960_v36 = vsel %vm300_vm0, %v376_v41, %v377_v4  ;;  %v483_v41 = vrot.slane %v4619_v0, 2 }
  0x49   : > { %435 = vrot.lane.b32.xlu1 %v4920_v51, %s4567_s21  ;;  %v481_v51 = vrot.slane %v4639_v10, 2  ;;  %8622 = vst [vmem:[#allocation26_spill] sm:$0xff] %v4960_v36  ;;  %v480_v10 = vsel %vm477_vm1, %v478_v52, %v479_v43  ;;  %v494_v52 = vrot.slane %v4666_v22, 2 }
  0x4a   : > { %433 = vrot.lane.b32.xlu0 %v4925_v57, %s4567_s21  ;;  %v4955_v57 = vsel %vm300_vm0, %v377_v4, %v379_v6  ;;  %v484_v6 = vrot.slane %v4622_v1, 2  ;;  %v489_v4 = vrot.slane %v4642_v11, 2 }
  0x4b   : > { %8621 = vst [vmem:[#allocation25_spill] sm:$0xff] %v4955_v57  ;;  %v482_v27 = vsel %vm477_vm1, %v479_v43, %v481_v51  ;;  %v491_v51 = vrot.slane %v4649_v14, 2 }
  0x4c   : > { %v4975_v2 = vsel %vm477_vm1, %v484_v6, %v486_v5  ;;  %v4993_v14 = vsel %vm477_vm1, %v488_v7, %v489_v4  ;;  %v504_v7 = vrot.slane %v4709_v38, 2 }
  0x4d   : > { %439 = vrot.lane.b32.xlu1 %v4942_v21, %s4567_s21  ;;  %v4988_v43 = vsel %vm477_vm1, %v489_v4, %v491_v51  ;;  %v498_v4 = vrot.slane %v4693_v32, 2 }
  0x4e   : > { %437 = vrot.lane.b32.xlu0 %v4947_v9, %s4567_s21 }
  0x51   : > { %443 = vrot.lane.b32.xlu1 %v4955_v57, %s4567_s21 }
  0x52   : > { %441 = vrot.lane.b32.xlu0 %v4960_v36, %s4567_s21  ;;  %v4980_v36 = vsel %vm477_vm1, %v483_v41, %v484_v6  ;;  %v493_v6 = vrot.slane %v4672_v24, 2  ;;  %v501_v41 = vrot.slane %v4690_v31, 2 }
  0x55   : > { %560 = vrot.lane.b32.xlu1 %v482_v27, %s4568_s22  ;;  %v496_v27 = vrot.slane %v4669_v23, 2  ;;  %v5006_v23 = vsel %vm477_vm1, %v493_v6, %v494_v52 }
  0x56   : > { %558 = vrot.lane.b32.xlu0 %v480_v10, %s4568_s22  ;;  %v499_v10 = vrot.slane %v4687_v30, 2  ;;  %8623 = vst [vmem:[#allocation27_spill] sm:$0xff] %v5006_v23 }
  0x57   : > { %v5001_v5 = vsel %vm477_vm1, %v494_v52, %v496_v27  ;;  %v506_v27 = vrot.slane %v4712_v39, 2  ;;  %v503_v52 = vrot.slane %v4715_v40, 2 }
  0x58   : > { %v5014_v51 = vsel %vm477_vm1, %v499_v10, %v501_v41  ;;  %v5019_v31 = vsel %vm477_vm1, %v498_v4, %v499_v10  ;;  %v509_v41 = vrot.slane %v4731_v46, 2  ;;  %v508_v10 = vrot.slane %v4737_v48, 2 }
  0x59   : > { %564 = vrot.lane.b32.xlu1 %v4975_v2, %s4568_s22  ;;  %8624 = vst [vmem:[#allocation28_spill] sm:$0xff] %v5019_v31  ;;  %v5027_v6 = vsel %vm477_vm1, %v504_v7, %v506_v27  ;;  %v5032_v39 = vsel %vm477_vm1, %v503_v52, %v504_v7  ;;  %v514_v27 = vrot.slane %v4753_v54, 2  ;;  %v513_v7 = vrot.slane %v4759_v56, 2 }
  0x5a   : > { %562 = vrot.lane.b32.xlu0 %v4980_v36, %s4568_s22  ;;  %8625 = vst [vmem:[#allocation29_spill] sm:$0xff] %v5032_v39 }
  0x5d   : > { %568 = vrot.lane.b32.xlu1 %v4988_v43, %s4568_s22 }
  0x5e   : > { %566 = vrot.lane.b32.xlu0 %v4993_v14, %s4568_s22 }
  0x61   : > { %572 = vrot.lane.b32.xlu1 %v5001_v5, %s4568_s22 }
  0x62   : > { %570 = vrot.lane.b32.xlu0 %v5006_v23, %s4568_s22  ;;  %v511_v23 = vrot.slane %v4734_v47, 2  ;;  %v5045_v47 = vsel %vm477_vm1, %v508_v10, %v509_v41 }
  0x63   : > { %8626 = vst [vmem:[#allocation30_spill] sm:$0xff] %v5045_v47 }
  0x64   : > { %v5040_v4 = vsel %vm477_vm1, %v509_v41, %v511_v23  ;;  %v519_v23 = vrot.slane %v4775_v62, 2  ;;  %v518_v41 = vrot.slane %v4781_v3, 2 }
  0x65   : > { %576 = vrot.lane.b32.xlu1 %v5014_v51, %s4568_s22 }
  0x66   : > { %574 = vrot.lane.b32.xlu0 %v5019_v31, %s4568_s22  ;;  %v516_v31 = vrot.slane %v4756_v55, 2  ;;  %v5058_v55 = vsel %vm477_vm1, %v513_v7, %v514_v27 }
  0x67   : > { %8627 = vst [vmem:[#allocation31_spill] sm:$0xff] %v5058_v55 }
  0x68   : > { %v5053_v52 = vsel %vm477_vm1, %v514_v27, %v516_v31  ;;  %v524_v31 = vrot.slane %v4797_v16, 2  ;;  %v523_v27 = vrot.slane %v4803_v19, 2 }
  0x69   : > { %580 = vrot.lane.b32.xlu1 %v5027_v6, %s4568_s22 }
  0x6a   : > { %578 = vrot.lane.b32.xlu0 %v5032_v39, %s4568_s22  ;;  %v521_v39 = vrot.slane %v4778_v63, 2  ;;  %v5071_v63 = vsel %vm477_vm1, %v518_v41, %v519_v23 }
  0x6b   : > { %8628 = vst [vmem:[#allocation32_spill] sm:$0xff] %v5071_v63 }
  0x6c   : > { %v5066_v10 = vsel %vm477_vm1, %v519_v23, %v521_v39  ;;  %v529_v39 = vrot.slane %v4819_v34, 2  ;;  %v528_v23 = vrot.slane %v4825_v37, 2 }
  0x6d   : > { %584 = vrot.lane.b32.xlu1 %v5040_v4, %s4568_s22 }
  0x6e   : > { %582 = vrot.lane.b32.xlu0 %v5045_v47, %s4568_s22  ;;  %v526_v47 = vrot.slane %v4800_v18, 2  ;;  %v5084_v18 = vsel %vm477_vm1, %v523_v27, %v524_v31 }
  0x6f   : > { %8630 = vst [vmem:[#allocation34_spill] sm:$0xff] %v5084_v18 }
  0x70   : > { %v5079_v7 = vsel %vm477_vm1, %v524_v31, %v526_v47  ;;  %v534_v47 = vrot.slane %v4841_v53, 2  ;;  %v533_v31 = vrot.slane %v4847_v59, 2 }
  0x71   : > { %588 = vrot.lane.b32.xlu1 %v5053_v52, %s4568_s22  ;;  %8629 = vst [vmem:[#allocation33_spill] sm:$0xff] %v5079_v7 }
  0x72   : > { %586 = vrot.lane.b32.xlu0 %v5058_v55, %s4568_s22  ;;  %v531_v55 = vrot.slane %v4822_v35, 2  ;;  %v5097_v35 = vsel %vm477_vm1, %v528_v23, %v529_v39 }
  0x73   : > { %8631 = vst [vmem:[#allocation35_spill] sm:$0xff] %v5097_v35 }
  0x74   : > { %v5092_v41 = vsel %vm477_vm1, %v529_v39, %v531_v55  ;;  %v539_v55 = vrot.slane %v4863_v26, 2  ;;  %v538_v39 = vrot.slane %v4869_v50, 2 }
  0x75   : > { %592 = vrot.lane.b32.xlu1 %v5066_v10, %s4568_s22 }
  0x76   : > { %590 = vrot.lane.b32.xlu0 %v5071_v63, %s4568_s22  ;;  %v536_v63 = vrot.slane %v4844_v58, 2  ;;  %v5110_v58 = vsel %vm477_vm1, %v533_v31, %v534_v47 }
  0x77   : > { %8633 = vst [vmem:[#allocation37_spill] sm:$0xff] %v5110_v58 }
  0x78   : > { %v5105_v27 = vsel %vm477_vm1, %v534_v47, %v536_v63  ;;  %v544_v63 = vrot.slane %v4885_v20, 2  ;;  %v543_v47 = vrot.slane %v4891_v13, 2 }
  0x79   : > { %596 = vrot.lane.b32.xlu1 %v5079_v7, %s4568_s22  ;;  %8632 = vst [vmem:[#allocation36_spill] sm:$0xff] %v5105_v27 }
  0x7a   : > { %594 = vrot.lane.b32.xlu0 %v5084_v18, %s4568_s22  ;;  %v541_v18 = vrot.slane %v4866_v29, 2  ;;  %v5123_v29 = vsel %vm477_vm1, %v538_v39, %v539_v55 }
  0x7b   : > { %8634 = vst [vmem:[#allocation38_spill] sm:$0xff] %v5123_v29 }
  0x7c   : > { %v5118_v23 = vsel %vm477_vm1, %v539_v55, %v541_v18  ;;  %v549_v18 = vrot.slane %v4907_v60, 2  ;;  %v548_v55 = vrot.slane %v4913_v42, 2 }
  0x7d   : > { %600 = vrot.lane.b32.xlu1 %v5092_v41, %s4568_s22 }
  0x7e   : > { %598 = vrot.lane.b32.xlu0 %v5097_v35, %s4568_s22  ;;  %v546_v35 = vrot.slane %v4888_v61, 2  ;;  %v5138_v61 = vsel %vm477_vm1, %v543_v47, %v544_v63  ;;  %v553_v47 = vrot.slane %v4935_v8, 2 }
  0x7f   : > { %8637 = vst [vmem:[#allocation41_spill] sm:$0xff] %v5138_v61 }
  0x80   : > { %v5131_v31 = vsel %vm477_vm1, %v544_v63, %v546_v35  ;;  %v5155_v63 = vsel %vm477_vm1, %v548_v55, %v549_v18 }
  0x81   : > { %604 = vrot.lane.b32.xlu1 %v5105_v27, %s4568_s22  ;;  %8635 = vst [vmem:[#allocation39_spill] sm:$0xff] %v5131_v31  ;;  %8640 = vst [vmem:[#allocation44_spill] sm:$0xff] %v5155_v63 }
  0x82   : > { %602 = vrot.lane.b32.xlu0 %v5110_v58, %s4568_s22  ;;  %v551_v58 = vrot.slane %v4910_v45, 2  ;;  %v554_v45 = vrot.slane %v4929_v49, 2 }
  0x84   : > { %v5148_v35 = vsel %vm477_vm1, %v549_v18, %v551_v58 }
  0x85   : > { %608 = vrot.lane.b32.xlu1 %v5118_v23, %s4568_s22 }
  0x86   : > { %606 = vrot.lane.b32.xlu0 %v5123_v29, %s4568_s22 }
  0x87   : > { %v5135_v27 = vpop.permute.xlu1 %385 }
  0x88   : > { %8636 = vst [vmem:[#allocation40_spill] sm:$0xff] %v5135_v27  ;;  %v5141_v39 = vpop.permute.xlu0 %381  ;;  %v556_v27 = vrot.slane %v4932_v44, 2  ;;  %v5170_v44 = vsel %vm477_vm1, %v553_v47, %v554_v45 }
  0x89   : > { %8638 = vst [vmem:[#allocation42_spill] sm:$0xff] %v5141_v39  ;;  %612 = vrot.lane.b32.xlu1 %v5131_v31, %s4568_s22 }
  0x8a   : > { %610 = vrot.lane.b32.xlu0 %v5138_v61, %s4568_s22  ;;  %v5165_v58 = vsel %vm477_vm1, %v554_v45, %v556_v27 }
  0x8b   : > { %v5152_v29 = vpop.permute.xlu1 %387 }
  0x8c   : > { %8639 = vst [vmem:[#allocation43_spill] sm:$0xff] %v5152_v29  ;;  %v5158_v39 = vpop.permute.xlu0 %383 }
  0x8d   : > { %8641 = vst [vmem:[#allocation45_spill] sm:$0xff] %v5158_v39  ;;  %616 = vrot.lane.b32.xlu1 %v5148_v35, %s4568_s22 }
  0x8e   : > { %614 = vrot.lane.b32.xlu0 %v5155_v63, %s4568_s22 }
  0x8f   : > { %v5167_v61 = vpop.permute.xlu1 %391 }
  0x90   : > { %8642 = vst [vmem:[#allocation46_spill] sm:$0xff] %v5167_v61  ;;  %v5172_v18 = vpop.permute.xlu0 %389 }
  0x91   : > { %8643 = vst [vmem:[#allocation47_spill] sm:$0xff] %v5172_v18  ;;  %620 = vrot.lane.b32.xlu1 %v5165_v58, %s4568_s22 }
  0x92   : > { %618 = vrot.lane.b32.xlu0 %v5170_v44, %s4568_s22 }
  0x93   : > { %v5178_v55 = vpop.permute.xlu1 %395 }
  0x94   : > { %8644 = vst [vmem:[#allocation48_spill] sm:$0xff] %v5178_v55  ;;  %v5180_v29 = vpop.permute.xlu0 %393  ;;  %v5304_v55 = vld [vmem:[%s4616_s20 + $0x180] sm:$0xff] }
  0x95   : > { %8645 = vst [vmem:[#allocation49_spill] sm:$0xff] %v5180_v29  ;;  %658 = vrot.lane.b32.xlu1 %v4622_v1, %s4569_s23 }
  0x96   : > { %656 = vrot.lane.b32.xlu0 %v4619_v0, %s4569_s23 }
  0x97   : > { %v5186_v27 = vpop.permute.xlu1 %399 }
  0x98   : > { %8646 = vst [vmem:[#allocation50_spill] sm:$0xff] %v5186_v27  ;;  %v5188_v45 = vpop.permute.xlu0 %397 }
  0x99   : > { %8647 = vst [vmem:[#allocation51_spill] sm:$0xff] %v5188_v45  ;;  %662 = vrot.lane.b32.xlu1 %v4642_v11, %s4569_s23 }
  0x9a   : > { %660 = vrot.lane.b32.xlu0 %v4652_v15, %s4569_s23 }
  0x9b   : > { %v5194_v47 = vpop.permute.xlu1 %403 }
  0x9c   : > { %8648 = vst [vmem:[#allocation52_spill] sm:$0xff] %v5194_v47  ;;  %v5196_v29 = vpop.permute.xlu0 %401 }
  0x9d   : > { %8649 = vst [vmem:[#allocation53_spill] sm:$0xff] %v5196_v29  ;;  %666 = vrot.lane.b32.xlu1 %v4666_v22, %s4569_s23 }
  0x9e   : > { %664 = vrot.lane.b32.xlu0 %v4672_v24, %s4569_s23 }
  0x9f   : > { %v5202_v0 = vpop.permute.xlu1 %407 }
  0xa0   : > { %8650 = vst [vmem:[#allocation54_spill] sm:$0xff] %v5202_v0  ;;  %v5204_v1 = vpop.permute.xlu0 %405 }
  0xa1   : > { %8651 = vst [vmem:[#allocation55_spill] sm:$0xff] %v5204_v1  ;;  %670 = vrot.lane.b32.xlu1 %v4687_v30, %s4569_s23 }
  0xa2   : > { %668 = vrot.lane.b32.xlu0 %v4693_v32, %s4569_s23 }
  0xa3   : > { %v5210_v45 = vpop.permute.xlu1 %411 }
  0xa4   : > { %8652 = vst [vmem:[#allocation56_spill] sm:$0xff] %v5210_v45  ;;  %v5212_v47 = vpop.permute.xlu0 %409 }
  0xa5   : > { %8653 = vst [vmem:[#allocation57_spill] sm:$0xff] %v5212_v47  ;;  %674 = vrot.lane.b32.xlu1 %v4709_v38, %s4569_s23 }
  0xa6   : > { %672 = vrot.lane.b32.xlu0 %v4715_v40, %s4569_s23 }
  0xa7   : > { %v5218_v29 = vpop.permute.xlu1 %415 }
  0xa8   : > { %8654 = vst [vmem:[#allocation58_spill] sm:$0xff] %v5218_v29  ;;  %v5220_v0 = vpop.permute.xlu0 %413 }
  0xa9   : > { %8655 = vst [vmem:[#allocation59_spill] sm:$0xff] %v5220_v0  ;;  %678 = vrot.lane.b32.xlu1 %v4731_v46, %s4569_s23 }
  0xaa   : > { %676 = vrot.lane.b32.xlu0 %v4737_v48, %s4569_s23 }
  0xab   : > { %v5226_v1 = vpop.permute.xlu1 %419 }
  0xac   : > { %8656 = vst [vmem:[#allocation60_spill] sm:$0xff] %v5226_v1  ;;  %v5228_v45 = vpop.permute.xlu0 %417 }
  0xad   : > { %8657 = vst [vmem:[#allocation61_spill] sm:$0xff] %v5228_v45  ;;  %682 = vrot.lane.b32.xlu1 %v4753_v54, %s4569_s23 }
  0xae   : > { %680 = vrot.lane.b32.xlu0 %v4759_v56, %s4569_s23 }
  0xaf   : > { %v5234_v47 = vpop.permute.xlu1 %423 }
  0xb0   : > { %8658 = vst [vmem:[#allocation62_spill] sm:$0xff] %v5234_v47  ;;  %v5236_v29 = vpop.permute.xlu0 %421 }
  0xb1   : > { %8659 = vst [vmem:[#allocation63_spill] sm:$0xff] %v5236_v29  ;;  %686 = vrot.lane.b32.xlu1 %v4775_v62, %s4569_s23 }
  0xb2   : > { %684 = vrot.lane.b32.xlu0 %v4781_v3, %s4569_s23 }
  0xb3   : > { %v5242_v0 = vpop.permute.xlu1 %427 }
  0xb4   : > { %8660 = vst [vmem:[#allocation64_spill] sm:$0xff] %v5242_v0  ;;  %v5244_v1 = vpop.permute.xlu0 %425 }
  0xb5   : > { %8661 = vst [vmem:[#allocation65_spill] sm:$0xff] %v5244_v1  ;;  %690 = vrot.lane.b32.xlu1 %v4797_v16, %s4569_s23 }
  0xb6   : > { %688 = vrot.lane.b32.xlu0 %v4803_v19, %s4569_s23 }
  0xb7   : > { %v5250_v45 = vpop.permute.xlu1 %431 }
  0xb8   : > { %8662 = vst [vmem:[#allocation66_spill] sm:$0xff] %v5250_v45  ;;  %v5252_v47 = vpop.permute.xlu0 %429 }
  0xb9   : > { %8663 = vst [vmem:[#allocation67_spill] sm:$0xff] %v5252_v47  ;;  %694 = vrot.lane.b32.xlu1 %v4819_v34, %s4569_s23 }
  0xba   : > { %692 = vrot.lane.b32.xlu0 %v4825_v37, %s4569_s23 }
  0xbb   : > { %v5258_v29 = vpop.permute.xlu1 %435 }
  0xbc   : > { %8664 = vst [vmem:[#allocation68_spill] sm:$0xff] %v5258_v29  ;;  %v5260_v0 = vpop.permute.xlu0 %433 }
  0xbd   : > { %8665 = vst [vmem:[#allocation69_spill] sm:$0xff] %v5260_v0  ;;  %698 = vrot.lane.b32.xlu1 %v4841_v53, %s4569_s23 }
  0xbe   : > { %696 = vrot.lane.b32.xlu0 %v4847_v59, %s4569_s23 }
  0xbf   : > { %v5266_v1 = vpop.permute.xlu1 %439 }
  0xc0   : > { %8666 = vst [vmem:[#allocation70_spill] sm:$0xff] %v5266_v1  ;;  %v5268_v47 = vpop.permute.xlu0 %437 }
  0xc1   : > { %8667 = vst [vmem:[#allocation71_spill] sm:$0xff] %v5268_v47  ;;  %702 = vrot.lane.b32.xlu1 %v4863_v26, %s4569_s23 }
  0xc2   : > { %700 = vrot.lane.b32.xlu0 %v4869_v50, %s4569_s23 }
  0xc3   : > { %v5274_v29 = vpop.permute.xlu1 %443 }
  0xc4   : > { %8668 = vst [vmem:[#allocation72_spill] sm:$0xff] %v5274_v29  ;;  %v5276_v0 = vpop.permute.xlu0 %441 }
  0xc5   : > { %8669 = vst [vmem:[#allocation73_spill] sm:$0xff] %v5276_v0  ;;  %706 = vrot.lane.b32.xlu1 %v4885_v20, %s4569_s23  ;;  %v5299_v0 = vld [vmem:[%s4616_s20 + $0x188] sm:$0xff] }
  0xc6   : > { %704 = vrot.lane.b32.xlu0 %v4891_v13, %s4569_s23 }
  0xc7   : > { %v5282_v1 = vpop.permute.xlu1 %560 }
  0xc8   : > { %8670 = vst [vmem:[#allocation74_spill] sm:$0xff] %v5282_v1  ;;  %v5284_v47 = vpop.permute.xlu0 %558  ;;  %v8690_v1 = vld [vmem:[#allocation6_spill] sm:$0xff] }
  0xc9   : > { %8671 = vst [vmem:[#allocation75_spill] sm:$0xff] %v5284_v47  ;;  %710 = vrot.lane.b32.xlu1 %v4907_v60, %s4569_s23 }
  0xca   : > { %708 = vrot.lane.b32.xlu0 %v4913_v42, %s4569_s23 }
  0xcb   : > { %v5290_v45 = vpop.permute.xlu1 %564 }
  0xcc   : > { %8672 = vst [vmem:[#allocation76_spill] sm:$0xff] %v5290_v45  ;;  %v5292_v29 = vpop.permute.xlu0 %562  ;;  %v8686_v45 = vld [vmem:[#allocation4_spill] sm:$0xff] }
  0xcd   : > { %8673 = vst [vmem:[#allocation77_spill] sm:$0xff] %v5292_v29  ;;  %714 = vrot.lane.b32.xlu1 %v4929_v49, %s4569_s23 }
  0xce   : > { %712 = vrot.lane.b32.xlu0 %v4935_v8, %s4569_s23 }
  0xcf   : > { %v5301_v27 = vpop.permute.xlu1 %568 }
  0xd0   : > { %8674 = vst [vmem:[#allocation78_spill] sm:$0xff] %v5301_v27  ;;  %v5306_v18 = vpop.permute.xlu0 %566 }
  0xd1   : > { %8675 = vst [vmem:[#allocation79_spill] sm:$0xff] %v5306_v18  ;;  %718 = vrot.lane.b32.xlu1 %v5299_v0, %s4569_s23 }
  0xd2   : > { %716 = vrot.lane.b32.xlu0 %v5304_v55, %s4569_s23 }
  0xd3   : > { %v5312_v61 = vpop.permute.xlu1 %572 }
  0xd4   : > { %8676 = vst [vmem:[#allocation80_spill] sm:$0xff] %v5312_v61  ;;  %v5314_v29 = vpop.permute.xlu0 %570 }
  0xd5   : > { %8677 = vst [vmem:[#allocation81_spill] sm:$0xff] %v5314_v29  ;;  %760 = vrot.lane.b32.xlu1 %v4659_v17, %s4570_s24  ;;  %v8682_v17 = vld [vmem:[#allocation2_spill] sm:$0xff] }
  0xd6   : > { %758 = vrot.lane.b32.xlu0 %v4645_v12, %s4570_s24 }
  0xd7   : > { %v5320_v27 = vpop.permute.xlu1 %576 }
  0xd8   : > { %8678 = vst [vmem:[#allocation82_spill] sm:$0xff] %v5320_v27  ;;  %v5322_v18 = vpop.permute.xlu0 %574 }
  0xd9   : > { %8679 = vst [vmem:[#allocation83_spill] sm:$0xff] %v5322_v18  ;;  %764 = vrot.lane.b32.xlu1 %v4678_v25, %s4570_s24  ;;  %v8685_v18 = vld [vmem:[#allocation3_spill] sm:$0xff] }
  0xda   : > { %762 = vrot.lane.b32.xlu0 %v4683_v28, %s4570_s24 }
  0xdb   : > { %v5328_v61 = vpop.permute.xlu1 %580 }
  0xdc   : > { %8680 = vst [vmem:[#allocation84_spill] sm:$0xff] %v5328_v61  ;;  %v5330_v29 = vpop.permute.xlu0 %578 }
  0xdd   : > { %8681 = vst [vmem:[#allocation85_spill] sm:$0xff] %v5330_v29  ;;  %768 = vrot.lane.b32.xlu1 %v4700_v33, %s4570_s24  ;;  %v8689_v29 = vld [vmem:[#allocation5_spill] sm:$0xff] }
  0xde   : > { %766 = vrot.lane.b32.xlu0 %v8682_v17, %s4570_s24 }
  0xdf   : > { %v5336_v12 = vpop.permute.xlu1 %584 }
  0xe0   : > { %8683 = vst [vmem:[#allocation2_spill] sm:$0xff] %v5336_v12  ;;  %v5338_v27 = vpop.permute.xlu0 %582 }
  0xe1   : > { %8684 = vst [vmem:[#allocation86_spill] sm:$0xff] %v5338_v27  ;;  %772 = vrot.lane.b32.xlu1 %v8685_v18, %s4570_s24  ;;  %v8693_v27 = vld [vmem:[#allocation7_spill] sm:$0xff]  ;;  %v8694_v18 = vld [vmem:[#allocation8_spill] sm:$0xff] }
  0xe2   : > { %770 = vrot.lane.b32.xlu0 %v8686_v45, %s4570_s24 }
  0xe3   : > { %v5344_v47 = vpop.permute.xlu1 %588 }
  0xe4   : > { %8687 = vst [vmem:[#allocation87_spill] sm:$0xff] %v5344_v47  ;;  %v5346_v61 = vpop.permute.xlu0 %586 }
  0xe5   : > { %8688 = vst [vmem:[#allocation88_spill] sm:$0xff] %v5346_v61  ;;  %776 = vrot.lane.b32.xlu1 %v8689_v29, %s4570_s24  ;;  %v8697_v61 = vld [vmem:[#allocation9_spill] sm:$0xff]  ;;  %v8698_v29 = vld [vmem:[#allocation10_spill] sm:$0xff] }
  0xe6   : > { %774 = vrot.lane.b32.xlu0 %v8690_v1, %s4570_s24 }
  0xe7   : > { %v5352_v39 = vpop.permute.xlu1 %592 }
  0xe8   : > { %8691 = vst [vmem:[#allocation89_spill] sm:$0xff] %v5352_v39  ;;  %v5354_v12 = vpop.permute.xlu0 %590 }
  0xe9   : > { %8692 = vst [vmem:[#allocation90_spill] sm:$0xff] %v5354_v12  ;;  %780 = vrot.lane.b32.xlu1 %v8693_v27, %s4570_s24  ;;  %v8701_v12 = vld [vmem:[#allocation11_spill] sm:$0xff]  ;;  %v8702_v27 = vld [vmem:[#allocation12_spill] sm:$0xff] }
  0xea   : > { %778 = vrot.lane.b32.xlu0 %v8694_v18, %s4570_s24 }
  0xeb   : > { %v5360_v45 = vpop.permute.xlu1 %596 }
  0xec   : > { %8695 = vst [vmem:[#allocation91_spill] sm:$0xff] %v5360_v45  ;;  %v5362_v47 = vpop.permute.xlu0 %594 }
  0xed   : > { %8696 = vst [vmem:[#allocation92_spill] sm:$0xff] %v5362_v47  ;;  %784 = vrot.lane.b32.xlu1 %v8697_v61, %s4570_s24  ;;  %v8705_v47 = vld [vmem:[#allocation13_spill] sm:$0xff]  ;;  %v8706_v61 = vld [vmem:[#allocation14_spill] sm:$0xff] }
  0xee   : > { %782 = vrot.lane.b32.xlu0 %v8698_v29, %s4570_s24 }
  0xef   : > { %v5368_v1 = vpop.permute.xlu1 %600 }
  0xf0   : > { %8699 = vst [vmem:[#allocation93_spill] sm:$0xff] %v5368_v1  ;;  %v5370_v39 = vpop.permute.xlu0 %598 }
  0xf1   : > { %8700 = vst [vmem:[#allocation94_spill] sm:$0xff] %v5370_v39  ;;  %788 = vrot.lane.b32.xlu1 %v8701_v12, %s4570_s24  ;;  %v8709_v39 = vld [vmem:[#allocation15_spill] sm:$0xff] }
  0xf2   : > { %786 = vrot.lane.b32.xlu0 %v8702_v27, %s4570_s24  ;;  %v8710_v27 = vld [vmem:[#allocation16_spill] sm:$0xff]  ;;  %v8717_v12 = vld [vmem:[#allocation19_spill] sm:$0xff] }
  0xf3   : > { %v5376_v18 = vpop.permute.xlu1 %604 }
  0xf4   : > { %8703 = vst [vmem:[#allocation95_spill] sm:$0xff] %v5376_v18  ;;  %v5378_v45 = vpop.permute.xlu0 %602 }
  0xf5   : > { %8704 = vst [vmem:[#allocation96_spill] sm:$0xff] %v5378_v45  ;;  %792 = vrot.lane.b32.xlu1 %v8705_v47, %s4570_s24  ;;  %v8713_v47 = vld [vmem:[#allocation17_spill] sm:$0xff] }
  0xf6   : > { %790 = vrot.lane.b32.xlu0 %v8706_v61, %s4570_s24  ;;  %v8714_v61 = vld [vmem:[#allocation18_spill] sm:$0xff] }
  0xf7   : > { %v5384_v29 = vpop.permute.xlu1 %608 }
  0xf8   : > { %8707 = vst [vmem:[#allocation97_spill] sm:$0xff] %v5384_v29  ;;  %v5386_v1 = vpop.permute.xlu0 %606 }
  0xf9   : > { %8708 = vst [vmem:[#allocation98_spill] sm:$0xff] %v5386_v1  ;;  %796 = vrot.lane.b32.xlu1 %v8709_v39, %s4570_s24  ;;  %v8718_v39 = vld [vmem:[#allocation20_spill] sm:$0xff] }
  0xfa   : > { %794 = vrot.lane.b32.xlu0 %v8710_v27, %s4570_s24 }
  0xfb   : > { %v5392_v18 = vpop.permute.xlu1 %612 }
  0xfc   : > { %8711 = vst [vmem:[#allocation99_spill] sm:$0xff] %v5392_v18  ;;  %v5394_v45 = vpop.permute.xlu0 %610 }
  0xfd   : > { %8712 = vst [vmem:[#allocation100_spill] sm:$0xff] %v5394_v45  ;;  %800 = vrot.lane.b32.xlu1 %v8713_v47, %s4570_s24  ;;  %v8721_v45 = vld [vmem:[#allocation21_spill] sm:$0xff]  ;;  %v8722_v47 = vld [vmem:[#allocation22_spill] sm:$0xff] }
  0xfe   : > { %798 = vrot.lane.b32.xlu0 %v8714_v61, %s4570_s24 }
  0xff   : > { %v5400_v29 = vpop.permute.xlu1 %616 }
 0x100   : > { %8715 = vst [vmem:[#allocation101_spill] sm:$0xff] %v5400_v29  ;;  %v5402_v1 = vpop.permute.xlu0 %614  ;;  %v5419_v29 = vld [vmem:[%s4616_s20 + $0x190] sm:$0x3] }
 0x101   : > { %8716 = vst [vmem:[#allocation102_spill] sm:$0xff] %v5402_v1  ;;  %804 = vrot.lane.b32.xlu1 %v8717_v12, %s4570_s24 }
 0x102   : > { %802 = vrot.lane.b32.xlu0 %v8718_v39, %s4570_s24  ;;  %v754_v39 = vrot.slane %v5299_v0, 1 }
 0x103   : > { %v5408_v27 = vpop.permute.xlu1 %620 }
 0x104   : > { %8719 = vst [vmem:[#allocation103_spill] sm:$0xff] %v5408_v27  ;;  %v5410_v18 = vpop.permute.xlu0 %618  ;;  %v753_v27 = vrot.slane %v5304_v55, 1 }
 0x105   : > { %8720 = vst [vmem:[#allocation104_spill] sm:$0xff] %v5410_v18  ;;  %808 = vrot.lane.b32.xlu1 %v8721_v45, %s4570_s24  ;;  %v756_v18 = vrot.slane %v5419_v29, 1 }
 0x106   : > { %806 = vrot.lane.b32.xlu0 %v8722_v47, %s4570_s24 }
 0x107   : > { %v5416_v61 = vpop.permute.xlu1 %658 }
 0x108   : > { %8723 = vst [vmem:[#allocation105_spill] sm:$0xff] %v5416_v61  ;;  %v5421_v1 = vpop.permute.xlu0 %656  ;;  %v5439_v61 = vsel %vm300_vm0, %v754_v39, %v756_v18 }
 0x109   : > { %8724 = vst [vmem:[#allocation106_spill] sm:$0xff] %v5421_v1  ;;  %812 = vrot.lane.b32.xlu1 %v4942_v21, %s4570_s24  ;;  %v8727_v1 = vld [vmem:[#allocation26_spill] sm:$0xff]  ;;  %8728 = vst [vmem:[#allocation109_spill] sm:$0xff] %v5439_v61 }
 0x10a   : > { %810 = vrot.lane.b32.xlu0 %v4947_v9, %s4570_s24  ;;  %v5444_v9 = vsel %vm300_vm0, %v753_v27, %v754_v39 }
 0x10b   : > { %v5430_v45 = vpop.permute.xlu1 %662  ;;  %8730 = vst [vmem:[#allocation111_spill] sm:$0xff] %v5444_v9 }
 0x10c   : > { %8725 = vst [vmem:[#allocation107_spill] sm:$0xff] %v5430_v45  ;;  %v5432_v47 = vpop.permute.xlu0 %660 }
 0x10d   : > { %8726 = vst [vmem:[#allocation108_spill] sm:$0xff] %v5432_v47  ;;  %816 = vrot.lane.b32.xlu1 %v4955_v57, %s4570_s24 }
 0x10e   : > { %814 = vrot.lane.b32.xlu0 %v8727_v1, %s4570_s24 }
 0x10f   : > { %v5441_v21 = vpop.permute.xlu1 %666 }
 0x110   : > { %8729 = vst [vmem:[#allocation110_spill] sm:$0xff] %v5441_v21  ;;  %v5446_v12 = vpop.permute.xlu0 %664 }
 0x111   : > { %8731 = vst [vmem:[#allocation112_spill] sm:$0xff] %v5446_v12  ;;  %820 = vrot.lane.b32.xlu1 %v5439_v61, %s4570_s24 }
 0x112   : > { %818 = vrot.lane.b32.xlu0 %v5444_v9, %s4570_s24 }
 0x113   : > { %v5452_v47 = vpop.permute.xlu1 %670 }
 0x114   : > { %8732 = vst [vmem:[#allocation113_spill] sm:$0xff] %v5452_v47  ;;  %v5454_v45 = vpop.permute.xlu0 %668 }
 0x115   : > { %8733 = vst [vmem:[#allocation114_spill] sm:$0xff] %v5454_v45  ;;  %861 = vrot.lane.b32.xlu1 %v4975_v2, %s4571_s25  ;;  %v8738_v2 = vld [vmem:[#allocation27_spill] sm:$0xff] }
 0x116   : > { %859 = vrot.lane.b32.xlu0 %v4980_v36, %s4571_s25 }
 0x117   : > { %v5460_v39 = vpop.permute.xlu1 %674 }
 0x118   : > { %8734 = vst [vmem:[#allocation115_spill] sm:$0xff] %v5460_v39  ;;  %v5462_v18 = vpop.permute.xlu0 %672 }
 0x119   : > { %8735 = vst [vmem:[#allocation116_spill] sm:$0xff] %v5462_v18  ;;  %865 = vrot.lane.b32.xlu1 %v4988_v43, %s4571_s25  ;;  %v8741_v18 = vld [vmem:[#allocation28_spill] sm:$0xff] }
 0x11a   : > { %863 = vrot.lane.b32.xlu0 %v4993_v14, %s4571_s25 }
 0x11b   : > { %v5468_v27 = vpop.permute.xlu1 %678 }
 0x11c   : > { %8736 = vst [vmem:[#allocation117_spill] sm:$0xff] %v5468_v27  ;;  %v5470_v45 = vpop.permute.xlu0 %676 }
 0x11d   : > { %8737 = vst [vmem:[#allocation118_spill] sm:$0xff] %v5470_v45  ;;  %869 = vrot.lane.b32.xlu1 %v5001_v5, %s4571_s25  ;;  %v8744_v45 = vld [vmem:[#allocation29_spill] sm:$0xff] }
 0x11e   : > { %867 = vrot.lane.b32.xlu0 %v8738_v2, %s4571_s25 }
 0x11f   : > { %v5476_v36 = vpop.permute.xlu1 %682 }
 0x120   : > { %8739 = vst [vmem:[#allocation27_spill] sm:$0xff] %v5476_v36  ;;  %v5478_v39 = vpop.permute.xlu0 %680 }
 0x121   : > { %8740 = vst [vmem:[#allocation119_spill] sm:$0xff] %v5478_v39  ;;  %873 = vrot.lane.b32.xlu1 %v5014_v51, %s4571_s25  ;;  %v8747_v39 = vld [vmem:[#allocation30_spill] sm:$0xff] }
 0x122   : > { %871 = vrot.lane.b32.xlu0 %v8741_v18, %s4571_s25 }
 0x123   : > { %v5484_v47 = vpop.permute.xlu1 %686 }
 0x124   : > { %8742 = vst [vmem:[#allocation28_spill] sm:$0xff] %v5484_v47  ;;  %v5486_v27 = vpop.permute.xlu0 %684 }
 0x125   : > { %8743 = vst [vmem:[#allocation120_spill] sm:$0xff] %v5486_v27  ;;  %877 = vrot.lane.b32.xlu1 %v5027_v6, %s4571_s25  ;;  %v8750_v27 = vld [vmem:[#allocation31_spill] sm:$0xff] }
 0x126   : > { %875 = vrot.lane.b32.xlu0 %v8744_v45, %s4571_s25 }
 0x127   : > { %v5492_v12 = vpop.permute.xlu1 %690 }
 0x128   : > { %8745 = vst [vmem:[#allocation29_spill] sm:$0xff] %v5492_v12  ;;  %v5494_v36 = vpop.permute.xlu0 %688 }
 0x129   : > { %8746 = vst [vmem:[#allocation121_spill] sm:$0xff] %v5494_v36  ;;  %881 = vrot.lane.b32.xlu1 %v5040_v4, %s4571_s25  ;;  %v8753_v36 = vld [vmem:[#allocation32_spill] sm:$0xff] }
 0x12a   : > { %879 = vrot.lane.b32.xlu0 %v8747_v39, %s4571_s25 }
 0x12b   : > { %v5500_v21 = vpop.permute.xlu1 %694 }
 0x12c   : > { %8748 = vst [vmem:[#allocation30_spill] sm:$0xff] %v5500_v21  ;;  %v5502_v47 = vpop.permute.xlu0 %692 }
 0x12d   : > { %8749 = vst [vmem:[#allocation122_spill] sm:$0xff] %v5502_v47  ;;  %885 = vrot.lane.b32.xlu1 %v5053_v52, %s4571_s25  ;;  %v8756_v47 = vld [vmem:[#allocation34_spill] sm:$0xff] }
 0x12e   : > { %883 = vrot.lane.b32.xlu0 %v8750_v27, %s4571_s25 }
 0x12f   : > { %v5508_v9 = vpop.permute.xlu1 %698 }
 0x130   : > { %8751 = vst [vmem:[#allocation31_spill] sm:$0xff] %v5508_v9  ;;  %v5510_v12 = vpop.permute.xlu0 %696 }
 0x131   : > { %8752 = vst [vmem:[#allocation123_spill] sm:$0xff] %v5510_v12  ;;  %889 = vrot.lane.b32.xlu1 %v5066_v10, %s4571_s25  ;;  %v8759_v12 = vld [vmem:[#allocation35_spill] sm:$0xff] }
 0x132   : > { %887 = vrot.lane.b32.xlu0 %v8753_v36, %s4571_s25 }
 0x133   : > { %v5516_v61 = vpop.permute.xlu1 %702 }
 0x134   : > { %8754 = vst [vmem:[#allocation32_spill] sm:$0xff] %v5516_v61  ;;  %v5518_v21 = vpop.permute.xlu0 %700 }
 0x135   : > { %8755 = vst [vmem:[#allocation124_spill] sm:$0xff] %v5518_v21  ;;  %893 = vrot.lane.b32.xlu1 %v5079_v7, %s4571_s25  ;;  %v8762_v21 = vld [vmem:[#allocation36_spill] sm:$0xff]  ;;  %v8763_v7 = vld [vmem:[#allocation37_spill] sm:$0xff] }
 0x136   : > { %891 = vrot.lane.b32.xlu0 %v8756_v47, %s4571_s25 }
 0x137   : > { %v5524_v1 = vpop.permute.xlu1 %706 }
 0x138   : > { %8757 = vst [vmem:[#allocation125_spill] sm:$0xff] %v5524_v1  ;;  %v5526_v9 = vpop.permute.xlu0 %704 }
 0x139   : > { %8758 = vst [vmem:[#allocation126_spill] sm:$0xff] %v5526_v9  ;;  %897 = vrot.lane.b32.xlu1 %v5092_v41, %s4571_s25  ;;  %v8766_v9 = vld [vmem:[#allocation38_spill] sm:$0xff] }
 0x13a   : > { %895 = vrot.lane.b32.xlu0 %v8759_v12, %s4571_s25 }
 0x13b   : > { %v5532_v57 = vpop.permute.xlu1 %710 }
 0x13c   : > { %8760 = vst [vmem:[#allocation127_spill] sm:$0xff] %v5532_v57  ;;  %v5534_v61 = vpop.permute.xlu0 %708 }
 0x13d   : > { %8761 = vst [vmem:[#allocation128_spill] sm:$0xff] %v5534_v61  ;;  %901 = vrot.lane.b32.xlu1 %v8762_v21, %s4571_s25  ;;  %v8769_v61 = vld [vmem:[#allocation41_spill] sm:$0xff] }
 0x13e   : > { %899 = vrot.lane.b32.xlu0 %v8763_v7, %s4571_s25 }
 0x13f   : > { %v5540_v47 = vpop.permute.xlu1 %714 }
 0x140   : > { %8764 = vst [vmem:[#allocation36_spill] sm:$0xff] %v5540_v47  ;;  %v5542_v1 = vpop.permute.xlu0 %712 }
 0x141   : > { %8765 = vst [vmem:[#allocation129_spill] sm:$0xff] %v5542_v1  ;;  %905 = vrot.lane.b32.xlu1 %v5118_v23, %s4571_s25  ;;  %v855_v1 = vrot.slane %v5299_v0, 2 }
 0x142   : > { %903 = vrot.lane.b32.xlu0 %v8766_v9, %s4571_s25 }
 0x143   : > { %v5548_v12 = vpop.permute.xlu1 %718 }
 0x144   : > { %8767 = vst [vmem:[#allocation130_spill] sm:$0xff] %v5548_v12  ;;  %v5550_v57 = vpop.permute.xlu0 %716  ;;  %v854_v12 = vrot.slane %v5304_v55, 2 }
 0x145   : > { %8768 = vst [vmem:[#allocation131_spill] sm:$0xff] %v5550_v57  ;;  %909 = vrot.lane.b32.xlu1 %v5131_v31, %s4571_s25  ;;  %v857_v57 = vrot.slane %v5419_v29, 2 }
 0x146   : > { %907 = vrot.lane.b32.xlu0 %v8769_v61, %s4571_s25 }
 0x147   : > { %v5556_v7 = vpop.permute.xlu1 %760 }
 0x148   : > { %8770 = vst [vmem:[#allocation41_spill] sm:$0xff] %v5556_v7  ;;  %v5558_v47 = vpop.permute.xlu0 %758 }
 0x149   : > { %8771 = vst [vmem:[#allocation132_spill] sm:$0xff] %v5558_v47  ;;  %913 = vrot.lane.b32.xlu1 %v5148_v35, %s4571_s25  ;;  %v5576_v47 = vsel %vm477_vm1, %v855_v1, %v857_v57 }
 0x14a   : > { %911 = vrot.lane.b32.xlu0 %v5155_v63, %s4571_s25  ;;  %v5581_v63 = vsel %vm477_vm1, %v854_v12, %v855_v1 }
 0x14b   : > { %v5567_v31 = vpop.permute.xlu1 %764 }
 0x14c   : > { %8772 = vst [vmem:[#allocation133_spill] sm:$0xff] %v5567_v31  ;;  %v5569_v9 = vpop.permute.xlu0 %762 }
 0x14d   : > { %8773 = vst [vmem:[#allocation134_spill] sm:$0xff] %v5569_v9  ;;  %917 = vrot.lane.b32.xlu1 %v5165_v58, %s4571_s25 }
 0x14e   : > { %915 = vrot.lane.b32.xlu0 %v5170_v44, %s4571_s25 }
 0x14f   : > { %v5578_v7 = vpop.permute.xlu1 %768 }
 0x150   : > { %v5583_v29 = vpop.permute.xlu0 %766 }
 0x151   : > { %921 = vrot.lane.b32.xlu1 %v5576_v47, %s4571_s25 }
 0x152   : > { %919 = vrot.lane.b32.xlu0 %v5581_v63, %s4571_s25 }
 0x153   : > { %v5589_v9 = vpop.permute.xlu1 %772 }
 0x154   : > { %v5591_v31 = vpop.permute.xlu0 %770 }
 0x155   : > { %8774 = vst [vmem:[#allocation135_spill] sm:$0xff] %v5591_v31  ;;  %959 = vrot.lane.b32.xlu1 %v4642_v11, %s4572_s26 }
 0x156   : > { %957 = vrot.lane.b32.xlu0 %v4652_v15, %s4572_s26 }
 0x157   : > { %v5597_v57 = vpop.permute.xlu1 %776 }
 0x158   : > { %v5599_v1 = vpop.permute.xlu0 %774 }
 0x159   : > { %963 = vrot.lane.b32.xlu1 %v4666_v22, %s4572_s26 }
 0x15a   : > { %961 = vrot.lane.b32.xlu0 %v4672_v24, %s4572_s26 }
 0x15b   : > { %v5605_v12 = vpop.permute.xlu1 %780 }
 0x15c   : > { %v5607_v31 = vpop.permute.xlu0 %778 }
 0x15d   : > { %967 = vrot.lane.b32.xlu1 %v4687_v30, %s4572_s26 }
 0x15e   : > { %965 = vrot.lane.b32.xlu0 %v4693_v32, %s4572_s26 }
 0x15f   : > { %v5613_v11 = vpop.permute.xlu1 %784 }
 0x160   : > { %v5615_v15 = vpop.permute.xlu0 %782 }
 0x161   : > { %971 = vrot.lane.b32.xlu1 %v4709_v38, %s4572_s26 }
 0x162   : > { %969 = vrot.lane.b32.xlu0 %v4715_v40, %s4572_s26 }
 0x163   : > { %v5621_v22 = vpop.permute.xlu1 %788 }
 0x164   : > { %8775 = vst [vmem:[#allocation136_spill] sm:$0xff] %v5621_v22  ;;  %v5623_v24 = vpop.permute.xlu0 %786 }
 0x165   : > { %8776 = vst [vmem:[#allocation137_spill] sm:$0xff] %v5623_v24  ;;  %975 = vrot.lane.b32.xlu1 %v4731_v46, %s4572_s26 }
 0x166   : > { %973 = vrot.lane.b32.xlu0 %v4737_v48, %s4572_s26 }
 0x167   : > { %v5629_v30 = vpop.permute.xlu1 %792 }
 0x168   : > { %8777 = vst [vmem:[#allocation138_spill] sm:$0xff] %v5629_v30  ;;  %v5631_v32 = vpop.permute.xlu0 %790  ;;  %v8867_v30 = vld [vmem:[#allocation74_spill] sm:$0xff] }
 0x169   : > { %8778 = vst [vmem:[#allocation139_spill] sm:$0xff] %v5631_v32  ;;  %979 = vrot.lane.b32.xlu1 %v4753_v54, %s4572_s26 }
 0x16a   : > { %977 = vrot.lane.b32.xlu0 %v4759_v56, %s4572_s26 }
 0x16b   : > { %v5637_v38 = vpop.permute.xlu1 %796 }
 0x16c   : > { %8779 = vst [vmem:[#allocation140_spill] sm:$0xff] %v5637_v38  ;;  %v5639_v40 = vpop.permute.xlu0 %794 }
 0x16d   : > { %8780 = vst [vmem:[#allocation141_spill] sm:$0xff] %v5639_v40  ;;  %983 = vrot.lane.b32.xlu1 %v4775_v62, %s4572_s26  ;;  %v8807_v40 = vld [vmem:[#allocation11_spill] sm:$0xff] }
 0x16e   : > { %981 = vrot.lane.b32.xlu0 %v4781_v3, %s4572_s26 }
 0x16f   : > { %v5645_v46 = vpop.permute.xlu1 %800 }
 0x170   : > { %8781 = vst [vmem:[#allocation142_spill] sm:$0xff] %v5645_v46  ;;  %v5647_v48 = vpop.permute.xlu0 %798  ;;  %v8804_v46 = vld [vmem:[#allocation10_spill] sm:$0xff] }
 0x171   : > { %8782 = vst [vmem:[#allocation143_spill] sm:$0xff] %v5647_v48  ;;  %987 = vrot.lane.b32.xlu1 %v4797_v16, %s4572_s26  ;;  %v1520_v48 = vld [vmem:[%s8391_s1] sm:$0xff] }
 0x172   : > { %985 = vrot.lane.b32.xlu0 %v4803_v19, %s4572_s26 }
 0x173   : > { %v5653_v54 = vpop.permute.xlu1 %804 }
 0x174   : > { %8783 = vst [vmem:[#allocation144_spill] sm:$0xff] %v5653_v54  ;;  %v5655_v56 = vpop.permute.xlu0 %802 }
 0x175   : > { %8784 = vst [vmem:[#allocation145_spill] sm:$0xff] %v5655_v56  ;;  %991 = vrot.lane.b32.xlu1 %v4819_v34, %s4572_s26  ;;  %v8799_v56 = vld [vmem:[#allocation7_spill] sm:$0xff] }
 0x176   : > { %989 = vrot.lane.b32.xlu0 %v4825_v37, %s4572_s26 }
 0x177   : > { %v5661_v62 = vpop.permute.xlu1 %808 }
 0x178   : > { %8785 = vst [vmem:[#allocation146_spill] sm:$0xff] %v5661_v62  ;;  %v5663_v3 = vpop.permute.xlu0 %806 }
 0x179   : > { %8786 = vst [vmem:[#allocation147_spill] sm:$0xff] %v5663_v3  ;;  %995 = vrot.lane.b32.xlu1 %v4841_v53, %s4572_s26 }
 0x17a   : > { %993 = vrot.lane.b32.xlu0 %v4847_v59, %s4572_s26 }
 0x17b   : > { %v5669_v16 = vpop.permute.xlu1 %812 }
 0x17c   : > { %8787 = vst [vmem:[#allocation148_spill] sm:$0xff] %v5669_v16  ;;  %v5671_v19 = vpop.permute.xlu0 %810 }
 0x17d   : > { %8788 = vst [vmem:[#allocation149_spill] sm:$0xff] %v5671_v19  ;;  %999 = vrot.lane.b32.xlu1 %v4863_v26, %s4572_s26  ;;  %v8793_v19 = vld [vmem:[#allocation3_spill] sm:$0xff] }
 0x17e   : > { %997 = vrot.lane.b32.xlu0 %v4869_v50, %s4572_s26 }
 0x17f   : > { %v5677_v34 = vpop.permute.xlu1 %816 }
 0x180   : > { %8789 = vst [vmem:[#allocation150_spill] sm:$0xff] %v5677_v34  ;;  %v5679_v37 = vpop.permute.xlu0 %814 }
 0x181   : > { %8790 = vst [vmem:[#allocation151_spill] sm:$0xff] %v5679_v37  ;;  %1003 = vrot.lane.b32.xlu1 %v4885_v20, %s4572_s26 }
 0x182   : > { %1001 = vrot.lane.b32.xlu0 %v4891_v13, %s4572_s26 }
 0x183   : > { %v5685_v53 = vpop.permute.xlu1 %820 }
 0x184   : > { %8791 = vst [vmem:[#allocation152_spill] sm:$0xff] %v5685_v53  ;;  %v5687_v59 = vpop.permute.xlu0 %818 }
 0x185   : > { %8792 = vst [vmem:[#allocation153_spill] sm:$0xff] %v5687_v59  ;;  %1007 = vrot.lane.b32.xlu1 %v4907_v60, %s4572_s26  ;;  %v5710_v60 = vld [vmem:[%s4616_s20 + $0x1a0] sm:$0xff]  ;;  %v5715_v59 = vld [vmem:[%s4616_s20 + $0x198] sm:$0xff] }
 0x186   : > { %1005 = vrot.lane.b32.xlu0 %v4913_v42, %s4572_s26 }
 0x187   : > { %v5693_v50 = vpop.permute.xlu1 %861 }
 0x188   : > { %v5695_v26 = vpop.permute.xlu0 %859 }
 0x189   : > { %1011 = vrot.lane.b32.xlu1 %v4929_v49, %s4572_s26 }
 0x18a   : > { %1009 = vrot.lane.b32.xlu0 %v4935_v8, %s4572_s26 }
 0x18b   : > { %v5701_v20 = vpop.permute.xlu1 %865 }
 0x18c   : > { %v5703_v13 = vpop.permute.xlu0 %863 }
 0x18d   : > { %1015 = vrot.lane.b32.xlu1 %v5299_v0, %s4572_s26 }
 0x18e   : > { %1013 = vrot.lane.b32.xlu0 %v5304_v55, %s4572_s26 }
 0x18f   : > { %v5712_v42 = vpop.permute.xlu1 %869 }
 0x190   : > { %v5717_v49 = vpop.permute.xlu0 %867 }
 0x191   : > { %1019 = vrot.lane.b32.xlu1 %v5710_v60, %s4572_s26 }
 0x192   : > { %1017 = vrot.lane.b32.xlu0 %v5715_v59, %s4572_s26 }
 0x193   : > { %v5723_v8 = vpop.permute.xlu1 %873 }
 0x194   : > { %v5725_v0 = vpop.permute.xlu0 %871 }
 0x195   : > { %1061 = vrot.lane.b32.xlu1 %v4678_v25, %s4573_s27  ;;  %v8794_v25 = vld [vmem:[#allocation4_spill] sm:$0xff] }
 0x196   : > { %1059 = vrot.lane.b32.xlu0 %v4683_v28, %s4573_s27 }
 0x197   : > { %v5731_v55 = vpop.permute.xlu1 %877 }
 0x198   : > { %v5733_v53 = vpop.permute.xlu0 %875 }
 0x199   : > { %1065 = vrot.lane.b32.xlu1 %v4700_v33, %s4573_s27  ;;  %v1524_v33 = vld [vmem:[%s8391_s1 + $0x20] sm:$0xf] }
 0x19a   : > { %1063 = vrot.lane.b32.xlu0 %v8682_v17, %s4573_s27  ;;  %v8795_v17 = vld [vmem:[#allocation5_spill] sm:$0xff]  ;;  %4239 = vmatprep.subr.msk.mxu0 %vm1622_vm2, %v1524_v33 }
 0x19b   : > { %v5739_v37 = vpop.permute.xlu1 %881  ;;  %4240 = vmatpush3.msk.msra.mxu0 %vm1622_vm2, %v1524_v33  ;;  %v8800_v33 = vld [vmem:[#allocation8_spill] sm:$0xff] }
 0x19c   : > { %v5741_v34 = vpop.permute.xlu0 %879 }
 0x19d   : > { %1069 = vrot.lane.b32.xlu1 %v8793_v19, %s4573_s27  ;;  %v1523_v19 = vld [vmem:[%s8391_s1 + $0x18] sm:$0xff] }
 0x19e   : > { %1067 = vrot.lane.b32.xlu0 %v8794_v25, %s4573_s27  ;;  %v8796_v25 = vld [vmem:[#allocation6_spill] sm:$0xff]  ;;  %4241 = vmatprep.subr.mxu0 %v1523_v19 }
 0x19f   : > { %v5747_v28 = vpop.permute.xlu1 %885  ;;  %4242 = vmatpush3.msra.mxu0 %v1523_v19 }
 0x1a0   : > { %v5749_v16 = vpop.permute.xlu0 %883 }
 0x1a1   : > { %1073 = vrot.lane.b32.xlu1 %v8795_v17, %s4573_s27  ;;  %v1522_v17 = vld [vmem:[%s8391_s1 + $0x10] sm:$0xff] }
 0x1a2   : > { %1071 = vrot.lane.b32.xlu0 %v8796_v25, %s4573_s27  ;;  %4243 = vmatprep.subr.mxu0 %v1522_v17  ;;  %v1521_v25 = vld [vmem:[%s8391_s1 + $0x8] sm:$0xff] }
 0x1a3   : > { %v5763_v3 = vpop.permute.xlu1 %889  ;;  %4244 = vmatpush3.msra.mxu0 %v1522_v17 }
 0x1a4   : > { %8797 = vst [vmem:[#allocation3_spill] sm:$0xff] %v5763_v3  ;;  %v5765_v62 = vpop.permute.xlu0 %887  ;;  %4245 = vmatprep.subr.mxu0 %v1521_v25  ;;  %v8869_v3 = vld [vmem:[#allocation105_spill] sm:$0xff] }
 0x1a5   : > { %8798 = vst [vmem:[#allocation4_spill] sm:$0xff] %v5765_v62  ;;  %1077 = vrot.lane.b32.xlu1 %v8799_v56, %s4573_s27  ;;  %4246 = vmatpush3.msra.mxu0 %v1521_v25  ;;  %v8803_v56 = vld [vmem:[#allocation9_spill] sm:$0xff]  ;;  %v8808_v25 = vld [vmem:[#allocation12_spill] sm:$0xff] }
 0x1a6   : > { %1075 = vrot.lane.b32.xlu0 %v8800_v33, %s4573_s27  ;;  %4247 = vmatprep.subr.mxu0 %v1520_v48 }
 0x1a7   : > { %v5777_v54 = vpop.permute.xlu1 %893  ;;  %4248 = vmatpush3.msra.mxu0 %v1520_v48 }
 0x1a8   : > { %8801 = vst [vmem:[#allocation5_spill] sm:$0xff] %v5777_v54  ;;  %v5779_v19 = vpop.permute.xlu0 %891  ;;  %v8866_v54 = vld [vmem:[#allocation42_spill] sm:$0xff] }
 0x1a9   : > { %8802 = vst [vmem:[#allocation6_spill] sm:$0xff] %v5779_v19  ;;  %1081 = vrot.lane.b32.xlu1 %v8803_v56, %s4573_s27  ;;  %v8811_v56 = vld [vmem:[#allocation13_spill] sm:$0xff] }
 0x1aa   : > { %1079 = vrot.lane.b32.xlu0 %v8804_v46, %s4573_s27  ;;  %v8812_v46 = vld [vmem:[#allocation14_spill] sm:$0xff] }
 0x1ab   : > { %v5788_v33 = vpop.permute.xlu1 %897 }
 0x1ac   : > { %8805 = vst [vmem:[#allocation7_spill] sm:$0xff] %v5788_v33  ;;  %v5790_v17 = vpop.permute.xlu0 %895 }
 0x1ad   : > { %8806 = vst [vmem:[#allocation8_spill] sm:$0xff] %v5790_v17  ;;  %1085 = vrot.lane.b32.xlu1 %v8807_v40, %s4573_s27 }
 0x1ae   : > { %1083 = vrot.lane.b32.xlu0 %v8808_v25, %s4573_s27 }
 0x1af   : > { %v5796_v38 = vpop.permute.xlu1 %901 }
 0x1b0   : > { %8809 = vst [vmem:[#allocation9_spill] sm:$0xff] %v5796_v38  ;;  %v5798_v19 = vpop.permute.xlu0 %899  ;;  %v8841_v38 = vld [vmem:[#allocation21_spill] sm:$0xff] }
 0x1b1   : > { %8810 = vst [vmem:[#allocation10_spill] sm:$0xff] %v5798_v19  ;;  %1089 = vrot.lane.b32.xlu1 %v8811_v56, %s4573_s27 }
 0x1b2   : > { %1087 = vrot.lane.b32.xlu0 %v8812_v46, %s4573_s27 }
 0x1b3   : > { %v5804_v48 = vpop.permute.xlu1 %905 }
 0x1b4   : > { %8813 = vst [vmem:[#allocation11_spill] sm:$0xff] %v5804_v48  ;;  %v5806_v33 = vpop.permute.xlu0 %903 }
 0x1b5   : > { %8814 = vst [vmem:[#allocation12_spill] sm:$0xff] %v5806_v33  ;;  %1162 = vrot.lane.b32.xlu1 %v4988_v43, %s4574_s12  ;;  %v8834_v33 = vld [vmem:[#allocation19_spill] sm:$0xff] }
 0x1b6   : > { %1160 = vrot.lane.b32.xlu0 %v4993_v14, %s4574_s12 }
 0x1b7   : > { %v5812_v40 = vpop.permute.xlu1 %909 }
 0x1b8   : > { %8815 = vst [vmem:[#allocation13_spill] sm:$0xff] %v5812_v40  ;;  %v5814_v25 = vpop.permute.xlu0 %907 }
 0x1b9   : > { %8816 = vst [vmem:[#allocation14_spill] sm:$0xff] %v5814_v25  ;;  %1166 = vrot.lane.b32.xlu1 %v5001_v5, %s4574_s12 }
 0x1ba   : > { %1164 = vrot.lane.b32.xlu0 %v8738_v2, %s4574_s12 }
 0x1bb   : > { %v5820_v56 = vpop.permute.xlu1 %913 }
 0x1bc   : > { %8817 = vst [vmem:[#allocation154_spill] sm:$0xff] %v5820_v56  ;;  %v5822_v46 = vpop.permute.xlu0 %911  ;;  %v8828_v56 = vld [vmem:[#allocation17_spill] sm:$0xff] }
 0x1bd   : > { %8818 = vst [vmem:[#allocation155_spill] sm:$0xff] %v5822_v46  ;;  %1170 = vrot.lane.b32.xlu1 %v5014_v51, %s4574_s12 }
 0x1be   : > { %1168 = vrot.lane.b32.xlu0 %v8741_v18, %s4574_s12 }
 0x1bf   : > { %v5828_v43 = vpop.permute.xlu1 %917 }
 0x1c0   : > { %8819 = vst [vmem:[#allocation156_spill] sm:$0xff] %v5828_v43  ;;  %v5830_v14 = vpop.permute.xlu0 %915 }
 0x1c1   : > { %8820 = vst [vmem:[#allocation157_spill] sm:$0xff] %v5830_v14  ;;  %1174 = vrot.lane.b32.xlu1 %v5027_v6, %s4574_s12  ;;  %v8825_v14 = vld [vmem:[#allocation15_spill] sm:$0xff] }
 0x1c2   : > { %1172 = vrot.lane.b32.xlu0 %v8744_v45, %s4574_s12 }
 0x1c3   : > { %v5836_v5 = vpop.permute.xlu1 %921 }
 0x1c4   : > { %8821 = vst [vmem:[#allocation158_spill] sm:$0xff] %v5836_v5  ;;  %v5838_v2 = vpop.permute.xlu0 %919 }
 0x1c5   : > { %8822 = vst [vmem:[#allocation159_spill] sm:$0xff] %v5838_v2  ;;  %1178 = vrot.lane.b32.xlu1 %v5040_v4, %s4574_s12  ;;  %v8823_v2 = vld [vmem:[#allocation33_spill] sm:$0xff] }
 0x1c6   : > { %1176 = vrot.lane.b32.xlu0 %v8747_v39, %s4574_s12 }
 0x1c7   : > { %v5844_v51 = vpop.permute.xlu1 %959 }
 0x1c8   : > { %v5846_v18 = vpop.permute.xlu0 %957 }
 0x1c9   : > { %1182 = vrot.lane.b32.xlu1 %v5053_v52, %s4574_s12  ;;  %v8824_v52 = vld [vmem:[#allocation34_spill] sm:$0xff] }
 0x1ca   : > { %1180 = vrot.lane.b32.xlu0 %v8750_v27, %s4574_s12 }
 0x1cb   : > { %v5852_v6 = vpop.permute.xlu1 %963 }
 0x1cc   : > { %v5854_v45 = vpop.permute.xlu0 %961 }
 0x1cd   : > { %1186 = vrot.lane.b32.xlu1 %v5066_v10, %s4574_s12  ;;  %v8826_v10 = vld [vmem:[#allocation16_spill] sm:$0xff] }
 0x1ce   : > { %1184 = vrot.lane.b32.xlu0 %v8753_v36, %s4574_s12 }
 0x1cf   : > { %v5860_v4 = vpop.permute.xlu1 %967 }
 0x1d0   : > { %v5862_v39 = vpop.permute.xlu0 %965 }
 0x1d1   : > { %1190 = vrot.lane.b32.xlu1 %v8823_v2, %s4574_s12  ;;  %v8827_v2 = vld [vmem:[#allocation35_spill] sm:$0xff] }
 0x1d2   : > { %1188 = vrot.lane.b32.xlu0 %v8824_v52, %s4574_s12 }
 0x1d3   : > { %v5868_v27 = vpop.permute.xlu1 %971 }
 0x1d4   : > { %v5870_v5 = vpop.permute.xlu0 %969 }
 0x1d5   : > { %1093 = vrot.lane.b32.xlu1 %v8825_v14, %s4573_s27  ;;  %v8829_v14 = vld [vmem:[#allocation18_spill] sm:$0xff] }
 0x1d6   : > { %1091 = vrot.lane.b32.xlu0 %v8826_v10, %s4573_s27 }
 0x1d7   : > { %v5876_v36 = vpop.permute.xlu1 %975 }
 0x1d8   : > { %v5878_v43 = vpop.permute.xlu0 %973 }
 0x1d9   : > { %1194 = vrot.lane.b32.xlu1 %v5092_v41, %s4574_s12  ;;  %v8831_v41 = vld [vmem:[#allocation37_spill] sm:$0xff] }
 0x1da   : > { %1192 = vrot.lane.b32.xlu0 %v8827_v2, %s4574_s12 }
 0x1db   : > { %v5884_v52 = vpop.permute.xlu1 %979 }
 0x1dc   : > { %v5886_v46 = vpop.permute.xlu0 %977 }
 0x1dd   : > { %1097 = vrot.lane.b32.xlu1 %v8828_v56, %s4573_s27  ;;  %v8835_v56 = vld [vmem:[#allocation20_spill] sm:$0xff] }
 0x1de   : > { %1095 = vrot.lane.b32.xlu0 %v8829_v14, %s4573_s27 }
 0x1df   : > { %v5892_v10 = vpop.permute.xlu1 %983 }
 0x1e0   : > { %v5894_v25 = vpop.permute.xlu0 %981 }
 0x1e1   : > { %8830 = vst [vmem:[#allocation33_spill] sm:$0xff] %v5894_v25  ;;  %1198 = vrot.lane.b32.xlu1 %v8762_v21, %s4574_s12  ;;  %v8838_v21 = vld [vmem:[#allocation38_spill] sm:$0xff] }
 0x1e2   : > { %1196 = vrot.lane.b32.xlu0 %v8831_v41, %s4574_s12 }
 0x1e3   : > { %v5900_v2 = vpop.permute.xlu1 %987 }
 0x1e4   : > { %8832 = vst [vmem:[#allocation34_spill] sm:$0xff] %v5900_v2  ;;  %v5902_v40 = vpop.permute.xlu0 %985  ;;  %v8868_v2 = vld [vmem:[#allocation75_spill] sm:$0xff] }
 0x1e5   : > { %8833 = vst [vmem:[#allocation15_spill] sm:$0xff] %v5902_v40  ;;  %1101 = vrot.lane.b32.xlu1 %v8834_v33, %s4573_s27  ;;  %v8842_v33 = vld [vmem:[#allocation22_spill] sm:$0xff] }
 0x1e6   : > { %1099 = vrot.lane.b32.xlu0 %v8835_v56, %s4573_s27 }
 0x1e7   : > { %v5908_v14 = vpop.permute.xlu1 %991 }
 0x1e8   : > { %8836 = vst [vmem:[#allocation16_spill] sm:$0xff] %v5908_v14  ;;  %v5910_v48 = vpop.permute.xlu0 %989  ;;  %v4528_v14 = vld [vmem:[%s4616_s20] sm:$0xff] }
 0x1e9   : > { %8837 = vst [vmem:[#allocation35_spill] sm:$0xff] %v5910_v48  ;;  %1202 = vrot.lane.b32.xlu1 %v5118_v23, %s4574_s12  ;;  %v8845_v48 = vld [vmem:[#allocation39_spill] sm:$0xff]  ;;  %v1257_v32 = vsel %vm1256_vm3, %v4528_v14, %v8866_v54  ;;  %v8873_v14 = vld [vmem:[#allocation41_spill] sm:$0xff] }
 0x1ea   : > { %1200 = vrot.lane.b32.xlu0 %v8838_v21, %s4574_s12  ;;  %v1290_v62 = vsel %vm1289_vm4, %v1257_v32, %v8868_v2  ;;  %v4530_v32 = vld [vmem:[%s4616_s20 + $0x20] sm:$0xff]  ;;  %v8874_v2 = vld [vmem:[#allocation43_spill] sm:$0xff] }
 0x1eb   : > { %v5916_v41 = vpop.permute.xlu1 %995 }
 0x1ec   : > { %8839 = vst [vmem:[#allocation17_spill] sm:$0xff] %v5916_v41  ;;  %v5918_v19 = vpop.permute.xlu0 %993 }
 0x1ed   : > { %8840 = vst [vmem:[#allocation18_spill] sm:$0xff] %v5918_v19  ;;  %1105 = vrot.lane.b32.xlu1 %v8841_v38, %s4573_s27  ;;  %v8848_v19 = vld [vmem:[#allocation23_spill] sm:$0xff]  ;;  %v8849_v38 = vld [vmem:[#allocation24_spill] sm:$0xff] }
 0x1ee   : > { %1103 = vrot.lane.b32.xlu0 %v8842_v33, %s4573_s27 }
 0x1ef   : > { %v5924_v56 = vpop.permute.xlu1 %999 }
 0x1f0   : > { %8843 = vst [vmem:[#allocation37_spill] sm:$0xff] %v5924_v56  ;;  %v5926_v17 = vpop.permute.xlu0 %997 }
 0x1f1   : > { %8844 = vst [vmem:[#allocation19_spill] sm:$0xff] %v5926_v17  ;;  %1206 = vrot.lane.b32.xlu1 %v8845_v48, %s4574_s12 }
 0x1f2   : > { %1204 = vrot.lane.b32.xlu0 %v8769_v61, %s4574_s12  ;;  %v8852_v61 = vld [vmem:[#allocation44_spill] sm:$0xff] }
 0x1f3   : > { %v5932_v23 = vpop.permute.xlu1 %1003 }
 0x1f4   : > { %8846 = vst [vmem:[#allocation20_spill] sm:$0xff] %v5932_v23  ;;  %v5934_v21 = vpop.permute.xlu0 %1001  ;;  %v8855_v23 = vld [vmem:[#allocation25_spill] sm:$0xff] }
 0x1f5   : > { %8847 = vst [vmem:[#allocation38_spill] sm:$0xff] %v5934_v21  ;;  %1109 = vrot.lane.b32.xlu1 %v8848_v19, %s4573_s27  ;;  %v8856_v19 = vld [vmem:[#allocation26_spill] sm:$0xff] }
 0x1f6   : > { %1107 = vrot.lane.b32.xlu0 %v8849_v38, %s4573_s27 }
 0x1f7   : > { %v5940_v33 = vpop.permute.xlu1 %1007 }
 0x1f8   : > { %8850 = vst [vmem:[#allocation21_spill] sm:$0xff] %v5940_v33  ;;  %v5942_v17 = vpop.permute.xlu0 %1005 }
 0x1f9   : > { %8851 = vst [vmem:[#allocation22_spill] sm:$0xff] %v5942_v17  ;;  %1210 = vrot.lane.b32.xlu1 %v5148_v35, %s4574_s12 }
 0x1fa   : > { %1208 = vrot.lane.b32.xlu0 %v8852_v61, %s4574_s12  ;;  %v251_v61 = vld [vmem:[%s4616_s20 + $0x1a8] sm:$0x3] }
 0x1fb   : > { %v5948_v48 = vpop.permute.xlu1 %1011 }
 0x1fc   : > { %8853 = vst [vmem:[#allocation39_spill] sm:$0xff] %v5948_v48  ;;  %v5950_v21 = vpop.permute.xlu0 %1009  ;;  %v1054_v48 = vrot.slane %v5715_v59, 1 }
 0x1fd   : > { %8854 = vst [vmem:[#allocation23_spill] sm:$0xff] %v5950_v21  ;;  %1113 = vrot.lane.b32.xlu1 %v8855_v23, %s4573_s27  ;;  %v8861_v23 = vld [vmem:[#allocation109_spill] sm:$0xff] }
 0x1fe   : > { %1111 = vrot.lane.b32.xlu0 %v8856_v19, %s4573_s27  ;;  %v1055_v19 = vrot.slane %v5710_v60, 1 }
 0x1ff   : > { %v5956_v38 = vpop.permute.xlu1 %1015 }
 0x200   : > { %8857 = vst [vmem:[#allocation24_spill] sm:$0xff] %v5956_v38  ;;  %v5958_v33 = vpop.permute.xlu0 %1013  ;;  %v8862_v38 = vld [vmem:[#allocation111_spill] sm:$0xff]  ;;  %v1056_v56 = vsel %vm300_vm0, %v1054_v48, %v1055_v19 }
 0x201   : > { %8858 = vst [vmem:[#allocation44_spill] sm:$0xff] %v5958_v33  ;;  %1214 = vrot.lane.b32.xlu1 %v5165_v58, %s4574_s12  ;;  %v1057_v33 = vrot.slane %v251_v61, 1 }
 0x202   : > { %1212 = vrot.lane.b32.xlu0 %v5170_v44, %s4574_s12  ;;  %v1156_v44 = vrot.slane %v5710_v60, 2 }
 0x203   : > { %v5964_v35 = vpop.permute.xlu1 %1019 }
 0x204   : > { %8859 = vst [vmem:[#allocation25_spill] sm:$0xff] %v5964_v35  ;;  %v5967_v21 = vpop.permute.xlu0 %1017  ;;  %v1155_v35 = vrot.slane %v5715_v59, 2 }
 0x205   : > { %8860 = vst [vmem:[#allocation26_spill] sm:$0xff] %v5967_v21  ;;  %1117 = vrot.lane.b32.xlu1 %v8861_v23, %s4573_s27  ;;  %v1058_v23 = vsel %vm300_vm0, %v1055_v19, %v1057_v33  ;;  %v1158_v21 = vrot.slane %v251_v61, 2 }
 0x206   : > { %1115 = vrot.lane.b32.xlu0 %v8862_v38, %s4573_s27 }
 0x207   : > { %v1062_v58 = vpop.permute.xlu1 %1061 }
 0x208   : > { %v5975_v17 = vpop.permute.xlu0 %1059 }
 0x209   : > { %1218 = vrot.lane.b32.xlu1 %v5576_v47, %s4574_s12  ;;  %v1159_v47 = vsel %vm477_vm1, %v1156_v44, %v1158_v21 }
 0x20a   : > { %1216 = vrot.lane.b32.xlu0 %v5581_v63, %s4574_s12  ;;  %v1157_v63 = vsel %vm477_vm1, %v1155_v35, %v1156_v44 }
 0x20b   : > { %v5984_v38 = vpop.permute.xlu1 %1065 }
 0x20c   : > { %v5987_v41 = vpop.permute.xlu0 %1063 }
 0x20d   : > { %1121 = vrot.lane.b32.xlu1 %v1058_v23, %s4573_s27 }
 0x20e   : > { %1119 = vrot.lane.b32.xlu0 %v1056_v56, %s4573_s27  ;;  %v4096_v56 = vld [vmem:[%s8392_s2] ss:$0 sm:$0xff] }
 0x20f   : > { %v5992_v60 = vpop.permute.xlu1 %1069 }
 0x210   : > { %v5995_v33 = vpop.permute.xlu0 %1067 }
 0x211   : > { %1222 = vrot.lane.b32.xlu1 %v1159_v47, %s4574_s12  ;;  %v4527_v47 = vld [vmem:[%s4616_s20 + $0x8] sm:$0xff] }
 0x212   : > { %1220 = vrot.lane.b32.xlu0 %v1157_v63, %s4574_s12  ;;  %v8865_v63 = vld [vmem:[#allocation45_spill] sm:$0xff] }
 0x213   : > { %v5999_v59 = vpop.permute.xlu1 %1073 }
 0x214   : > { %v6004_v48 = vpop.permute.xlu0 %1071 }
 0x216   : > { %1857 = vrot.lane.b32.xlu0 %v4096_v56, %s4567_s21  ;;  %v1258_v56 = vsel %vm1256_vm3, %v4527_v47, %v8865_v63  ;;  %v4529_v47 = vld [vmem:[%s4616_s20 + $0x18] sm:$0xff]  ;;  %v8871_v63 = vld [vmem:[#allocation40_spill] sm:$0xff] }
 0x217   : > { %v6007_v21 = vpop.permute.xlu1 %1077  ;;  %v1291_v40 = vsel %vm1289_vm4, %v1258_v56, %v8867_v30  ;;  %v1259_v22 = vsel %vm1256_vm3, %v4529_v47, %v8871_v63  ;;  %v8876_v47 = vld [vmem:[#allocation76_spill] sm:$0xff] }
 0x218   : > { %v6009_v35 = vpop.permute.xlu0 %1075  ;;  %v1324_v24 = vsel %vm1322_vm5, %v1291_v40, %v8869_v3  ;;  %v1260_v3 = vsel %vm1256_vm3, %v4530_v32, %v8874_v2  ;;  %v8875_v40 = vld [vmem:[#allocation132_spill] sm:$0xff]  ;;  %v8878_v32 = vld [vmem:[#allocation107_spill] sm:$0xff] }
 0x219   : > { %v1357_v30 = vsel %vm1355_vm6, %v1324_v24, %v8873_v14 }
 0x21a   : > { %v1390_v25 = vsel %vm1388_vm7, %v1357_v30, %v5693_v50 }
 0x21b   : > { %v6011_v61 = vpop.permute.xlu1 %1081  ;;  %v1423_v14 = vsel %vm1421_vm8, %v1390_v25, %v5844_v51 }
 0x21c   : > { %v6013_v19 = vpop.permute.xlu0 %1079  ;;  %v1456_v30 = vsel %vm1454_vm9, %v1423_v14, %v1062_v58  ;;  %v4532_v14 = vld [vmem:[%s4616_s20 + $0x30] sm:$0xff] }
 0x21f   : > { %v6015_v44 = vpop.permute.xlu1 %1085 }
 0x220   : > { %8863 = vst [vmem:[#allocation109_spill] sm:$0xff] %v6015_v44  ;;  %v6017_v23 = vpop.permute.xlu0 %1083  ;;  %v8872_v44 = vld [vmem:[#allocation106_spill] sm:$0xff] }
 0x221   : > { %8864 = vst [vmem:[#allocation111_spill] sm:$0xff] %v6017_v23  ;;  %v1323_v54 = vsel %vm1322_vm5, %v1290_v62, %v8872_v44  ;;  %v1293_v62 = vsel %vm1289_vm4, %v1260_v3, %v8876_v47  ;;  %v8877_v44 = vld [vmem:[#allocation77_spill] sm:$0xff]  ;;  %v8879_v3 = vld [vmem:[#allocation108_spill] sm:$0xff] }
 0x222   : > { %v1292_v24 = vsel %vm1289_vm4, %v1259_v22, %v8877_v44  ;;  %v4531_v47 = vld [vmem:[%s4616_s20 + $0x38] sm:$0xff]  ;;  %v8882_v44 = vld [vmem:[#allocation134_spill] sm:$0xff] }
 0x223   : > { %v6031_v23 = vpop.permute.xlu1 %1089  ;;  %v1325_v22 = vsel %vm1322_vm5, %v1292_v24, %v8879_v3  ;;  %v8885_v3 = vld [vmem:[#allocation79_spill] sm:$0xff] }
 0x224   : > { %8870 = vst [vmem:[#allocation45_spill] sm:$0xff] %v6031_v23  ;;  %v6040_v56 = vpop.permute.xlu0 %1087  ;;  %v1356_v23 = vsel %vm1355_vm6, %v1323_v54, %v8875_v40  ;;  %v1326_v54 = vsel %vm1322_vm5, %v1293_v62, %v8878_v32  ;;  %v8880_v40 = vld [vmem:[#allocation133_spill] sm:$0xff]  ;;  %v8881_v62 = vld [vmem:[#allocation46_spill] sm:$0xff]  ;;  %v1358_v58 = vsel %vm1355_vm6, %v1325_v22, %v8882_v44  ;;  %v8883_v32 = vld [vmem:[#allocation47_spill] sm:$0xff] }
 0x225   : > { %v1389_v63 = vsel %vm1388_vm7, %v1356_v23, %v5695_v26  ;;  %v1359_v26 = vsel %vm1355_vm6, %v1326_v54, %v8880_v40  ;;  %v1261_v54 = vsel %vm1256_vm3, %v4532_v14, %v8883_v32  ;;  %v8886_v22 = vld [vmem:[#allocation110_spill] sm:$0xff]  ;;  %v4534_v14 = vld [vmem:[%s4616_s20 + $0x48] sm:$0xff] }
 0x226   : > { %v1422_v50 = vsel %vm1421_vm8, %v1389_v63, %v5846_v18  ;;  %v1262_v18 = vsel %vm1256_vm3, %v4531_v47, %v8881_v62  ;;  %v1392_v63 = vsel %vm1388_vm7, %v1359_v26, %v5701_v20  ;;  %v1294_v20 = vsel %vm1289_vm4, %v1261_v54, %v8885_v3 }
 0x227   : > { %v1163_v2 = vpop.permute.xlu1 %1162  ;;  %v1455_v25 = vsel %vm1454_vm9, %v1422_v50, %v5975_v17  ;;  %v8884_v17 = vld [vmem:[#allocation78_spill] sm:$0xff] }
 0x228   : > { %v1489_v51 = vsel %vm1487_vm10, %v1456_v30, %v1163_v2  ;;  %v1161_v23 = vpop.permute.xlu0 %1160  ;;  %v1295_v50 = vsel %vm1289_vm4, %v1262_v18, %v8884_v17  ;;  %v1391_v30 = vsel %vm1388_vm7, %v1358_v58, %v5703_v13  ;;  %v1425_v2 = vsel %vm1421_vm8, %v1392_v63, %v5852_v6  ;;  %v4533_v58 = vld [vmem:[%s4616_s20 + $0x50] sm:$0xff] }
 0x229   : > { %v1488_v24 = vsel %vm1487_vm10, %v1455_v25, %v1161_v23  ;;  %v1328_v40 = vsel %vm1322_vm5, %v1295_v50, %v8886_v22  ;;  %v1424_v26 = vsel %vm1421_vm8, %v1391_v30, %v5854_v45  ;;  %v1458_v25 = vsel %vm1454_vm9, %v1425_v2, %v5984_v38  ;;  %v8887_v23 = vld [vmem:[#allocation112_spill] sm:$0xff]  ;;  %v8892_v30 = vld [vmem:[#allocation113_spill] sm:$0xff]  ;;  %v8893_v22 = vld [vmem:[#allocation114_spill] sm:$0xff] }
 0x22a   : > { %4249 = vmatprep.mubr.msk.f32.mxu0 %vm1525_vm11, %v1488_v24  ;;  %v1327_v6 = vsel %vm1322_vm5, %v1294_v20, %v8887_v23  ;;  %v1361_v47 = vsel %vm1355_vm6, %v1328_v40, %v5578_v7  ;;  %v1457_v62 = vsel %vm1454_vm9, %v1424_v26, %v5987_v41  ;;  %v8888_v45 = vld [vmem:[#allocation48_spill] sm:$0xff]  ;;  %v8889_v7 = vld [vmem:[#allocation49_spill] sm:$0xff]  ;;  %v4535_v23 = vld [vmem:[%s4616_s20 + $0x68] sm:$0xff] }
 0x22b   : > { %4250 = vmatmul.mubr.msk.f32.vlgmr.msra.gmra.mxu0 %vm1525_vm11, %v1489_v51  ;;  %v1167_v13 = vpop.permute.xlu1 %1166  ;;  %v1264_v63 = vsel %vm1256_vm3, %v4533_v58, %v8888_v45  ;;  %v1360_v38 = vsel %vm1355_vm6, %v1327_v6, %v5583_v29  ;;  %v1394_v51 = vsel %vm1388_vm7, %v1361_v47, %v5712_v42  ;;  %v1263_v32 = vsel %vm1256_vm3, %v4534_v14, %v8889_v7  ;;  %v8890_v41 = vld [vmem:[#allocation80_spill] sm:$0xff]  ;;  %v8891_v29 = vld [vmem:[#allocation81_spill] sm:$0xff] }
 0x22c   : > { %v1491_v18 = vsel %vm1487_vm10, %v1458_v25, %v1167_v13  ;;  %v1165_v44 = vpop.permute.xlu0 %1164  ;;  %v1297_v54 = vsel %vm1289_vm4, %v1264_v63, %v8890_v41  ;;  %v1393_v17 = vsel %vm1388_vm7, %v1360_v38, %v5717_v49  ;;  %v1427_v50 = vsel %vm1421_vm8, %v1394_v51, %v5860_v4  ;;  %v8898_v51 = vld [vmem:[#allocation83_spill] sm:$0xff]  ;;  %v8900_v41 = vld [vmem:[#allocation116_spill] sm:$0xff] }
 0x22d   : > { %v1490_v24 = vsel %vm1487_vm10, %v1457_v62, %v1165_v44  ;;  %v1296_v42 = vsel %vm1289_vm4, %v1263_v32, %v8891_v29  ;;  %v1330_v2 = vsel %vm1322_vm5, %v1297_v54, %v8892_v30  ;;  %v1426_v3 = vsel %vm1421_vm8, %v1393_v17, %v5862_v39  ;;  %v8894_v39 = vld [vmem:[#allocation50_spill] sm:$0xff] }
 0x22e   : > { %4252 = vmatprep.mubr.msk.f32.mxu0 %vm1525_vm11, %v1490_v24  ;;  %v1460_v20 = vsel %vm1454_vm9, %v1427_v50, %v5992_v60  ;;  %v1329_v4 = vsel %vm1322_vm5, %v1296_v42, %v8893_v22  ;;  %v1363_v40 = vsel %vm1355_vm6, %v1330_v2, %v5589_v9  ;;  %v1459_v26 = vsel %vm1454_vm9, %v1426_v3, %v5995_v33  ;;  %v8895_v60 = vld [vmem:[#allocation135_spill] sm:$0xff]  ;;  %v4536_v44 = vld [vmem:[%s4616_s20 + $0x60] sm:$0xff] }
 0x22f   : > { %4253 = vmatmul.mubr.msk.f32.gmra.mxu0 %vm1525_vm11, %v1491_v18  ;;  %v1171_v49 = vpop.permute.xlu1 %1170  ;;  %v1266_v6 = vsel %vm1256_vm3, %v4535_v23, %v8894_v39  ;;  %v1362_v47 = vsel %vm1355_vm6, %v1329_v4, %v8895_v60  ;;  %v1396_v62 = vsel %vm1388_vm7, %v1363_v40, %v5723_v8  ;;  %v8896_v9 = vld [vmem:[#allocation51_spill] sm:$0xff]  ;;  %v8897_v33 = vld [vmem:[#allocation82_spill] sm:$0xff] }
 0x230   : > { %v1493_v25 = vsel %vm1487_vm10, %v1460_v20, %v1171_v49  ;;  %v1169_v13 = vpop.permute.xlu0 %1168  ;;  %v1265_v58 = vsel %vm1256_vm3, %v4536_v44, %v8896_v9  ;;  %v1299_v45 = vsel %vm1289_vm4, %v1266_v6, %v8897_v33  ;;  %v1395_v63 = vsel %vm1388_vm7, %v1362_v47, %v5725_v0  ;;  %v8899_v24 = vld [vmem:[#allocation115_spill] sm:$0xff]  ;;  %v4537_v42 = vld [vmem:[%s4616_s20 + $0x80] sm:$0xff]  ;;  %v4538_v20 = vld [vmem:[%s4616_s20 + $0x78] sm:$0xff] }
 0x231   : > { %v1492_v18 = vsel %vm1487_vm10, %v1459_v26, %v1169_v13  ;;  %v1429_v38 = vsel %vm1421_vm8, %v1396_v62, %v5868_v27  ;;  %v1298_v8 = vsel %vm1289_vm4, %v1265_v58, %v8898_v51  ;;  %v1332_v14 = vsel %vm1322_vm5, %v1299_v45, %v8899_v24  ;;  %v8905_v26 = vld [vmem:[#allocation117_spill] sm:$0xff]  ;;  %v8906_v39 = vld [vmem:[#allocation118_spill] sm:$0xff]  ;;  %v4540_v33 = vld [vmem:[%s4616_s20 + $0x90] sm:$0xff] }
 0x232   : > { %4255 = vmatprep.mubr.msk.f32.mxu0 %vm1525_vm11, %v1492_v18  ;;  %v1428_v7 = vsel %vm1421_vm8, %v1395_v63, %v5870_v5  ;;  %v1462_v32 = vsel %vm1454_vm9, %v1429_v38, %v5999_v59  ;;  %v1331_v27 = vsel %vm1322_vm5, %v1298_v8, %v8900_v41  ;;  %v1365_v54 = vsel %vm1355_vm6, %v1332_v14, %v5597_v57  ;;  %v8901_v5 = vld [vmem:[#allocation52_spill] sm:$0xff]  ;;  %v8902_v57 = vld [vmem:[#allocation53_spill] sm:$0xff]  ;;  %v8911_v8 = vld [vmem:[#allocation27_spill] sm:$0xff] }
 0x233   : > { %4256 = vmatmul.mubr.msk.f32.gmra.mxu0 %vm1525_vm11, %v1493_v25  ;;  %v1175_v0 = vpop.permute.xlu1 %1174  ;;  %v1461_v17 = vsel %vm1454_vm9, %v1428_v7, %v6004_v48  ;;  %v1268_v30 = vsel %vm1256_vm3, %v4537_v42, %v8901_v5  ;;  %v1364_v59 = vsel %vm1355_vm6, %v1331_v27, %v5599_v1  ;;  %v1398_v2 = vsel %vm1388_vm7, %v1365_v54, %v5731_v55  ;;  %v8903_v48 = vld [vmem:[#allocation84_spill] sm:$0xff]  ;;  %v8904_v1 = vld [vmem:[#allocation85_spill] sm:$0xff]  ;;  %v4542_v5 = vld [vmem:[%s4616_s20 + $0xa8] sm:$0xff] }
 0x234   : > { %v1495_v50 = vsel %vm1487_vm10, %v1462_v32, %v1175_v0  ;;  %v1173_v29 = vpop.permute.xlu0 %1172  ;;  %v1267_v49 = vsel %vm1256_vm3, %v4538_v20, %v8902_v57  ;;  %v1301_v22 = vsel %vm1289_vm4, %v1268_v30, %v8903_v48  ;;  %v1397_v4 = vsel %vm1388_vm7, %v1364_v59, %v5733_v53  ;;  %v4539_v18 = vld [vmem:[%s4616_s20 + $0x98] sm:$0xff]  ;;  %v8912_v32 = vld [vmem:[#allocation119_spill] sm:$0xff]  ;;  %v8917_v20 = vld [vmem:[#allocation28_spill] sm:$0xff] }
 0x235   : > { %v1494_v3 = vsel %vm1487_vm10, %v1461_v17, %v1173_v29  ;;  %v1431_v40 = vsel %vm1421_vm8, %v1398_v2, %v5876_v36  ;;  %v1300_v55 = vsel %vm1289_vm4, %v1267_v49, %v8904_v1  ;;  %v1334_v25 = vsel %vm1322_vm5, %v1301_v22, %v8905_v26  ;;  %v4541_v17 = vld [vmem:[%s4616_s20 + $0xb0] sm:$0xff]  ;;  %v8918_v49 = vld [vmem:[#allocation33_spill] sm:$0xff]  ;;  %v8922_v26 = vld [vmem:[#allocation111_spill] sm:$0xff] }
 0x236   : > { %4258 = vmatprep.mubr.msk.f32.mxu0 %vm1525_vm11, %v1494_v3  ;;  %v1430_v13 = vsel %vm1421_vm8, %v1397_v4, %v5878_v43  ;;  %v1464_v23 = vsel %vm1454_vm9, %v1431_v40, %v6007_v21  ;;  %v1333_v36 = vsel %vm1322_vm5, %v1300_v55, %v8906_v39  ;;  %v1367_v6 = vsel %vm1355_vm6, %v1334_v25, %v5605_v12  ;;  %v8907_v43 = vld [vmem:[#allocation54_spill] sm:$0xff]  ;;  %v8908_v12 = vld [vmem:[#allocation55_spill] sm:$0xff]  ;;  %v8919_v22 = vld [vmem:[#allocation109_spill] sm:$0xff] }
 0x237   : > { %4259 = vmatmul.mubr.msk.f32.gmra.mxu0 %vm1525_vm11, %v1495_v50  ;;  %v1179_v53 = vpop.permute.xlu1 %1178  ;;  %v1463_v60 = vsel %vm1454_vm9, %v1430_v13, %v6009_v35  ;;  %v1270_v44 = vsel %vm1256_vm3, %v4539_v18, %v8907_v43  ;;  %v1366_v21 = vsel %vm1355_vm6, %v1333_v36, %v5607_v31  ;;  %v1400_v9 = vsel %vm1388_vm7, %v1367_v6, %v5739_v37  ;;  %v8909_v35 = vld [vmem:[#allocation2_spill] sm:$0xff]  ;;  %v8920_v40 = vld [vmem:[#allocation120_spill] sm:$0xff]  ;;  %v8924_v36 = vld [vmem:[#allocation3_spill] sm:$0xff] }
 0x238   : > { %v1497_v47 = vsel %vm1487_vm10, %v1464_v23, %v1179_v53  ;;  %v1177_v62 = vpop.permute.xlu0 %1176  ;;  %v1269_v45 = vsel %vm1256_vm3, %v4540_v33, %v8908_v12  ;;  %v1303_v63 = vsel %vm1289_vm4, %v1270_v44, %v8909_v35  ;;  %v1399_v38 = vsel %vm1388_vm7, %v1366_v21, %v5741_v34  ;;  %v8910_v31 = vld [vmem:[#allocation86_spill] sm:$0xff]  ;;  %v8921_v1 = vld [vmem:[#allocation136_spill] sm:$0xff]  ;;  %v8923_v53 = vld [vmem:[#allocation137_spill] sm:$0xff] }
 0x239   : > { %v1496_v58 = vsel %vm1487_vm10, %v1463_v60, %v1177_v62  ;;  %v1433_v51 = vsel %vm1421_vm8, %v1400_v9, %v5884_v52  ;;  %v1302_v37 = vsel %vm1289_vm4, %v1269_v45, %v8910_v31  ;;  %v1336_v24 = vsel %vm1322_vm5, %v1303_v63, %v8911_v8  ;;  %v8926_v18 = vld [vmem:[#allocation34_spill] sm:$0xff]  ;;  %v8927_v44 = vld [vmem:[#allocation15_spill] sm:$0xff]  ;;  %v8928_v9 = vld [vmem:[#allocation45_spill] sm:$0xff] }
 0x23a   : > { %4261 = vmatprep.mubr.msk.f32.mxu0 %vm1525_vm11, %v1496_v58  ;;  %v1432_v14 = vsel %vm1421_vm8, %v1399_v38, %v5886_v46  ;;  %v1466_v7 = vsel %vm1454_vm9, %v1433_v51, %v6011_v61  ;;  %v1335_v52 = vsel %vm1322_vm5, %v1302_v37, %v8912_v32  ;;  %v1369_v0 = vsel %vm1355_vm6, %v1336_v24, %v5613_v11  ;;  %v8913_v46 = vld [vmem:[#allocation56_spill] sm:$0xff]  ;;  %v8914_v11 = vld [vmem:[#allocation57_spill] sm:$0xff]  ;;  %v4543_v63 = vld [vmem:[%s4616_s20 + $0xc8] sm:$0xff] }
 0x23b   : > { %4262 = vmatmul.mubr.msk.f32.gmra.mxu0 %vm1525_vm11, %v1497_v47  ;;  %v1183_v34 = vpop.permute.xlu1 %1182  ;;  %v1465_v41 = vsel %vm1454_vm9, %v1432_v14, %v6013_v19  ;;  %v1272_v50 = vsel %vm1256_vm3, %v4541_v17, %v8913_v46  ;;  %v1368_v61 = vsel %vm1355_vm6, %v1335_v52, %v5615_v15  ;;  %v1402_v29 = vsel %vm1388_vm7, %v1369_v0, %v5747_v28  ;;  %v8915_v19 = vld [vmem:[#allocation87_spill] sm:$0xff]  ;;  %v8916_v15 = vld [vmem:[#allocation88_spill] sm:$0xff]  ;;  %v8929_v38 = vld [vmem:[#allocation58_spill] sm:$0xff] }
 0x23c   : > { %v1499_v27 = vsel %vm1487_vm10, %v1466_v7, %v1183_v34  ;;  %v1181_v54 = vpop.permute.xlu0 %1180  ;;  %v1271_v30 = vsel %vm1256_vm3, %v4542_v5, %v8914_v11  ;;  %v1305_v59 = vsel %vm1289_vm4, %v1272_v50, %v8915_v19  ;;  %v1401_v2 = vsel %vm1388_vm7, %v1368_v61, %v5749_v16  ;;  %v8925_v47 = vld [vmem:[#allocation4_spill] sm:$0xff]  ;;  %v4544_v37 = vld [vmem:[%s4616_s20 + $0xc0] sm:$0xff]  ;;  %v8930_v8 = vld [vmem:[#allocation59_spill] sm:$0xff] }
 0x23d   : > { %v1498_v42 = vsel %vm1487_vm10, %v1465_v41, %v1181_v54  ;;  %v1435_v3 = vsel %vm1421_vm8, %v1402_v29, %v5892_v10  ;;  %v1304_v28 = vsel %vm1289_vm4, %v1271_v30, %v8916_v15  ;;  %v1338_v57 = vsel %vm1322_vm5, %v1305_v59, %v8917_v20  ;;  %v8931_v14 = vld [vmem:[#allocation89_spill] sm:$0xff]  ;;  %v8932_v34 = vld [vmem:[#allocation90_spill] sm:$0xff]  ;;  %v8936_v50 = vld [vmem:[#allocation139_spill] sm:$0xff] }
 0x23e   : > { %4264 = vmatprep.mubr.msk.f32.mxu0 %vm1525_vm11, %v1498_v42  ;;  %v1434_v48 = vsel %vm1421_vm8, %v1401_v2, %v8918_v49  ;;  %v1468_v4 = vsel %vm1454_vm9, %v1435_v3, %v8919_v22  ;;  %v1337_v10 = vsel %vm1322_vm5, %v1304_v28, %v8920_v40  ;;  %v1371_v55 = vsel %vm1355_vm6, %v1338_v57, %v8921_v1  ;;  %v8933_v32 = vld [vmem:[#allocation29_spill] sm:$0xff]  ;;  %v8935_v54 = vld [vmem:[#allocation138_spill] sm:$0xff]  ;;  %v8939_v30 = vld [vmem:[#allocation16_spill] sm:$0xff] }
 0x23f   : > { %4265 = vmatmul.mubr.msk.f32.gmra.mxu0 %vm1525_vm11, %v1499_v27  ;;  %v1187_v16 = vpop.permute.xlu1 %1186  ;;  %v1467_v25 = vsel %vm1454_vm9, %v1434_v48, %v8922_v26  ;;  %v1370_v39 = vsel %vm1355_vm6, %v1337_v10, %v8923_v53  ;;  %v1404_v6 = vsel %vm1388_vm7, %v1371_v55, %v8924_v36  ;;  %v1274_v51 = vsel %vm1256_vm3, %v4543_v63, %v8929_v38  ;;  %v8934_v41 = vld [vmem:[#allocation121_spill] sm:$0xff]  ;;  %v8938_v5 = vld [vmem:[#allocation6_spill] sm:$0xff]  ;;  %v8940_v59 = vld [vmem:[#allocation35_spill] sm:$0xff] }
 0x240   : > { %v1501_v13 = vsel %vm1487_vm10, %v1468_v4, %v1187_v16  ;;  %v1185_v23 = vpop.permute.xlu0 %1184  ;;  %v1403_v62 = vsel %vm1388_vm7, %v1370_v39, %v8925_v47  ;;  %v1437_v43 = vsel %vm1421_vm8, %v1404_v6, %v8926_v18  ;;  %v1273_v24 = vsel %vm1256_vm3, %v4544_v37, %v8930_v8  ;;  %v8937_v29 = vld [vmem:[#allocation5_spill] sm:$0xff]  ;;  %v4545_v49 = vld [vmem:[%s4616_s20 + $0xe0] sm:$0xff]  ;;  %v8941_v48 = vld [vmem:[#allocation60_spill] sm:$0xff] }
 0x241   : > { %v1500_v60 = vsel %vm1487_vm10, %v1467_v25, %v1185_v23  ;;  %v1436_v21 = vsel %vm1421_vm8, %v1403_v62, %v8927_v44  ;;  %v1470_v58 = vsel %vm1454_vm9, %v1437_v43, %v8928_v9  ;;  %v1307_v7 = vsel %vm1289_vm4, %v1274_v51, %v8931_v14  ;;  %v4546_v16 = vld [vmem:[%s4616_s20 + $0xd8] sm:$0xff]  ;;  %v8943_v1 = vld [vmem:[#allocation91_spill] sm:$0xff]  ;;  %v8944_v26 = vld [vmem:[#allocation92_spill] sm:$0xff] }
 0x242   : > { %4267 = vmatprep.mubr.msk.f32.mxu0 %vm1525_vm11, %v1500_v60  ;;  %v1469_v12 = vsel %vm1454_vm9, %v1436_v21, %v6040_v56  ;;  %v1306_v56 = vsel %vm1289_vm4, %v1273_v24, %v8932_v34  ;;  %v1340_v52 = vsel %vm1322_vm5, %v1307_v7, %v8933_v32  ;;  %v1276_v22 = vsel %vm1256_vm3, %v4545_v49, %v8941_v48  ;;  %v8942_v40 = vld [vmem:[#allocation61_spill] sm:$0xff]  ;;  %v8946_v39 = vld [vmem:[#allocation122_spill] sm:$0xff]  ;;  %v8947_v6 = vld [vmem:[#allocation140_spill] sm:$0xff] }
 0x243   : > { %4268 = vmatmul.mubr.msk.f32.gmra.mxu0 %vm1525_vm11, %v1501_v13  ;;  %v1191_v33 = vpop.permute.xlu1 %1190  ;;  %v1339_v27 = vsel %vm1322_vm5, %v1306_v56, %v8934_v41  ;;  %v1373_v17 = vsel %vm1355_vm6, %v1340_v52, %v8935_v54  ;;  %v1275_v10 = vsel %vm1256_vm3, %v4546_v16, %v8942_v40  ;;  %v1309_v55 = vsel %vm1289_vm4, %v1276_v22, %v8943_v1  ;;  %v8945_v13 = vld [vmem:[#allocation30_spill] sm:$0xff]  ;;  %v8948_v62 = vld [vmem:[#allocation141_spill] sm:$0xff]  ;;  %v8949_v43 = vld [vmem:[#allocation7_spill] sm:$0xff] }
 0x244   : > { %v1503_v45 = vsel %vm1487_vm10, %v1470_v58, %v1191_v33  ;;  %v1189_v35 = vpop.permute.xlu0 %1188  ;;  %v1372_v61 = vsel %vm1355_vm6, %v1339_v27, %v8936_v50  ;;  %v1406_v42 = vsel %vm1388_vm7, %v1373_v17, %v8937_v29  ;;  %v1308_v25 = vsel %vm1289_vm4, %v1275_v10, %v8944_v26  ;;  %v8950_v21 = vld [vmem:[#allocation8_spill] sm:$0xff]  ;;  %v8951_v58 = vld [vmem:[#allocation17_spill] sm:$0xff]  ;;  %v8953_v8 = vld [vmem:[#allocation62_spill] sm:$0xff] }
 0x245   : > { %v1502_v31 = vsel %vm1487_vm10, %v1469_v12, %v1189_v35  ;;  %v1405_v11 = vsel %vm1388_vm7, %v1372_v61, %v8938_v5  ;;  %v1439_v19 = vsel %vm1421_vm8, %v1406_v42, %v8939_v30  ;;  %v1342_v23 = vsel %vm1322_vm5, %v1309_v55, %v8945_v13  ;;  %v8952_v12 = vld [vmem:[#allocation18_spill] sm:$0xff]  ;;  %v4547_v37 = vld [vmem:[%s4616_s20 + $0xf8] sm:$0xff]  ;;  %v4548_v7 = vld [vmem:[%s4616_s20 + $0xf0] sm:$0xff] }
 0x246   : > { %4270 = vmatprep.mubr.msk.f32.mxu0 %vm1525_vm11, %v1502_v31  ;;  %v1438_v2 = vsel %vm1421_vm8, %v1405_v11, %v8940_v59  ;;  %v1341_v36 = vsel %vm1322_vm5, %v1308_v25, %v8946_v39  ;;  %v1375_v60 = vsel %vm1355_vm6, %v1342_v23, %v8947_v6  ;;  %v1278_v24 = vsel %vm1256_vm3, %v4547_v37, %v8953_v8  ;;  %v8954_v34 = vld [vmem:[#allocation63_spill] sm:$0xff]  ;;  %v8955_v32 = vld [vmem:[#allocation93_spill] sm:$0xff]  ;;  %v8959_v61 = vld [vmem:[#allocation142_spill] sm:$0xff] }
 0x247   : > { %4271 = vmatmul.mubr.msk.f32.gmra.mxu0 %vm1525_vm11, %v1503_v45  ;;  %v1094_v0 = vpop.permute.xlu1 %1093  ;;  %v1374_v18 = vsel %vm1355_vm6, %v1341_v36, %v8948_v62  ;;  %v1408_v44 = vsel %vm1388_vm7, %v1375_v60, %v8949_v43  ;;  %v1277_v56 = vsel %vm1256_vm3, %v4548_v7, %v8954_v34  ;;  %v1311_v52 = vsel %vm1289_vm4, %v1278_v24, %v8955_v32  ;;  %v8957_v27 = vld [vmem:[#allocation31_spill] sm:$0xff]  ;;  %v8961_v30 = vld [vmem:[#allocation9_spill] sm:$0xff]  ;;  %v8962_v59 = vld [vmem:[#allocation10_spill] sm:$0xff] }
 0x248   : > { %v1092_v46 = vpop.permute.xlu0 %1091  ;;  %v1472_v3 = vsel %vm1454_vm9, %v1439_v19, %v1094_v0  ;;  %v1407_v9 = vsel %vm1388_vm7, %v1374_v18, %v8950_v21  ;;  %v1441_v33 = vsel %vm1421_vm8, %v1408_v44, %v8951_v58  ;;  %v8956_v0 = vld [vmem:[#allocation94_spill] sm:$0xff]  ;;  %v1344_v54 = vsel %vm1322_vm5, %v1311_v52, %v8957_v27  ;;  %v8960_v5 = vld [vmem:[#allocation143_spill] sm:$0xff]  ;;  %v4549_v16 = vld [vmem:[%s4616_s20 + $0x110] sm:$0xff] }
 0x249   : > { %v1471_v28 = vsel %vm1454_vm9, %v1438_v2, %v1092_v46  ;;  %v1440_v45 = vsel %vm1421_vm8, %v1407_v9, %v8952_v12  ;;  %v1310_v41 = vsel %vm1289_vm4, %v1277_v56, %v8956_v0  ;;  %v8958_v46 = vld [vmem:[#allocation123_spill] sm:$0xff]  ;;  %v1377_v29 = vsel %vm1355_vm6, %v1344_v54, %v8959_v61  ;;  %v8965_v40 = vld [vmem:[#allocation64_spill] sm:$0xff]  ;;  %v8966_v26 = vld [vmem:[#allocation65_spill] sm:$0xff] }
 0x24a   : > { %v1343_v50 = vsel %vm1322_vm5, %v1310_v41, %v8958_v46  ;;  %v1410_v19 = vsel %vm1388_vm7, %v1377_v29, %v8961_v30  ;;  %v1280_v10 = vsel %vm1256_vm3, %v4549_v16, %v8965_v40  ;;  %v4550_v55 = vld [vmem:[%s4616_s20 + $0x108] sm:$0xff]  ;;  %v8969_v36 = vld [vmem:[#allocation32_spill] sm:$0xff]  ;;  %v8972_v21 = vld [vmem:[#allocation145_spill] sm:$0xff] }
 0x24b   : > { %v1195_v15 = vpop.permute.xlu1 %1194  ;;  %v1376_v11 = vsel %vm1355_vm6, %v1343_v50, %v8960_v5  ;;  %v1279_v25 = vsel %vm1256_vm3, %v4550_v55, %v8966_v26  ;;  %v8967_v13 = vld [vmem:[#allocation95_spill] sm:$0xff]  ;;  %v8971_v18 = vld [vmem:[#allocation144_spill] sm:$0xff]  ;;  %v8977_v34 = vld [vmem:[#allocation66_spill] sm:$0xff] }
 0x24c   : > { %v1505_v20 = vsel %vm1487_vm10, %v1472_v3, %v1195_v15  ;;  %v1193_v57 = vpop.permute.xlu0 %1192  ;;  %v1409_v2 = vsel %vm1388_vm7, %v1376_v11, %v8962_v59  ;;  %v8963_v3 = vld [vmem:[#allocation37_spill] sm:$0xff]  ;;  %v1313_v23 = vsel %vm1289_vm4, %v1280_v10, %v8967_v13  ;;  %v8973_v58 = vld [vmem:[#allocation11_spill] sm:$0xff]  ;;  %v8974_v12 = vld [vmem:[#allocation12_spill] sm:$0xff] }
 0x24d   : > { %v1504_v4 = vsel %vm1487_vm10, %v1471_v28, %v1193_v57  ;;  %v1443_v15 = vsel %vm1421_vm8, %v1410_v19, %v8963_v3  ;;  %v8964_v28 = vld [vmem:[#allocation19_spill] sm:$0xff]  ;;  %v1346_v6 = vsel %vm1322_vm5, %v1313_v23, %v8969_v36  ;;  %v4552_v52 = vld [vmem:[%s4616_s20 + $0x120] sm:$0xff]  ;;  %v8979_v27 = vld [vmem:[#allocation97_spill] sm:$0xff] }
 0x24e   : > { %4273 = vmatprep.mubr.msk.f32.mxu0 %vm1525_vm11, %v1504_v4  ;;  %v1379_v43 = vsel %vm1355_vm6, %v1346_v6, %v8971_v18  ;;  %v4551_v7 = vld [vmem:[%s4616_s20 + $0x128] sm:$0xff]  ;;  %v8981_v50 = vld [vmem:[#allocation125_spill] sm:$0xff]  ;;  %v8983_v11 = vld [vmem:[#allocation146_spill] sm:$0xff] }
 0x24f   : > { %4274 = vmatmul.mubr.msk.f32.gmra.mxu0 %vm1525_vm11, %v1505_v20  ;;  %v1098_v53 = vpop.permute.xlu1 %1097  ;;  %v1442_v20 = vsel %vm1421_vm8, %v1409_v2, %v8964_v28  ;;  %v1282_v56 = vsel %vm1256_vm3, %v4551_v7, %v8977_v34  ;;  %v8978_v0 = vld [vmem:[#allocation67_spill] sm:$0xff]  ;;  %v8985_v3 = vld [vmem:[#allocation13_spill] sm:$0xff]  ;;  %v8986_v28 = vld [vmem:[#allocation14_spill] sm:$0xff] }
 0x250   : > { %v1096_v47 = vpop.permute.xlu0 %1095  ;;  %v1474_v35 = vsel %vm1454_vm9, %v1441_v33, %v1098_v53  ;;  %v8968_v53 = vld [vmem:[#allocation96_spill] sm:$0xff]  ;;  %v1412_v33 = vsel %vm1388_vm7, %v1379_v43, %v8973_v58  ;;  %v1281_v41 = vsel %vm1256_vm3, %v4552_v52, %v8978_v0  ;;  %v1315_v54 = vsel %vm1289_vm4, %v1282_v56, %v8979_v27  ;;  %v8984_v59 = vld [vmem:[#allocation147_spill] sm:$0xff]  ;;  %v4553_v55 = vld [vmem:[%s4616_s20 + $0x140] sm:$0xff] }
 0x251   : > { %v1473_v38 = vsel %vm1454_vm9, %v1440_v45, %v1096_v47  ;;  %v1312_v39 = vsel %vm1289_vm4, %v1279_v25, %v8968_v53  ;;  %v8970_v47 = vld [vmem:[#allocation124_spill] sm:$0xff]  ;;  %v1348_v61 = vsel %vm1322_vm5, %v1315_v54, %v8981_v50  ;;  %v4554_v23 = vld [vmem:[%s4616_s20 + $0x138] sm:$0xff]  ;;  %v8991_v36 = vld [vmem:[#allocation99_spill] sm:$0xff] }
 0x252   : > { %v1345_v62 = vsel %vm1322_vm5, %v1312_v39, %v8970_v47  ;;  %v1381_v30 = vsel %vm1355_vm6, %v1348_v61, %v8983_v11  ;;  %v8989_v26 = vld [vmem:[#allocation68_spill] sm:$0xff]  ;;  %v8990_v53 = vld [vmem:[#allocation69_spill] sm:$0xff]  ;;  %v9001_v0 = vld [vmem:[#allocation70_spill] sm:$0xff] }
 0x253   : > { %v1199_v63 = vpop.permute.xlu1 %1198  ;;  %v1378_v9 = vsel %vm1355_vm6, %v1345_v62, %v8972_v21  ;;  %v1284_v25 = vsel %vm1256_vm3, %v4553_v55, %v8989_v26  ;;  %v1283_v39 = vsel %vm1256_vm3, %v4554_v23, %v8990_v53  ;;  %v8993_v62 = vld [vmem:[#allocation127_spill] sm:$0xff]  ;;  %v4555_v52 = vld [vmem:[%s4616_s20 + $0x158] sm:$0xff]  ;;  %v4556_v54 = vld [vmem:[%s4616_s20 + $0x150] sm:$0xff] }
 0x254   : > { %v1507_v51 = vsel %vm1487_vm10, %v1474_v35, %v1199_v63  ;;  %v1197_v31 = vpop.permute.xlu0 %1196  ;;  %v1411_v45 = vsel %vm1388_vm7, %v1378_v9, %v8974_v12  ;;  %v8975_v35 = vld [vmem:[#allocation20_spill] sm:$0xff]  ;;  %v1317_v6 = vsel %vm1289_vm4, %v1284_v25, %v8991_v36  ;;  %v8996_v12 = vld [vmem:[#allocation149_spill] sm:$0xff] }
 0x255   : > { %v1506_v14 = vsel %vm1487_vm10, %v1473_v38, %v1197_v31  ;;  %v1445_v63 = vsel %vm1421_vm8, %v1412_v33, %v8975_v35  ;;  %v8976_v38 = vld [vmem:[#allocation38_spill] sm:$0xff]  ;;  %v1350_v18 = vsel %vm1322_vm5, %v1317_v6, %v8993_v62  ;;  %v8995_v9 = vld [vmem:[#allocation148_spill] sm:$0xff]  ;;  %v9003_v50 = vld [vmem:[#allocation101_spill] sm:$0xff] }
 0x256   : > { %4276 = vmatprep.mubr.msk.f32.mxu0 %vm1525_vm11, %v1506_v14  ;;  %v1383_v58 = vsel %vm1355_vm6, %v1350_v18, %v8995_v9  ;;  %v8997_v35 = vld [vmem:[#allocation154_spill] sm:$0xff]  ;;  %v4557_v23 = vld [vmem:[%s4616_s20 + $0x170] sm:$0xff]  ;;  %v4558_v6 = vld [vmem:[%s4616_s20 + $0x168] sm:$0xff] }
 0x257   : > { %4277 = vmatmul.mubr.msk.f32.gmra.mxu0 %vm1525_vm11, %v1507_v51  ;;  %v1102_v17 = vpop.permute.xlu1 %1101  ;;  %v1444_v51 = vsel %vm1421_vm8, %v1411_v45, %v8976_v38  ;;  %v8998_v38 = vld [vmem:[#allocation155_spill] sm:$0xff]  ;;  %v9013_v53 = vld [vmem:[#allocation72_spill] sm:$0xff] }
 0x258   : > { %v1100_v42 = vpop.permute.xlu0 %1099  ;;  %v1476_v57 = vsel %vm1454_vm9, %v1443_v15, %v1102_v17  ;;  %v8980_v17 = vld [vmem:[#allocation98_spill] sm:$0xff]  ;;  %v1414_v15 = vsel %vm1388_vm7, %v1381_v30, %v8985_v3  ;;  %v9015_v62 = vld [vmem:[#allocation103_spill] sm:$0xff] }
 0x259   : > { %v1475_v48 = vsel %vm1454_vm9, %v1442_v20, %v1100_v42  ;;  %v1314_v46 = vsel %vm1289_vm4, %v1281_v41, %v8980_v17  ;;  %v8982_v42 = vld [vmem:[#allocation126_spill] sm:$0xff]  ;;  %v1286_v41 = vsel %vm1256_vm3, %v4555_v52, %v9001_v0  ;;  %v9002_v17 = vld [vmem:[#allocation71_spill] sm:$0xff] }
 0x25a   : > { %v1347_v5 = vsel %vm1322_vm5, %v1314_v46, %v8982_v42  ;;  %v1285_v46 = vsel %vm1256_vm3, %v4556_v54, %v9002_v17  ;;  %v1319_v61 = vsel %vm1289_vm4, %v1286_v41, %v9003_v50 }
 0x25b   : > { %v1203_v49 = vpop.permute.xlu1 %1202  ;;  %v1380_v2 = vsel %vm1355_vm6, %v1347_v5, %v8984_v59  ;;  %v9005_v5 = vld [vmem:[#allocation36_spill] sm:$0xff] }
 0x25c   : > { %v1509_v22 = vsel %vm1487_vm10, %v1476_v57, %v1203_v49  ;;  %v1201_v4 = vpop.permute.xlu0 %1200  ;;  %v1413_v20 = vsel %vm1388_vm7, %v1380_v2, %v8986_v28  ;;  %v8987_v57 = vld [vmem:[#allocation21_spill] sm:$0xff]  ;;  %v1352_v11 = vsel %vm1322_vm5, %v1319_v61, %v9005_v5  ;;  %v9007_v2 = vld [vmem:[#allocation150_spill] sm:$0xff]  ;;  %v9008_v28 = vld [vmem:[#allocation151_spill] sm:$0xff] }
 0x25d   : > { %v1508_v1 = vsel %vm1487_vm10, %v1475_v48, %v1201_v4  ;;  %v1447_v49 = vsel %vm1421_vm8, %v1414_v15, %v8987_v57  ;;  %v8988_v48 = vld [vmem:[#allocation22_spill] sm:$0xff]  ;;  %v1385_v3 = vsel %vm1355_vm6, %v1352_v11, %v9007_v2  ;;  %v9009_v57 = vld [vmem:[#allocation156_spill] sm:$0xff] }
 0x25e   : > { %4279 = vmatprep.mubr.msk.f32.mxu0 %vm1525_vm11, %v1508_v1 }
 0x25f   : > { %4280 = vmatmul.mubr.msk.f32.gmra.mxu0 %vm1525_vm11, %v1509_v22  ;;  %v1106_v60 = vpop.permute.xlu1 %1105  ;;  %v1446_v22 = vsel %vm1421_vm8, %v1413_v20, %v8988_v48  ;;  %v9010_v48 = vld [vmem:[#allocation157_spill] sm:$0xff] }
 0x260   : > { %v1104_v44 = vpop.permute.xlu0 %1103  ;;  %v1478_v31 = vsel %vm1454_vm9, %v1445_v63, %v1106_v60  ;;  %v8992_v60 = vld [vmem:[#allocation100_spill] sm:$0xff]  ;;  %v1416_v63 = vsel %vm1388_vm7, %v1383_v58, %v8997_v35 }
 0x261   : > { %v1477_v8 = vsel %vm1454_vm9, %v1444_v51, %v1104_v44  ;;  %v1316_v47 = vsel %vm1289_vm4, %v1283_v39, %v8992_v60  ;;  %v8994_v44 = vld [vmem:[#allocation128_spill] sm:$0xff]  ;;  %v1288_v39 = vsel %vm1256_vm3, %v4557_v23, %v9013_v53  ;;  %v9014_v60 = vld [vmem:[#allocation73_spill] sm:$0xff] }
 0x262   : > { %v1349_v21 = vsel %vm1322_vm5, %v1316_v47, %v8994_v44  ;;  %v1287_v47 = vsel %vm1256_vm3, %v4558_v6, %v9014_v60  ;;  %v1321_v18 = vsel %vm1289_vm4, %v1288_v39, %v9015_v62 }
 0x263   : > { %v1207_v37 = vpop.permute.xlu1 %1206  ;;  %v1382_v45 = vsel %vm1355_vm6, %v1349_v21, %v8996_v12  ;;  %v9017_v21 = vld [vmem:[#allocation130_spill] sm:$0xff] }
 0x264   : > { %v1511_v24 = vsel %vm1487_vm10, %v1478_v31, %v1207_v37  ;;  %v1205_v14 = vpop.permute.xlu0 %1204  ;;  %v1415_v51 = vsel %vm1388_vm7, %v1382_v45, %v8998_v38  ;;  %v8999_v31 = vld [vmem:[#allocation39_spill] sm:$0xff]  ;;  %v1354_v9 = vsel %vm1322_vm5, %v1321_v18, %v9017_v21  ;;  %v9019_v45 = vld [vmem:[#allocation152_spill] sm:$0xff]  ;;  %v9020_v38 = vld [vmem:[#allocation153_spill] sm:$0xff] }
 0x265   : > { %v1510_v32 = vsel %vm1487_vm10, %v1477_v8, %v1205_v14  ;;  %v1449_v37 = vsel %vm1421_vm8, %v1416_v63, %v8999_v31  ;;  %v9000_v8 = vld [vmem:[#allocation23_spill] sm:$0xff]  ;;  %v1387_v35 = vsel %vm1355_vm6, %v1354_v9, %v9019_v45  ;;  %v9021_v31 = vld [vmem:[#allocation158_spill] sm:$0xff] }
 0x266   : > { %4282 = vmatprep.mubr.msk.f32.mxu0 %vm1525_vm11, %v1510_v32 }
 0x267   : > { %4283 = vmatmul.mubr.msk.f32.gmra.mxu0 %vm1525_vm11, %v1511_v24  ;;  %v1110_v29 = vpop.permute.xlu1 %1109  ;;  %v1448_v24 = vsel %vm1421_vm8, %v1415_v51, %v9000_v8  ;;  %v9022_v8 = vld [vmem:[#allocation159_spill] sm:$0xff] }
 0x268   : > { %v1108_v19 = vpop.permute.xlu0 %1107  ;;  %v1480_v4 = vsel %vm1454_vm9, %v1447_v49, %v1110_v29  ;;  %v9004_v29 = vld [vmem:[#allocation102_spill] sm:$0xff]  ;;  %v1418_v49 = vsel %vm1388_vm7, %v1385_v3, %v9009_v57 }
 0x269   : > { %v1479_v40 = vsel %vm1454_vm9, %v1446_v22, %v1108_v19  ;;  %v1318_v42 = vsel %vm1289_vm4, %v1285_v46, %v9004_v29  ;;  %v9006_v19 = vld [vmem:[#allocation129_spill] sm:$0xff] }
 0x26a   : > { %v1351_v59 = vsel %vm1322_vm5, %v1318_v42, %v9006_v19 }
 0x26b   : > { %v1211_v16 = vpop.permute.xlu1 %1210  ;;  %v1384_v20 = vsel %vm1355_vm6, %v1351_v59, %v9008_v28 }
 0x26c   : > { %v1513_v10 = vsel %vm1487_vm10, %v1480_v4, %v1211_v16  ;;  %v1209_v1 = vpop.permute.xlu0 %1208  ;;  %v1417_v22 = vsel %vm1388_vm7, %v1384_v20, %v9010_v48  ;;  %v9011_v4 = vld [vmem:[#allocation24_spill] sm:$0xff] }
 0x26d   : > { %v1512_v13 = vsel %vm1487_vm10, %v1479_v40, %v1209_v1  ;;  %v1451_v16 = vsel %vm1421_vm8, %v1418_v49, %v9011_v4  ;;  %v9012_v40 = vld [vmem:[#allocation44_spill] sm:$0xff] }
 0x26e   : > { %4285 = vmatprep.mubr.msk.f32.mxu0 %vm1525_vm11, %v1512_v13 }
 0x26f   : > { %4286 = vmatmul.mubr.msk.f32.gmra.mxu0 %vm1525_vm11, %v1513_v10  ;;  %v1114_v43 = vpop.permute.xlu1 %1113  ;;  %v1450_v10 = vsel %vm1421_vm8, %v1417_v22, %v9012_v40 }
 0x270   : > { %v1112_v33 = vpop.permute.xlu0 %1111  ;;  %v1482_v14 = vsel %vm1454_vm9, %v1449_v37, %v1114_v43  ;;  %v9016_v43 = vld [vmem:[#allocation104_spill] sm:$0xff]  ;;  %v1420_v37 = vsel %vm1388_vm7, %v1387_v35, %v9021_v31 }
 0x271   : > { %v1481_v34 = vsel %vm1454_vm9, %v1448_v24, %v1112_v33  ;;  %v1320_v44 = vsel %vm1289_vm4, %v1287_v47, %v9016_v43  ;;  %v9018_v33 = vld [vmem:[#allocation131_spill] sm:$0xff] }
 0x272   : > { %v1353_v12 = vsel %vm1322_vm5, %v1320_v44, %v9018_v33 }
 0x273   : > { %v1215_v7 = vpop.permute.xlu1 %1214  ;;  %v1386_v51 = vsel %vm1355_vm6, %v1353_v12, %v9020_v38 }
 0x274   : > { %v1515_v56 = vsel %vm1487_vm10, %v1482_v14, %v1215_v7  ;;  %v1213_v32 = vpop.permute.xlu0 %1212  ;;  %v1419_v24 = vsel %vm1388_vm7, %v1386_v51, %v9022_v8  ;;  %v9023_v14 = vld [vmem:[#allocation25_spill] sm:$0xff] }
 0x275   : > { %v1514_v27 = vsel %vm1487_vm10, %v1481_v34, %v1213_v32  ;;  %v1453_v7 = vsel %vm1421_vm8, %v1420_v37, %v9023_v14  ;;  %v9024_v34 = vld [vmem:[#allocation26_spill] sm:$0xff] }
 0x276   : > { %4288 = vmatprep.mubr.msk.f32.mxu0 %vm1525_vm11, %v1514_v27 }
 0x277   : > { %4289 = vmatmul.mubr.msk.f32.gmra.mxu0 %vm1525_vm11, %v1515_v56  ;;  %v1118_v30 = vpop.permute.xlu1 %1117  ;;  %v1452_v56 = vsel %vm1421_vm8, %v1419_v24, %v9024_v34 }
 0x278   : > { %v1116_v15 = vpop.permute.xlu0 %1115  ;;  %v1484_v1 = vsel %vm1454_vm9, %v1451_v16, %v1118_v30 }
 0x279   : > { %v1483_v26 = vsel %vm1454_vm9, %v1450_v10, %v1116_v15 }
 0x27b   : > { %v1219_v55 = vpop.permute.xlu1 %1218 }
 0x27c   : > { %v1517_v25 = vsel %vm1487_vm10, %v1484_v1, %v1219_v55  ;;  %v1217_v13 = vpop.permute.xlu0 %1216 }
 0x27d   : > { %v1516_v36 = vsel %vm1487_vm10, %v1483_v26, %v1217_v13 }
 0x27e   : > { %4291 = vmatprep.mubr.msk.f32.mxu0 %vm1525_vm11, %v1516_v36 }
 0x27f   : > { %4292 = vmatmul.mubr.msk.f32.gmra.mxu0 %vm1525_vm11, %v1517_v25  ;;  %v1122_v58 = vpop.permute.xlu1 %1121 }
 0x280   : > { %v1120_v63 = vpop.permute.xlu0 %1119  ;;  %v1486_v32 = vsel %vm1454_vm9, %v1453_v7, %v1122_v58 }
 0x281   : > { %v1485_v0 = vsel %vm1454_vm9, %v1452_v56, %v1120_v63 }
 0x283   : > { %v1223_v52 = vpop.permute.xlu1 %1222 }
 0x284   : > { %v1519_v41 = vsel %vm1487_vm10, %v1486_v32, %v1223_v52  ;;  %v1221_v27 = vpop.permute.xlu0 %1220 }
 0x285   : > { %v1518_v54 = vsel %vm1487_vm10, %v1485_v0, %v1221_v27 }
 0x286   : > { %4294 = vmatprep.mubr.msk.f32.mxu0 %vm1525_vm11, %v1518_v54 }
 0x287   : > { %4295 = vmatmul.mubr.msk.f32.gmra.mxu0 %vm1525_vm11, %v1519_v41 }
 0x288   : > { %v6550_v17 = vpop.permute.xlu0 %1857 }
 0x2eb   : > { %v6552_v46 = vpop.f32.mrf.mxu0 }
 0x2ec   : > { %v1861_v50 = vadd.f32 %v6552_v46, %v6550_v17 }
 0x2ed   : > { %v6556_v61 = vpop.f32.mrf.mxu0 }
 0x2ee   : > { %v1860_v29 = vadd.f32 %v6550_v17, %v6556_v61  ;;  %v4098_v42 = vmul.f32 -1.442695, %v1861_v50 }
 0x2ef   : > { %v6560_v5 = vpop.f32.mrf.mxu0 }
 0x2f0   : > { %v4097_v11 = vmul.f32 -1.442695, %v1860_v29  ;;  %v1863_v30 = vadd.f32 %v6560_v5, %v6550_v17  ;;  %4399 = vpow2.f32 %v4098_v42 }
 0x2f1   : > { %v6564_v19 = vpop.f32.mrf.mxu0 }
 0x2f2   : > { %4401 = vpow2.f32 %v4097_v11  ;;  %v4100_v59 = vmul.f32 -1.442695, %v1863_v30  ;;  %v1862_v2 = vadd.f32 %v6550_v17, %v6564_v19 }
 0x2f3   : > { %v6568_v3 = vpop.f32.mrf.mxu0 }
 0x2f4   : > { %4403 = vpow2.f32 %v4100_v59  ;;  %v4099_v15 = vmul.f32 -1.442695, %v1862_v2  ;;  %v1865_v28 = vadd.f32 %v6568_v3, %v6550_v17 }
 0x2f5   : > { %v6572_v20 = vpop.f32.mrf.mxu0 }
 0x2f6   : > { %4405 = vpow2.f32 %v4099_v15  ;;  %v4102_v57 = vmul.f32 -1.442695, %v1865_v28  ;;  %v1864_v49 = vadd.f32 %v6550_v17, %v6572_v20 }
 0x2f7   : > { %v6576_v48 = vpop.f32.mrf.mxu0 }
 0x2f8   : > { %4407 = vpow2.f32 %v4102_v57  ;;  %v4101_v22 = vmul.f32 -1.442695, %v1864_v49  ;;  %v1867_v4 = vadd.f32 %v6576_v48, %v6550_v17 }
 0x2f9   : > { %v6580_v16 = vpop.f32.mrf.mxu0 }
 0x2fa   : > { %4409 = vpow2.f32 %v4101_v22  ;;  %v4104_v40 = vmul.f32 -1.442695, %v1867_v4  ;;  %v1866_v10 = vadd.f32 %v6550_v17, %v6580_v16 }
 0x2fb   : > { %v6584_v1 = vpop.f32.mrf.mxu0 }
 0x2fc   : > { %4411 = vpow2.f32 %v4104_v40  ;;  %v4103_v55 = vmul.f32 -1.442695, %v1866_v10  ;;  %v1869_v26 = vadd.f32 %v6584_v1, %v6550_v17 }
 0x2fd   : > { %v4400_v25 = vpop.eup %4399  ;;  %v6588_v13 = vpop.f32.mrf.mxu0 }
 0x2fe   : > { %4413 = vpow2.f32 %v4103_v55  ;;  %v4106_v23 = vmul.f32 -1.442695, %v1869_v26  ;;  %v1868_v53 = vadd.f32 %v6550_v17, %v6588_v13  ;;  %v1989_v39 = vadd.f32 1.0, %v4400_v25 }
 0x2ff   : > { %v4402_v36 = vpop.eup %4401  ;;  %v6592_v6 = vpop.f32.mrf.mxu0 }
 0x300   : > { %v1988_v60 = vadd.f32 1.0, %v4402_v36  ;;  %4415 = vpow2.f32 %v4106_v23  ;;  %v4105_v47 = vmul.f32 -1.442695, %v1868_v53  ;;  %v1871_v62 = vadd.f32 %v6592_v6, %v6550_v17 }
 0x301   : > { %v4404_v18 = vpop.eup %4403  ;;  %v6596_v43 = vpop.f32.mrf.mxu0  ;;  %4417 = vrcp.f32 %v1989_v39 }
 0x302   : > { %4419 = vrcp.f32 %v1988_v60  ;;  %v1991_v44 = vadd.f32 1.0, %v4404_v18  ;;  %v4108_v21 = vmul.f32 -1.442695, %v1871_v62  ;;  %v1870_v9 = vadd.f32 %v6550_v17, %v6596_v43 }
 0x303   : > { %v4406_v58 = vpop.eup %4405  ;;  %4421 = vpow2.f32 %v4105_v47  ;;  %v6600_v33 = vpop.f32.mrf.mxu0 }
 0x304   : > { %4423 = vrcp.f32 %v1991_v44  ;;  %v1990_v12 = vadd.f32 1.0, %v4406_v58  ;;  %v4107_v45 = vmul.f32 -1.442695, %v1870_v9  ;;  %v1873_v35 = vadd.f32 %v6600_v33, %v6550_v17 }
 0x305   : > { %v4408_v63 = vpop.eup %4407  ;;  %4425 = vpow2.f32 %v4108_v21  ;;  %v6604_v38 = vpop.f32.mrf.mxu0 }
 0x306   : > { %4427 = vrcp.f32 %v1990_v12  ;;  %v1993_v51 = vadd.f32 1.0, %v4408_v63  ;;  %v4110_v31 = vmul.f32 -1.442695, %v1873_v35  ;;  %v1872_v37 = vadd.f32 %v6550_v17, %v6604_v38 }
 0x307   : > { %v4410_v8 = vpop.eup %4409  ;;  %4429 = vpow2.f32 %v4107_v45  ;;  %v6608_v24 = vpop.f32.mrf.mxu0 }
 0x308   : > { %4431 = vrcp.f32 %v1993_v51  ;;  %v1992_v14 = vadd.f32 1.0, %v4410_v8  ;;  %v4109_v7 = vmul.f32 -1.442695, %v1872_v37  ;;  %v1875_v34 = vadd.f32 %v6608_v24, %v6550_v17 }
 0x309   : > { %v4412_v56 = vpop.eup %4411  ;;  %4433 = vpow2.f32 %v4110_v31  ;;  %v6612_v32 = vpop.f32.mrf.mxu0 }
 0x30a   : > { %4435 = vrcp.f32 %v1992_v14  ;;  %v1995_v52 = vadd.f32 1.0, %v4412_v56  ;;  %v4112_v0 = vmul.f32 -1.442695, %v1875_v34  ;;  %v1874_v41 = vadd.f32 %v6550_v17, %v6612_v32 }
 0x30b   : > { %v4414_v27 = vpop.eup %4413  ;;  %4437 = vpow2.f32 %v4109_v7 }
 0x30c   : > { %4439 = vrcp.f32 %v1995_v52  ;;  %v1994_v54 = vadd.f32 1.0, %v4414_v27  ;;  %v4111_v50 = vmul.f32 -1.442695, %v1874_v41 }
 0x30d   : > { %v4416_v29 = vpop.eup %4415  ;;  %4441 = vpow2.f32 %v4112_v0 }
 0x30e   : > { %v4418_v42 = vpop.eup %4417  ;;  %4443 = vrcp.f32 %v1994_v54  ;;  %v1997_v11 = vadd.f32 1.0, %v4416_v29 }
 0x30f   : > { %v4420_v30 = vpop.eup %4419  ;;  %4445 = vpow2.f32 %v4111_v50  ;;  %2118 = vrot.lane.b32.xlu0 %v4418_v42, %s4575_s17  ;;  %v6617_v59 = vpop.f32.mrf.mxu0 }
 0x310   : > { %v4422_v2 = vpop.eup %4421  ;;  %4447 = vrcp.f32 %v1997_v11  ;;  %v1877_v15 = vadd.f32 %v6617_v59, %v6550_v17  ;;  %2116 = vrot.lane.b32.xlu1 %v4420_v30, %s4575_s17 }
 0x311   : > { %v4424_v28 = vpop.eup %4423  ;;  %v1996_v57 = vadd.f32 1.0, %v4422_v2  ;;  %v6622_v49 = vpop.f32.mrf.mxu0 }
 0x312   : > { %v4426_v22 = vpop.eup %4425  ;;  %v4114_v4 = vmul.f32 -1.442695, %v1877_v15  ;;  %v1876_v40 = vadd.f32 %v6550_v17, %v6622_v49 }
 0x313   : > { %v4428_v10 = vpop.eup %4427  ;;  %4449 = vrcp.f32 %v1996_v57  ;;  %v1999_v55 = vadd.f32 1.0, %v4426_v22  ;;  %2122 = vrot.lane.b32.xlu0 %v4424_v28, %s4575_s17 }
 0x314   : > { %v4430_v26 = vpop.eup %4429  ;;  %4451 = vpow2.f32 %v4114_v4  ;;  %v4113_v25 = vmul.f32 -1.442695, %v1876_v40  ;;  %2120 = vrot.lane.b32.xlu1 %v4428_v10, %s4575_s17 }
 0x315   : > { %v4432_v23 = vpop.eup %4431  ;;  %4453 = vrcp.f32 %v1999_v55  ;;  %v1998_v53 = vadd.f32 1.0, %v4430_v26 }
 0x316   : > { %v4434_v39 = vpop.eup %4433  ;;  %4455 = vpow2.f32 %v4113_v25 }
 0x317   : > { %v4436_v36 = vpop.eup %4435  ;;  %4457 = vrcp.f32 %v1998_v53  ;;  %v2001_v60 = vadd.f32 1.0, %v4434_v39  ;;  %2126 = vrot.lane.b32.xlu0 %v4432_v23, %s4575_s17  ;;  %v6629_v47 = vpop.f32.mrf.mxu0 }
 0x318   : > { %v4438_v62 = vpop.eup %4437  ;;  %v1879_v18 = vadd.f32 %v6629_v47, %v6550_v17  ;;  %2124 = vrot.lane.b32.xlu1 %v4436_v36, %s4575_s17 }
 0x319   : > { %v4440_v44 = vpop.eup %4439  ;;  %4459 = vrcp.f32 %v2001_v60  ;;  %v2000_v21 = vadd.f32 1.0, %v4438_v62  ;;  %v6634_v9 = vpop.f32.mrf.mxu0 }
 0x31a   : > { %v4442_v58 = vpop.eup %4441  ;;  %v4116_v12 = vmul.f32 -1.442695, %v1879_v18  ;;  %v1878_v45 = vadd.f32 %v6550_v17, %v6634_v9 }
 0x31b   : > { %v4444_v35 = vpop.eup %4443  ;;  %4461 = vrcp.f32 %v2000_v21  ;;  %v2003_v63 = vadd.f32 1.0, %v4442_v58  ;;  %2130 = vrot.lane.b32.xlu0 %v4440_v44, %s4575_s17 }
 0x31c   : > { %v4446_v51 = vpop.eup %4445  ;;  %4463 = vpow2.f32 %v4116_v12  ;;  %v4115_v31 = vmul.f32 -1.442695, %v1878_v45  ;;  %2128 = vrot.lane.b32.xlu1 %v4444_v35, %s4575_s17 }
 0x31d   : > { %v4448_v37 = vpop.eup %4447  ;;  %4465 = vrcp.f32 %v2003_v63  ;;  %v2002_v8 = vadd.f32 1.0, %v4446_v51 }
 0x31e   : > { %4467 = vpow2.f32 %v4115_v31 }
 0x31f   : > { %4469 = vrcp.f32 %v2002_v8  ;;  %2134 = vrot.lane.b32.xlu0 %v4448_v37, %s4575_s17  ;;  %v6641_v14 = vpop.f32.mrf.mxu0 }
 0x320   : > { %v4450_v7 = vpop.eup %4449  ;;  %v1881_v34 = vadd.f32 %v6641_v14, %v6550_v17 }
 0x321   : > { %v4452_v56 = vpop.eup %4451  ;;  %2132 = vrot.lane.b32.xlu1 %v4450_v7, %s4575_s17  ;;  %v6646_v52 = vpop.f32.mrf.mxu0 }
 0x322   : > { %v4454_v0 = vpop.eup %4453  ;;  %v2005_v41 = vadd.f32 1.0, %v4452_v56  ;;  %v4118_v27 = vmul.f32 -1.442695, %v1881_v34  ;;  %v1880_v54 = vadd.f32 %v6550_v17, %v6646_v52 }
 0x323   : > { %v4456_v50 = vpop.eup %4455  ;;  %2138 = vrot.lane.b32.xlu0 %v4454_v0, %s4575_s17 }
 0x324   : > { %v4458_v29 = vpop.eup %4457  ;;  %4471 = vrcp.f32 %v2005_v41  ;;  %v2004_v42 = vadd.f32 1.0, %v4456_v50  ;;  %v4117_v11 = vmul.f32 -1.442695, %v1880_v54 }
 0x325   : > { %4473 = vpow2.f32 %v4118_v27  ;;  %2136 = vrot.lane.b32.xlu1 %v4458_v29, %s4575_s17 }
 0x326   : > { %v4460_v30 = vpop.eup %4459  ;;  %4475 = vrcp.f32 %v2004_v42 }
 0x327   : > { %4477 = vpow2.f32 %v4117_v11  ;;  %2142 = vrot.lane.b32.xlu0 %v4460_v30, %s4575_s17  ;;  %v6653_v2 = vpop.f32.mrf.mxu0 }
 0x328   : > { %v4462_v15 = vpop.eup %4461  ;;  %v1883_v28 = vadd.f32 %v6653_v2, %v6550_v17 }
 0x329   : > { %v4464_v57 = vpop.eup %4463  ;;  %2140 = vrot.lane.b32.xlu1 %v4462_v15, %s4575_s17  ;;  %v6658_v22 = vpop.f32.mrf.mxu0 }
 0x32a   : > { %v4466_v4 = vpop.eup %4465  ;;  %v2007_v40 = vadd.f32 1.0, %v4464_v57  ;;  %v4120_v10 = vmul.f32 -1.442695, %v1883_v28  ;;  %v1882_v55 = vadd.f32 %v6550_v17, %v6658_v22 }
 0x32b   : > { %v4468_v26 = vpop.eup %4467  ;;  %2146 = vrot.lane.b32.xlu0 %v4466_v4, %s4575_s17 }
 0x32c   : > { %v4470_v25 = vpop.eup %4469  ;;  %4479 = vrcp.f32 %v2007_v40  ;;  %v2006_v23 = vadd.f32 1.0, %v4468_v26  ;;  %v4119_v53 = vmul.f32 -1.442695, %v1882_v55 }
 0x32d   : > { %4481 = vpow2.f32 %v4120_v10  ;;  %2144 = vrot.lane.b32.xlu1 %v4470_v25, %s4575_s17 }
 0x32e   : > { %4483 = vrcp.f32 %v2006_v23 }
 0x32f   : > { %4485 = vpow2.f32 %v4119_v53  ;;  %v6664_v39 = vpop.f32.mrf.mxu0 }
 0x330   : > { %v1885_v36 = vadd.f32 %v6664_v39, %v6550_v17 }
 0x331   : > { %v4472_v60 = vpop.eup %4471  ;;  %v6668_v62 = vpop.f32.mrf.mxu0 }
 0x332   : > { %v4474_v18 = vpop.eup %4473  ;;  %v4122_v44 = vmul.f32 -1.442695, %v1885_v36  ;;  %v1884_v21 = vadd.f32 %v6550_v17, %v6668_v62  ;;  %2150 = vrot.lane.b32.xlu0 %v4472_v60, %s4575_s17 }
 0x333   : > { %v4476_v58 = vpop.eup %4475  ;;  %v2009_v12 = vadd.f32 1.0, %v4474_v18 }
 0x334   : > { %v4478_v45 = vpop.eup %4477  ;;  %4487 = vpow2.f32 %v4122_v44  ;;  %v4121_v35 = vmul.f32 -1.442695, %v1884_v21  ;;  %2148 = vrot.lane.b32.xlu1 %v4476_v58, %s4575_s17 }
 0x335   : > { %4489 = vrcp.f32 %v2009_v12  ;;  %v2008_v63 = vadd.f32 1.0, %v4478_v45 }
 0x336   : > { %4491 = vpow2.f32 %v4121_v35 }
 0x337   : > { %4493 = vrcp.f32 %v2008_v63  ;;  %v6674_v51 = vpop.f32.mrf.mxu0 }
 0x338   : > { %v1887_v31 = vadd.f32 %v6674_v51, %v6550_v17 }
 0x339   : > { %v4480_v37 = vpop.eup %4479  ;;  %v6678_v8 = vpop.f32.mrf.mxu0 }
 0x33a   : > { %v4482_v7 = vpop.eup %4481  ;;  %v4124_v34 = vmul.f32 -1.442695, %v1887_v31  ;;  %v1886_v56 = vadd.f32 %v6550_v17, %v6678_v8  ;;  %2154 = vrot.lane.b32.xlu0 %v4480_v37, %s4575_s17 }
 0x33b   : > { %v4484_v0 = vpop.eup %4483  ;;  %v2011_v41 = vadd.f32 1.0, %v4482_v7 }
 0x33c   : > { %v4486_v27 = vpop.eup %4485  ;;  %4495 = vpow2.f32 %v4124_v34  ;;  %v4123_v54 = vmul.f32 -1.442695, %v1886_v56  ;;  %2152 = vrot.lane.b32.xlu1 %v4484_v0, %s4575_s17 }
 0x33d   : > { %4497 = vrcp.f32 %v2011_v41  ;;  %v2010_v50 = vadd.f32 1.0, %v4486_v27 }
 0x33e   : > { %4499 = vpow2.f32 %v4123_v54 }
 0x33f   : > { %4501 = vrcp.f32 %v2010_v50  ;;  %v6684_v29 = vpop.f32.mrf.mxu0 }
 0x340   : > { %v1889_v42 = vadd.f32 %v6684_v29, %v6550_v17 }
 0x341   : > { %v4488_v11 = vpop.eup %4487  ;;  %v6688_v30 = vpop.f32.mrf.mxu0 }
 0x342   : > { %v4490_v15 = vpop.eup %4489  ;;  %v2013_v28 = vadd.f32 1.0, %v4488_v11  ;;  %v4126_v57 = vmul.f32 -1.442695, %v1889_v42  ;;  %v1888_v4 = vadd.f32 %v6550_v17, %v6688_v30  ;;  %v4576_v42 = vmov 0.0  }
 0x343   : > { %v4492_v40 = vpop.eup %4491  ;;  %2158 = vrot.lane.b32.xlu0 %v4490_v15, %s4575_s17  ;;  %v6708_v11 = vrot.slane %v4576_v42, 7 }
 0x344   : > { %v4494_v10 = vpop.eup %4493  ;;  %4503 = vrcp.f32 %v2013_v28  ;;  %v2012_v55 = vadd.f32 1.0, %v4492_v40  ;;  %v4125_v26 = vmul.f32 -1.442695, %v1888_v4 }
 0x345   : > { %4505 = vpow2.f32 %v4126_v57  ;;  %2156 = vrot.lane.b32.xlu1 %v4494_v10, %s4575_s17  ;;  %9025 = vst [vmem:[#allocation42_spill] sm:$0xff] %v6708_v11  ;;  %v6713_v28 = vsel %vm2277_vm12, 0.0, %v6708_v11  ;;  %v6717_v57 = vsel %vm2277_vm12, %v6708_v11, 0.0  ;;  %v2444_v10 = vrot.slane %v6708_v11, 1 }
 0x346   : > { %4507 = vrcp.f32 %v2012_v55  ;;  %9026 = vst [vmem:[#allocation74_spill] sm:$0xff] %v6713_v28  ;;  %v2443_v40 = vrot.slane %v6713_v28, 1  ;;  %v2446_v55 = vrot.slane %v6717_v57, 1 }
 0x347   : > { %4509 = vpow2.f32 %v4125_v26  ;;  %v6694_v25 = vpop.f32.mrf.mxu0 }
 0x348   : > { %v1891_v23 = vadd.f32 %v6694_v25, %v6550_v17 }
 0x349   : > { %v4496_v53 = vpop.eup %4495  ;;  %v6698_v36 = vpop.f32.mrf.mxu0 }
 0x34a   : > { %v4498_v60 = vpop.eup %4497  ;;  %v2015_v18 = vadd.f32 1.0, %v4496_v53  ;;  %v4128_v44 = vmul.f32 -1.442695, %v1891_v23  ;;  %v1890_v21 = vadd.f32 %v6550_v17, %v6698_v36  ;;  %v2445_v23 = vsel %vm300_vm0, %v2443_v40, %v2444_v10 }
 0x34b   : > { %v4500_v58 = vpop.eup %4499  ;;  %2162 = vrot.lane.b32.xlu0 %v4498_v60, %s4575_s17  ;;  %v2447_v53 = vsel %vm300_vm0, %v2444_v10, %v2446_v55 }
 0x34c   : > { %v4502_v12 = vpop.eup %4501  ;;  %4511 = vrcp.f32 %v2015_v18  ;;  %v2014_v45 = vadd.f32 1.0, %v4500_v58  ;;  %v4127_v35 = vmul.f32 -1.442695, %v1890_v21  ;;  %v6727_v18 = vpack.i.bf16 %v2447_v53, %v2445_v23 }
 0x34d   : > { %4513 = vpow2.f32 %v4128_v44  ;;  %2160 = vrot.lane.b32.xlu1 %v4502_v12, %s4575_s17 }
 0x34e   : > { %4515 = vrcp.f32 %v2014_v45  ;;  %9027 = vst [vmem:[#allocation75_spill] sm:$0xff] %v6727_v18 }
 0x34f   : > { %4517 = vpow2.f32 %v4127_v35 }
 0x351   : > { %v4504_v63 = vpop.eup %4503 }
 0x352   : > { %v4506_v31 = vpop.eup %4505  ;;  %2166 = vrot.lane.b32.xlu0 %v4504_v63, %s4575_s17 }
 0x353   : > { %v4508_v37 = vpop.eup %4507  ;;  %v2017_v7 = vadd.f32 1.0, %v4506_v31 }
 0x354   : > { %v4510_v34 = vpop.eup %4509  ;;  %2164 = vrot.lane.b32.xlu1 %v4508_v37, %s4575_s17 }
 0x355   : > { %4519 = vrcp.f32 %v2017_v7  ;;  %v2016_v17 = vadd.f32 1.0, %v4510_v34 }
 0x357   : > { %4521 = vrcp.f32 %v2016_v17 }
 0x359   : > { %v4512_v56 = vpop.eup %4511 }
 0x35a   : > { %v4514_v0 = vpop.eup %4513  ;;  %2170 = vrot.lane.b32.xlu0 %v4512_v56, %s4575_s17 }
 0x35b   : > { %v4516_v41 = vpop.eup %4515  ;;  %v2019_v27 = vadd.f32 1.0, %v4514_v0 }
 0x35c   : > { %v4518_v54 = vpop.eup %4517  ;;  %2168 = vrot.lane.b32.xlu1 %v4516_v41, %s4575_s17 }
 0x35d   : > { %4523 = vrcp.f32 %v2019_v27  ;;  %v2018_v50 = vadd.f32 1.0, %v4518_v54 }
 0x35f   : > { %4525 = vrcp.f32 %v2018_v50 }
 0x362   : > { %v4520_v15 = vpop.eup %4519 }
 0x363   : > { %2174 = vrot.lane.b32.xlu0 %v4520_v15, %s4575_s17 }
 0x364   : > { %v4522_v4 = vpop.eup %4521 }
 0x365   : > { %2172 = vrot.lane.b32.xlu1 %v4522_v4, %s4575_s17 }
 0x36a   : > { %v4524_v26 = vpop.eup %4523 }
 0x36b   : > { %2178 = vrot.lane.b32.xlu0 %v4524_v26, %s4575_s17 }
 0x36c   : > { %v4526_v60 = vpop.eup %4525 }
 0x36d   : > { %2176 = vrot.lane.b32.xlu1 %v4526_v60, %s4575_s17 }
 0x371   : > { %4375 = vrot.lane.b32.xlu1 %v6727_v18, %s4567_s21 }
 0x381   : > { %v2119_v44 = vpop.permute.xlu0 %2118 }
 0x382   : > { %v2213_v21 = vmul.f32 %v6552_v46, %v2119_v44  ;;  %v2117_v58 = vpop.permute.xlu1 %2116 }
 0x383   : > { %v2212_v12 = vmul.f32 %v2117_v58, %v6556_v61 }
 0x384   : > { %v2281_v45 = vrot.slane %v2213_v21, 7 }
 0x385   : > { %v2280_v35 = vrot.slane %v2212_v12, 7  ;;  %v2123_v63 = vpop.permute.xlu0 %2122 }
 0x386   : > { %v6734_v31 = vsel %vm2277_vm12, %v2281_v45, 0.0  ;;  %v2215_v37 = vmul.f32 %v6560_v5, %v2123_v63  ;;  %v2121_v7 = vpop.permute.xlu1 %2120 }
 0x387   : > { %v2451_v34 = vrot.slane %v6734_v31, 1  ;;  %v6739_v17 = vsel %vm2277_vm12, %v2280_v35, %v2281_v45  ;;  %v6742_v56 = vsel %vm2277_vm12, 0.0, %v2280_v35  ;;  %v2214_v61 = vmul.f32 %v2121_v7, %v6564_v19 }
 0x388   : > { %v2284_v46 = vrot.slane %v2215_v37, 7  ;;  %v2449_v0 = vrot.slane %v6739_v17, 1  ;;  %v2448_v41 = vrot.slane %v6742_v56, 1 }
 0x389   : > { %v2127_v27 = vpop.permute.xlu0 %2126  ;;  %v2283_v54 = vrot.slane %v2214_v61, 7 }
 0x38a   : > { %v2217_v5 = vmul.f32 %v6568_v3, %v2127_v27  ;;  %v2125_v50 = vpop.permute.xlu1 %2124  ;;  %v6749_v42 = vsel %vm300_vm0, %v2449_v0, %v2451_v34  ;;  %v6752_v15 = vsel %vm2277_vm12, %v2284_v46, 0.0  ;;  %v6758_v19 = vsel %vm300_vm0, %v2448_v41, %v2449_v0 }
 0x38b   : > { %v2216_v4 = vmul.f32 %v2125_v50, %v6572_v20  ;;  %2529 = vrot.lane.b32.xlu1 %v6749_v42, %s4567_s21  ;;  %v6761_v40 = vsel %vm2277_vm12, %v2283_v54, %v2284_v46  ;;  %v6764_v3 = vsel %vm2277_vm12, 0.0, %v2283_v54  ;;  %2527 = vrot.lane.b32.xlu0 %v6758_v19, %s4567_s21  ;;  %v2456_v53 = vrot.slane %v6752_v15, 1 }
 0x38c   : > { %v2287_v10 = vrot.slane %v2217_v5, 7  ;;  %v2454_v20 = vrot.slane %v6761_v40, 1  ;;  %v2453_v23 = vrot.slane %v6764_v3, 1 }
 0x38d   : > { %v2286_v55 = vrot.slane %v2216_v4, 7  ;;  %v2131_v26 = vpop.permute.xlu0 %2130 }
 0x38e   : > { %v6772_v60 = vsel %vm2277_vm12, %v2287_v10, 0.0  ;;  %v2219_v44 = vmul.f32 %v6576_v48, %v2131_v26  ;;  %v2129_v21 = vpop.permute.xlu1 %2128  ;;  %v6783_v63 = vsel %vm300_vm0, %v2454_v20, %v2456_v53  ;;  %v6786_v37 = vsel %vm300_vm0, %v2453_v23, %v2454_v20 }
 0x38f   : > { %v6776_v58 = vsel %vm2277_vm12, %v2286_v55, %v2287_v10  ;;  %v6779_v12 = vsel %vm2277_vm12, 0.0, %v2286_v55  ;;  %v2218_v35 = vmul.f32 %v2129_v21, %v6580_v16  ;;  %v2461_v7 = vrot.slane %v6772_v60, 1  ;;  %2533 = vrot.lane.b32.xlu1 %v6783_v63, %s4567_s21  ;;  %2531 = vrot.lane.b32.xlu0 %v6786_v37, %s4567_s21 }
 0x390   : > { %v2290_v45 = vrot.slane %v2219_v44, 7  ;;  %v2459_v34 = vrot.slane %v6776_v58, 1  ;;  %v2458_v46 = vrot.slane %v6779_v12, 1 }
 0x391   : > { %v2135_v48 = vpop.permute.xlu0 %2134  ;;  %v2289_v61 = vrot.slane %v2218_v35, 7 }
 0x392   : > { %v6796_v16 = vsel %vm2277_vm12, %v2290_v45, 0.0  ;;  %v2221_v0 = vmul.f32 %v6584_v1, %v2135_v48  ;;  %v6800_v27 = vsel %vm300_vm0, %v2459_v34, %v2461_v7  ;;  %v6803_v54 = vsel %vm300_vm0, %v2458_v46, %v2459_v34 }
 0x393   : > { %v2133_v41 = vpop.permute.xlu1 %2132  ;;  %9028 = vst [vmem:[#allocation105_spill] sm:$0xff] %v6800_v27  ;;  %9029 = vst [vmem:[#allocation40_spill] sm:$0xff] %v6803_v54  ;;  %v6806_v5 = vsel %vm2277_vm12, %v2289_v61, %v2290_v45  ;;  %v6809_v50 = vsel %vm2277_vm12, 0.0, %v2289_v61  ;;  %v2466_v55 = vrot.slane %v6796_v16, 1  ;;  %2537 = vrot.lane.b32.xlu1 %v6800_v27, %s4567_s21  ;;  %2535 = vrot.lane.b32.xlu0 %v6803_v54, %s4567_s21  ;;  %v2619_v54 = vrot.slane %v6713_v28, 2 }
 0x394   : > { %v2293_v4 = vrot.slane %v2221_v0, 7  ;;  %v2220_v10 = vmul.f32 %v2133_v41, %v6588_v13  ;;  %v2464_v26 = vrot.slane %v6806_v5, 1  ;;  %v2463_v20 = vrot.slane %v6809_v50, 1 }
 0x395   : > { %v2139_v1 = vpop.permute.xlu0 %2138 }
 0x396   : > { %v6820_v23 = vsel %vm2277_vm12, %v2293_v4, 0.0  ;;  %v2292_v53 = vrot.slane %v2220_v10, 7  ;;  %v2223_v44 = vmul.f32 %v6592_v6, %v2139_v1  ;;  %v6824_v21 = vsel %vm300_vm0, %v2464_v26, %v2466_v55 }
 0x397   : > { %v2137_v13 = vpop.permute.xlu1 %2136  ;;  %9030 = vst [vmem:[#allocation106_spill] sm:$0xff] %v6824_v21  ;;  %v6827_v45 = vsel %vm300_vm0, %v2463_v20, %v2464_v26  ;;  %v2471_v46 = vrot.slane %v6820_v23, 1  ;;  %2541 = vrot.lane.b32.xlu1 %v6824_v21, %s4567_s21  ;;  %v2647_v28 = vrot.slane %v6820_v23, 2 }
 0x398   : > { %9031 = vst [vmem:[#allocation41_spill] sm:$0xff] %v6827_v45  ;;  %v6830_v35 = vsel %vm2277_vm12, %v2292_v53, %v2293_v4  ;;  %v6833_v7 = vsel %vm2277_vm12, 0.0, %v2292_v53  ;;  %v2296_v48 = vrot.slane %v2223_v44, 7  ;;  %v2222_v34 = vmul.f32 %v2137_v13, %v6596_v43  ;;  %2539 = vrot.lane.b32.xlu0 %v6827_v45, %s4567_s21 }
 0x399   : > { %9032 = vst [vmem:[#allocation43_spill] sm:$0xff] %v6830_v35  ;;  %9033 = vst [vmem:[#allocation132_spill] sm:$0xff] %v6833_v7  ;;  %v2143_v6 = vpop.permute.xlu0 %2142  ;;  %v2469_v61 = vrot.slane %v6830_v35, 1  ;;  %v2468_v0 = vrot.slane %v6833_v7, 1 }
 0x39a   : > { %v6844_v41 = vsel %vm2277_vm12, %v2296_v48, 0.0  ;;  %v2295_v4 = vrot.slane %v2222_v34, 7  ;;  %v2225_v10 = vmul.f32 %v6600_v33, %v2143_v6 }
 0x39b   : > { %v2141_v43 = vpop.permute.xlu1 %2140  ;;  %v6848_v55 = vsel %vm300_vm0, %v2469_v61, %v2471_v46  ;;  %v6851_v1 = vsel %vm300_vm0, %v2468_v0, %v2469_v61  ;;  %v2476_v13 = vrot.slane %v6844_v41, 1 }
 0x39c   : > { %9034 = vst [vmem:[#allocation76_spill] sm:$0xff] %v6848_v55  ;;  %9035 = vst [vmem:[#allocation77_spill] sm:$0xff] %v6851_v1  ;;  %v6854_v26 = vsel %vm2277_vm12, %v2295_v4, %v2296_v48  ;;  %v6857_v20 = vsel %vm2277_vm12, 0.0, %v2295_v4  ;;  %v2299_v53 = vrot.slane %v2225_v10, 7  ;;  %v2224_v44 = vmul.f32 %v2141_v43, %v6604_v38  ;;  %2545 = vrot.lane.b32.xlu1 %v6848_v55, %s4567_s21 }
 0x39d   : > { %9036 = vst [vmem:[#allocation107_spill] sm:$0xff] %v6854_v26  ;;  %9037 = vst [vmem:[#allocation108_spill] sm:$0xff] %v6857_v20  ;;  %2543 = vrot.lane.b32.xlu0 %v6851_v1, %s4567_s21  ;;  %v2147_v33 = vpop.permute.xlu0 %2146  ;;  %v2474_v34 = vrot.slane %v6854_v26, 1  ;;  %v2473_v48 = vrot.slane %v6857_v20, 1 }
 0x39e   : > { %v6868_v46 = vsel %vm2277_vm12, %v2299_v53, 0.0  ;;  %v2298_v6 = vrot.slane %v2224_v44, 7  ;;  %v2227_v61 = vmul.f32 %v6608_v24, %v2147_v33 }
 0x39f   : > { %v2145_v38 = vpop.permute.xlu1 %2144  ;;  %v6872_v0 = vsel %vm300_vm0, %v2474_v34, %v2476_v13  ;;  %v6875_v4 = vsel %vm300_vm0, %v2473_v48, %v2474_v34  ;;  %v2481_v44 = vrot.slane %v6868_v46, 1 }
 0x3a0   : > { %9038 = vst [vmem:[#allocation133_spill] sm:$0xff] %v6872_v0  ;;  %9039 = vst [vmem:[#allocation46_spill] sm:$0xff] %v6875_v4  ;;  %v6878_v10 = vsel %vm2277_vm12, %v2298_v6, %v2299_v53  ;;  %v6881_v43 = vsel %vm2277_vm12, 0.0, %v2298_v6  ;;  %v2302_v18 = vrot.slane %v2227_v61, 7  ;;  %v2226_v55 = vmul.f32 %v2145_v38, %v6612_v32  ;;  %2549 = vrot.lane.b32.xlu1 %v6872_v0, %s4567_s21 }
 0x3a1   : > { %9040 = vst [vmem:[#allocation134_spill] sm:$0xff] %v6878_v10  ;;  %9041 = vst [vmem:[#allocation47_spill] sm:$0xff] %v6881_v43  ;;  %2547 = vrot.lane.b32.xlu0 %v6875_v4, %s4567_s21  ;;  %v2479_v24 = vrot.slane %v6878_v10, 1  ;;  %v2478_v13 = vrot.slane %v6881_v43, 1 }
 0x3a2   : > { %v6892_v53 = vsel %vm2277_vm12, %v2302_v18, 0.0  ;;  %v2301_v33 = vrot.slane %v2226_v55, 7 }
 0x3a3   : > { %v6895_v34 = vsel %vm300_vm0, %v2479_v24, %v2481_v44  ;;  %v6898_v32 = vsel %vm300_vm0, %v2478_v13, %v2479_v24  ;;  %v2486_v38 = vrot.slane %v6892_v53, 1 }
 0x3a4   : > { %9042 = vst [vmem:[#allocation78_spill] sm:$0xff] %v6895_v34  ;;  %9043 = vst [vmem:[#allocation79_spill] sm:$0xff] %v6898_v32  ;;  %v6901_v48 = vsel %vm2277_vm12, %v2301_v33, %v2302_v18  ;;  %v6904_v6 = vsel %vm2277_vm12, 0.0, %v2301_v33  ;;  %v2151_v61 = vpop.permute.xlu0 %2150  ;;  %2553 = vrot.lane.b32.xlu1 %v6895_v34, %s4567_s21 }
 0x3a5   : > { %2551 = vrot.lane.b32.xlu0 %v6898_v32, %s4567_s21  ;;  %v2229_v55 = vmul.f32 %v6617_v59, %v2151_v61  ;;  %v2484_v44 = vrot.slane %v6901_v48, 1  ;;  %v2483_v24 = vrot.slane %v6904_v6, 1 }
 0x3a6   : > { %v2149_v18 = vpop.permute.xlu1 %2148 }
 0x3a7   : > { %v2305_v13 = vrot.slane %v2229_v55, 7  ;;  %v2228_v33 = vmul.f32 %v2149_v18, %v6622_v49  ;;  %v6916_v0 = vsel %vm300_vm0, %v2484_v44, %v2486_v38  ;;  %v6919_v4 = vsel %vm300_vm0, %v2483_v24, %v2484_v44 }
 0x3a8   : > { %9044 = vst [vmem:[#allocation110_spill] sm:$0xff] %v6916_v0  ;;  %9045 = vst [vmem:[#allocation112_spill] sm:$0xff] %v6919_v4  ;;  %2557 = vrot.lane.b32.xlu1 %v6916_v0, %s4567_s21 }
 0x3a9   : > { %v6922_v34 = vsel %vm2277_vm12, %v2305_v13, 0.0  ;;  %v2304_v32 = vrot.slane %v2228_v33, 7  ;;  %2555 = vrot.lane.b32.xlu0 %v6919_v4, %s4567_s21 }
 0x3aa   : > { %v2491_v61 = vrot.slane %v6922_v34, 1 }
 0x3ab   : > { %v6929_v59 = vsel %vm2277_vm12, %v2304_v32, %v2305_v13  ;;  %v6932_v49 = vsel %vm2277_vm12, 0.0, %v2304_v32 }
 0x3ac   : > { %v2155_v38 = vpop.permute.xlu0 %2154  ;;  %v2489_v55 = vrot.slane %v6929_v59, 1  ;;  %v2488_v44 = vrot.slane %v6932_v49, 1 }
 0x3ad   : > { %v2231_v24 = vmul.f32 %v6629_v47, %v2155_v38 }
 0x3ae   : > { %v2153_v18 = vpop.permute.xlu1 %2152  ;;  %v6939_v33 = vsel %vm300_vm0, %v2489_v55, %v2491_v61  ;;  %v6942_v0 = vsel %vm300_vm0, %v2488_v44, %v2489_v55 }
 0x3af   : > { %9046 = vst [vmem:[#allocation48_spill] sm:$0xff] %v6939_v33  ;;  %9047 = vst [vmem:[#allocation49_spill] sm:$0xff] %v6942_v0  ;;  %v2308_v13 = vrot.slane %v2231_v24, 7  ;;  %v2230_v32 = vmul.f32 %v2153_v18, %v6634_v9  ;;  %2561 = vrot.lane.b32.xlu1 %v6939_v33, %s4567_s21  ;;  %2559 = vrot.lane.b32.xlu0 %v6942_v0, %s4567_s21 }
 0x3b1   : > { %v6950_v4 = vsel %vm2277_vm12, %v2308_v13, 0.0  ;;  %v2307_v47 = vrot.slane %v2230_v32, 7 }
 0x3b2   : > { %v2496_v55 = vrot.slane %v6950_v4, 1 }
 0x3b3   : > { %v6953_v38 = vsel %vm2277_vm12, %v2307_v47, %v2308_v13  ;;  %v6956_v61 = vsel %vm2277_vm12, 0.0, %v2307_v47 }
 0x3b4   : > { %v2494_v9 = vrot.slane %v6953_v38, 1  ;;  %v2493_v44 = vrot.slane %v6956_v61, 1 }
 0x3b5   : > { %v2159_v24 = vpop.permute.xlu0 %2158 }
 0x3b6   : > { %v2233_v18 = vmul.f32 %v6641_v14, %v2159_v24  ;;  %v6963_v33 = vsel %vm300_vm0, %v2494_v9, %v2496_v55  ;;  %v6966_v32 = vsel %vm300_vm0, %v2493_v44, %v2494_v9 }
 0x3b7   : > { %9048 = vst [vmem:[#allocation80_spill] sm:$0xff] %v6963_v33  ;;  %9049 = vst [vmem:[#allocation81_spill] sm:$0xff] %v6966_v32  ;;  %v2157_v13 = vpop.permute.xlu1 %2156  ;;  %2565 = vrot.lane.b32.xlu1 %v6963_v33, %s4567_s21  ;;  %2563 = vrot.lane.b32.xlu0 %v6966_v32, %s4567_s21 }
 0x3b8   : > { %v2311_v47 = vrot.slane %v2233_v18, 7  ;;  %v2232_v0 = vmul.f32 %v2157_v13, %v6646_v52 }
 0x3ba   : > { %v6974_v1 = vsel %vm2277_vm12, %v2311_v47, 0.0  ;;  %v2310_v14 = vrot.slane %v2232_v0, 7 }
 0x3bb   : > { %v2501_v44 = vrot.slane %v6974_v1, 1 }
 0x3bc   : > { %v6977_v55 = vsel %vm2277_vm12, %v2310_v14, %v2311_v47  ;;  %v6980_v9 = vsel %vm2277_vm12, 0.0, %v2310_v14 }
 0x3bd   : > { %v2163_v24 = vpop.permute.xlu0 %2162  ;;  %v2499_v33 = vrot.slane %v6977_v55, 1  ;;  %v2498_v32 = vrot.slane %v6980_v9, 1 }
 0x3be   : > { %v2235_v18 = vmul.f32 %v6653_v2, %v2163_v24 }
 0x3bf   : > { %v2161_v52 = vpop.permute.xlu1 %2160  ;;  %v6987_v13 = vsel %vm300_vm0, %v2499_v33, %v2501_v44  ;;  %v6990_v0 = vsel %vm300_vm0, %v2498_v32, %v2499_v33 }
 0x3c0   : > { %9050 = vst [vmem:[#allocation113_spill] sm:$0xff] %v6987_v13  ;;  %9051 = vst [vmem:[#allocation114_spill] sm:$0xff] %v6990_v0  ;;  %v2314_v47 = vrot.slane %v2235_v18, 7  ;;  %v2234_v14 = vmul.f32 %v2161_v52, %v6658_v22  ;;  %2569 = vrot.lane.b32.xlu1 %v6987_v13, %s4567_s21  ;;  %2567 = vrot.lane.b32.xlu0 %v6990_v0, %s4567_s21 }
 0x3c2   : > { %v6998_v21 = vsel %vm2277_vm12, %v2314_v47, 0.0  ;;  %v2313_v2 = vrot.slane %v2234_v14, 7 }
 0x3c3   : > { %v2506_v32 = vrot.slane %v6998_v21, 1 }
 0x3c4   : > { %v7001_v24 = vsel %vm2277_vm12, %v2313_v2, %v2314_v47  ;;  %v7004_v44 = vsel %vm2277_vm12, 0.0, %v2313_v2  ;;  %v2167_v33 = vpop.permute.xlu0 %2166 }
 0x3c5   : > { %v2237_v22 = vmul.f32 %v6664_v39, %v2167_v33  ;;  %v2504_v18 = vrot.slane %v7001_v24, 1  ;;  %v2503_v52 = vrot.slane %v7004_v44, 1 }
 0x3c6   : > { %v2165_v13 = vpop.permute.xlu1 %2164 }
 0x3c7   : > { %v2317_v0 = vrot.slane %v2237_v22, 7  ;;  %v2236_v45 = vmul.f32 %v2165_v13, %v6668_v62  ;;  %v7012_v14 = vsel %vm300_vm0, %v2504_v18, %v2506_v32  ;;  %v7015_v47 = vsel %vm300_vm0, %v2503_v52, %v2504_v18 }
 0x3c8   : > { %9052 = vst [vmem:[#allocation50_spill] sm:$0xff] %v7012_v14  ;;  %9053 = vst [vmem:[#allocation135_spill] sm:$0xff] %v7015_v47  ;;  %2573 = vrot.lane.b32.xlu1 %v7012_v14, %s4567_s21  ;;  %2571 = vrot.lane.b32.xlu0 %v7015_v47, %s4567_s21 }
 0x3c9   : > { %v7022_v39 = vsel %vm2277_vm12, %v2317_v0, 0.0  ;;  %v2316_v2 = vrot.slane %v2236_v45, 7 }
 0x3ca   : > { %v2511_v13 = vrot.slane %v7022_v39, 1 }
 0x3cb   : > { %v7025_v33 = vsel %vm2277_vm12, %v2316_v2, %v2317_v0  ;;  %v7028_v62 = vsel %vm2277_vm12, 0.0, %v2316_v2 }
 0x3cc   : > { %9054 = vst [vmem:[#allocation51_spill] sm:$0xff] %v7025_v33  ;;  %9055 = vst [vmem:[#allocation82_spill] sm:$0xff] %v7028_v62  ;;  %v2171_v32 = vpop.permute.xlu0 %2170  ;;  %v2509_v22 = vrot.slane %v7025_v33, 1  ;;  %v2508_v18 = vrot.slane %v7028_v62, 1 }
 0x3cd   : > { %v2239_v52 = vmul.f32 %v6674_v51, %v2171_v32 }
 0x3ce   : > { %v2169_v14 = vpop.permute.xlu1 %2168  ;;  %v7035_v47 = vsel %vm300_vm0, %v2509_v22, %v2511_v13  ;;  %v7038_v45 = vsel %vm300_vm0, %v2508_v18, %v2509_v22 }
 0x3cf   : > { %9056 = vst [vmem:[#allocation83_spill] sm:$0xff] %v7035_v47  ;;  %9057 = vst [vmem:[#allocation115_spill] sm:$0xff] %v7038_v45  ;;  %v2320_v0 = vrot.slane %v2239_v52, 7  ;;  %v2238_v2 = vmul.f32 %v2169_v14, %v6678_v8  ;;  %2577 = vrot.lane.b32.xlu1 %v7035_v47, %s4567_s21  ;;  %2575 = vrot.lane.b32.xlu0 %v7038_v45, %s4567_s21 }
 0x3d1   : > { %v7046_v27 = vsel %vm2277_vm12, %v2320_v0, 0.0  ;;  %v2319_v51 = vrot.slane %v2238_v2, 7 }
 0x3d2   : > { %v2516_v22 = vrot.slane %v7046_v27, 1 }
 0x3d3   : > { %v7049_v32 = vsel %vm2277_vm12, %v2319_v51, %v2320_v0  ;;  %v7052_v13 = vsel %vm2277_vm12, 0.0, %v2319_v51 }
 0x3d4   : > { %9058 = vst [vmem:[#allocation116_spill] sm:$0xff] %v7049_v32  ;;  %9059 = vst [vmem:[#allocation52_spill] sm:$0xff] %v7052_v13  ;;  %v2514_v8 = vrot.slane %v7049_v32, 1  ;;  %v2513_v14 = vrot.slane %v7052_v13, 1 }
 0x3d5   : > { %v2175_v18 = vpop.permute.xlu0 %2174 }
 0x3d6   : > { %v2241_v52 = vmul.f32 %v6684_v29, %v2175_v18  ;;  %v7059_v47 = vsel %vm300_vm0, %v2514_v8, %v2516_v22  ;;  %v7062_v2 = vsel %vm300_vm0, %v2513_v14, %v2514_v8  ;;  %v2620_v29 = vrot.slane %v6708_v11, 2 }
 0x3d7   : > { %9060 = vst [vmem:[#allocation53_spill] sm:$0xff] %v7059_v47  ;;  %9061 = vst [vmem:[#allocation84_spill] sm:$0xff] %v7062_v2  ;;  %v2173_v0 = vpop.permute.xlu1 %2172  ;;  %2581 = vrot.lane.b32.xlu1 %v7059_v47, %s4567_s21  ;;  %2579 = vrot.lane.b32.xlu0 %v7062_v2, %s4567_s21  ;;  %v2622_v22 = vrot.slane %v6717_v57, 2 }
 0x3d8   : > { %v2323_v51 = vrot.slane %v2241_v52, 7  ;;  %v2240_v45 = vmul.f32 %v2173_v0, %v6688_v30  ;;  %v2621_v52 = vsel %vm477_vm1, %v2619_v54, %v2620_v29 }
 0x3d9   : > { %v2623_v57 = vsel %vm477_vm1, %v2620_v29, %v2622_v22  ;;  %v2629_v22 = vrot.slane %v6764_v3, 2 }
 0x3da   : > { %v7073_v18 = vsel %vm2277_vm12, %v2323_v51, 0.0  ;;  %v2322_v8 = vrot.slane %v2240_v45, 7  ;;  %v7098_v54 = vpack.i.bf16 %v2623_v57, %v2621_v52  ;;  %v2634_v57 = vrot.slane %v6779_v12, 2 }
 0x3db   : > { %v2521_v30 = vrot.slane %v7073_v18, 1 }
 0x3dc   : > { %v7076_v14 = vsel %vm2277_vm12, %v2322_v8, %v2323_v51  ;;  %v7079_v47 = vsel %vm2277_vm12, 0.0, %v2322_v8  ;;  %v2624_v51 = vrot.slane %v6742_v56, 2  ;;  %v2625_v8 = vrot.slane %v6739_v17, 2  ;;  %9066 = vst [vmem:[#allocation55_spill] sm:$0xff] %v7098_v54 }
 0x3dd   : > { %9062 = vst [vmem:[#allocation85_spill] sm:$0xff] %v7076_v14  ;;  %9063 = vst [vmem:[#allocation117_spill] sm:$0xff] %v7079_v47  ;;  %v2519_v0 = vrot.slane %v7076_v14, 1  ;;  %v2518_v2 = vrot.slane %v7079_v47, 1 }
 0x3de   : > { %v7101_v29 = vsel %vm477_vm1, %v2624_v51, %v2625_v8  ;;  %v2635_v51 = vrot.slane %v6776_v58, 2 }
 0x3df   : > { %v7087_v11 = vsel %vm300_vm0, %v2519_v0, %v2521_v30  ;;  %v7090_v45 = vsel %vm300_vm0, %v2518_v2, %v2519_v0  ;;  %v2630_v2 = vrot.slane %v6761_v40, 2  ;;  %v2627_v30 = vrot.slane %v6734_v31, 2 }
 0x3e0   : > { %9064 = vst [vmem:[#allocation118_spill] sm:$0xff] %v7087_v11  ;;  %9065 = vst [vmem:[#allocation54_spill] sm:$0xff] %v7090_v45  ;;  %2585 = vrot.lane.b32.xlu1 %v7087_v11, %s4567_s21  ;;  %2583 = vrot.lane.b32.xlu0 %v7090_v45, %s4567_s21  ;;  %v7124_v31 = vsel %vm477_vm1, %v2634_v57, %v2635_v51  ;;  %v2637_v11 = vrot.slane %v6772_v60, 2  ;;  %v2642_v45 = vrot.slane %v6796_v16, 2 }
 0x3e1   : > { %v7111_v0 = vsel %vm477_vm1, %v2629_v22, %v2630_v2  ;;  %v7114_v52 = vsel %vm477_vm1, %v2625_v8, %v2627_v30  ;;  %v2639_v8 = vrot.slane %v6809_v50, 2  ;;  %v2640_v30 = vrot.slane %v6806_v5, 2 }
 0x3e2   : > { %v7140_v57 = vsel %vm477_vm1, %v2635_v51, %v2637_v11  ;;  %v2649_v11 = vrot.slane %v6857_v20, 2  ;;  %v2650_v51 = vrot.slane %v6854_v26, 2 }
 0x3e4   : > { %2703 = vrot.lane.b32.xlu1 %v7101_v29, %s4568_s22  ;;  %4380 = vrot.lane.b32.xlu0 %v7098_v54, %s4568_s22  ;;  %v2632_v54 = vrot.slane %v6752_v15, 2  ;;  %v7137_v15 = vsel %vm477_vm1, %v2639_v8, %v2640_v30  ;;  %v7153_v8 = vsel %vm477_vm1, %v2640_v30, %v2642_v45  ;;  %v7163_v16 = vsel %vm477_vm1, %v2649_v11, %v2650_v51 }
 0x3e5   : > { %9068 = vst [vmem:[#allocation86_spill] sm:$0xff] %v7163_v16  ;;  %v2654_v45 = vrot.slane %v6881_v43, 2  ;;  %v2655_v30 = vrot.slane %v6878_v10, 2 }
 0x3e6   : > { %v7127_v22 = vsel %vm477_vm1, %v2630_v2, %v2632_v54  ;;  %v2644_v54 = vrot.slane %v6833_v7, 2  ;;  %v2645_v2 = vrot.slane %v6830_v35, 2 }
 0x3e7   : > { %v7176_v23 = vsel %vm477_vm1, %v2654_v45, %v2655_v30 }
 0x3e8   : > { %2707 = vrot.lane.b32.xlu1 %v7111_v0, %s4568_s22  ;;  %2705 = vrot.lane.b32.xlu0 %v7114_v52, %s4568_s22  ;;  %v7150_v60 = vsel %vm477_vm1, %v2644_v54, %v2645_v2  ;;  %v7166_v54 = vsel %vm477_vm1, %v2645_v2, %v2647_v28  ;;  %9070 = vst [vmem:[#allocation119_spill] sm:$0xff] %v7176_v23  ;;  %v2659_v28 = vrot.slane %v6904_v6, 2  ;;  %v2660_v2 = vrot.slane %v6901_v48, 2 }
 0x3e9   : > { %9067 = vst [vmem:[#allocation2_spill] sm:$0xff] %v7150_v60  ;;  %9069 = vst [vmem:[#allocation27_spill] sm:$0xff] %v7166_v54 }
 0x3ec   : > { %2711 = vrot.lane.b32.xlu1 %v7124_v31, %s4568_s22  ;;  %2709 = vrot.lane.b32.xlu0 %v7127_v22, %s4568_s22 }
 0x3f0   : > { %2715 = vrot.lane.b32.xlu1 %v7137_v15, %s4568_s22  ;;  %2713 = vrot.lane.b32.xlu0 %v7140_v57, %s4568_s22 }
 0x3f4   : > { %2719 = vrot.lane.b32.xlu1 %v7150_v60, %s4568_s22  ;;  %2717 = vrot.lane.b32.xlu0 %v7153_v8, %s4568_s22  ;;  %v2652_v60 = vrot.slane %v6844_v41, 2  ;;  %v7189_v41 = vsel %vm477_vm1, %v2659_v28, %v2660_v2  ;;  %v2670_v28 = vrot.slane %v6953_v38, 2 }
 0x3f5   : > { %9072 = vst [vmem:[#allocation57_spill] sm:$0xff] %v7189_v41 }
 0x3f6   : > { %v7179_v11 = vsel %vm477_vm1, %v2650_v51, %v2652_v60  ;;  %v2664_v60 = vrot.slane %v6932_v49, 2  ;;  %v2665_v51 = vrot.slane %v6929_v59, 2 }
 0x3f7   : > { %9071 = vst [vmem:[#allocation56_spill] sm:$0xff] %v7179_v11 }
 0x3f8   : > { %2723 = vrot.lane.b32.xlu1 %v7163_v16, %s4568_s22  ;;  %2721 = vrot.lane.b32.xlu0 %v7166_v54, %s4568_s22  ;;  %v2657_v16 = vrot.slane %v6868_v46, 2  ;;  %v7204_v46 = vsel %vm477_vm1, %v2664_v60, %v2665_v51  ;;  %v7226_v54 = vpop.permute.xlu0 %2178 }
 0x3f9   : > { %9074 = vst [vmem:[#allocation88_spill] sm:$0xff] %v7204_v46 }
 0x3fa   : > { %v7192_v45 = vsel %vm477_vm1, %v2655_v30, %v2657_v16  ;;  %v2669_v30 = vrot.slane %v6956_v61, 2 }
 0x3fb   : > { %9073 = vst [vmem:[#allocation87_spill] sm:$0xff] %v7192_v45 }
 0x3fc   : > { %2727 = vrot.lane.b32.xlu1 %v7176_v23, %s4568_s22  ;;  %2725 = vrot.lane.b32.xlu0 %v7179_v11, %s4568_s22  ;;  %v2662_v23 = vrot.slane %v6892_v53, 2  ;;  %v7201_v11 = vpop.permute.xlu1 %2176  ;;  %v2667_v53 = vrot.slane %v6922_v34, 2  ;;  %v7219_v60 = vsel %vm477_vm1, %v2669_v30, %v2670_v28  ;;  %v2672_v34 = vrot.slane %v6950_v4, 2 }
 0x3fd   : > { %9077 = vst [vmem:[#allocation109_spill] sm:$0xff] %v7219_v60  ;;  %v2677_v4 = vrot.slane %v6974_v1, 2 }
 0x3fe   : > { %v7207_v16 = vsel %vm477_vm1, %v2660_v2, %v2662_v23  ;;  %v7222_v23 = vsel %vm477_vm1, %v2665_v51, %v2667_v53  ;;  %v2674_v2 = vrot.slane %v6980_v9, 2  ;;  %v7237_v51 = vsel %vm477_vm1, %v2670_v28, %v2672_v34 }
 0x3ff   : > { %9075 = vst [vmem:[#allocation28_spill] sm:$0xff] %v7207_v16  ;;  %9078 = vst [vmem:[#allocation120_spill] sm:$0xff] %v7222_v23  ;;  %v2679_v53 = vrot.slane %v7004_v44, 2  ;;  %v2684_v34 = vrot.slane %v7028_v62, 2 }
 0x400   : > { %2731 = vrot.lane.b32.xlu1 %v7189_v41, %s4568_s22  ;;  %2729 = vrot.lane.b32.xlu0 %v7192_v45, %s4568_s22  ;;  %v7216_v41 = vpop.permute.xlu1 %4375  ;;  %v2675_v45 = vrot.slane %v6977_v55, 2  ;;  %9080 = vst [vmem:[#allocation111_spill] sm:$0xff] %v7237_v51 }
 0x401   : > { %9076 = vst [vmem:[#allocation33_spill] sm:$0xff] %v7216_v41 }
 0x402   : > { %v7234_v30 = vsel %vm477_vm1, %v2674_v2, %v2675_v45  ;;  %v7254_v28 = vsel %vm477_vm1, %v2675_v45, %v2677_v4  ;;  %v2689_v4 = vrot.slane %v7052_v13, 2 }
 0x403   : > { %9079 = vst [vmem:[#allocation136_spill] sm:$0xff] %v7234_v30  ;;  %9082 = vst [vmem:[#allocation3_spill] sm:$0xff] %v7254_v28 }
 0x404   : > { %2735 = vrot.lane.b32.xlu1 %v7204_v46, %s4568_s22  ;;  %2733 = vrot.lane.b32.xlu0 %v7207_v16, %s4568_s22  ;;  %v2680_v46 = vrot.slane %v7001_v24, 2  ;;  %v7241_v16 = vpop.permute.xlu0 %2527  ;;  %v7243_v41 = vpop.permute.xlu1 %2529 }
 0x406   : > { %v7251_v2 = vsel %vm477_vm1, %v2679_v53, %v2680_v46 }
 0x407   : > { %9081 = vst [vmem:[#allocation137_spill] sm:$0xff] %v7251_v2 }
 0x408   : > { %2739 = vrot.lane.b32.xlu1 %v7219_v60, %s4568_s22  ;;  %2737 = vrot.lane.b32.xlu0 %v7222_v23, %s4568_s22  ;;  %v2685_v60 = vrot.slane %v7025_v33, 2  ;;  %v7265_v1 = vpop.permute.xlu1 %2533  ;;  %v2690_v23 = vrot.slane %v7049_v32, 2 }
 0x409   : > { %9083 = vst [vmem:[#allocation4_spill] sm:$0xff] %v7265_v1 }
 0x40a   : > { %v7268_v53 = vsel %vm477_vm1, %v2684_v34, %v2685_v60 }
 0x40b   : > { %9084 = vst [vmem:[#allocation34_spill] sm:$0xff] %v7268_v53 }
 0x40c   : > { %2743 = vrot.lane.b32.xlu1 %v7234_v30, %s4568_s22  ;;  %2741 = vrot.lane.b32.xlu0 %v7237_v51, %s4568_s22  ;;  %v2682_v30 = vrot.slane %v6998_v21, 2  ;;  %v7263_v51 = vpop.permute.xlu0 %2531  ;;  %v2687_v21 = vrot.slane %v7022_v39, 2  ;;  %v7290_v1 = vpop.permute.xlu1 %2537  ;;  %v2692_v39 = vrot.slane %v7046_v27, 2 }
 0x40e   : > { %v7271_v45 = vsel %vm477_vm1, %v2680_v46, %v2682_v30  ;;  %v7284_v34 = vsel %vm477_vm1, %v2685_v60, %v2687_v21  ;;  %v2694_v46 = vrot.slane %v7079_v47, 2  ;;  %v2695_v30 = vrot.slane %v7076_v14, 2 }
 0x40f   : > { %9085 = vst [vmem:[#allocation15_spill] sm:$0xff] %v7271_v45  ;;  %9087 = vst [vmem:[#allocation58_spill] sm:$0xff] %v7284_v34  ;;  %v7301_v60 = vsel %vm477_vm1, %v2690_v23, %v2692_v39  ;;  %v2697_v21 = vrot.slane %v7073_v18, 2 }
 0x410   : > { %2747 = vrot.lane.b32.xlu1 %v7251_v2, %s4568_s22  ;;  %2745 = vrot.lane.b32.xlu0 %v7254_v28, %s4568_s22  ;;  %v7281_v2 = vsel %vm477_vm1, %v2689_v4, %v2690_v23  ;;  %v7288_v28 = vpop.permute.xlu0 %2535  ;;  %v7298_v4 = vsel %vm477_vm1, %v2694_v46, %v2695_v30  ;;  %9089 = vst [vmem:[#allocation89_spill] sm:$0xff] %v7301_v60 }
 0x411   : > { %9086 = vst [vmem:[#allocation45_spill] sm:$0xff] %v7281_v2  ;;  %9088 = vst [vmem:[#allocation59_spill] sm:$0xff] %v7298_v4  ;;  %v7313_v27 = vsel %vm477_vm1, %v2695_v30, %v2697_v21 }
 0x412   : > { %9090 = vst [vmem:[#allocation90_spill] sm:$0xff] %v7313_v27 }
 0x414   : > { %2751 = vrot.lane.b32.xlu1 %v7268_v53, %s4568_s22  ;;  %2749 = vrot.lane.b32.xlu0 %v7271_v45, %s4568_s22  ;;  %v7310_v53 = vpop.permute.xlu1 %2541  ;;  %v9178_v45 = vld [vmem:[#allocation42_spill] sm:$0xff] }
 0x418   : > { %2755 = vrot.lane.b32.xlu1 %v7281_v2, %s4568_s22  ;;  %2753 = vrot.lane.b32.xlu0 %v7284_v34, %s4568_s22  ;;  %v7308_v2 = vpop.permute.xlu0 %2539  ;;  %v7321_v46 = vpop.permute.xlu1 %2545 }
 0x419   : > { %9092 = vst [vmem:[#allocation121_spill] sm:$0xff] %v7321_v46 }
 0x41c   : > { %2759 = vrot.lane.b32.xlu1 %v7298_v4, %s4568_s22  ;;  %2757 = vrot.lane.b32.xlu0 %v7301_v60, %s4568_s22  ;;  %v7319_v23 = vpop.permute.xlu0 %2543  ;;  %v7333_v30 = vpop.permute.xlu1 %2549 }
 0x41d   : > { %9091 = vst [vmem:[#allocation29_spill] sm:$0xff] %v7319_v23  ;;  %9094 = vst [vmem:[#allocation139_spill] sm:$0xff] %v7333_v30 }
 0x420   : > { %2796 = vrot.lane.b32.xlu1 %v6742_v56, %s4569_s23  ;;  %2761 = vrot.lane.b32.xlu0 %v7313_v27, %s4568_s22  ;;  %v7331_v18 = vpop.permute.xlu0 %2547  ;;  %v7341_v21 = vpop.permute.xlu1 %2553 }
 0x421   : > { %9093 = vst [vmem:[#allocation138_spill] sm:$0xff] %v7331_v18  ;;  %9096 = vst [vmem:[#allocation6_spill] sm:$0xff] %v7341_v21 }
 0x424   : > { %2800 = vrot.lane.b32.xlu1 %v6764_v3, %s4569_s23  ;;  %2798 = vrot.lane.b32.xlu0 %v6739_v17, %s4569_s23  ;;  %v7339_v39 = vpop.permute.xlu0 %2551  ;;  %v7353_v4 = vpop.permute.xlu1 %2557 }
 0x425   : > { %9095 = vst [vmem:[#allocation5_spill] sm:$0xff] %v7339_v39  ;;  %9098 = vst [vmem:[#allocation35_spill] sm:$0xff] %v7353_v4 }
 0x428   : > { %2804 = vrot.lane.b32.xlu1 %v6779_v12, %s4569_s23  ;;  %2802 = vrot.lane.b32.xlu0 %v6761_v40, %s4569_s23  ;;  %v7351_v27 = vpop.permute.xlu0 %2555  ;;  %v7361_v39 = vpop.permute.xlu1 %2561 }
 0x429   : > { %9097 = vst [vmem:[#allocation16_spill] sm:$0xff] %v7351_v27  ;;  %9100 = vst [vmem:[#allocation61_spill] sm:$0xff] %v7361_v39 }
 0x42c   : > { %2808 = vrot.lane.b32.xlu1 %v6809_v50, %s4569_s23  ;;  %2806 = vrot.lane.b32.xlu0 %v6776_v58, %s4569_s23  ;;  %v7359_v21 = vpop.permute.xlu0 %2559  ;;  %v7369_v27 = vpop.permute.xlu1 %2565 }
 0x42d   : > { %9099 = vst [vmem:[#allocation60_spill] sm:$0xff] %v7359_v21  ;;  %9102 = vst [vmem:[#allocation92_spill] sm:$0xff] %v7369_v27 }
 0x430   : > { %2812 = vrot.lane.b32.xlu1 %v6833_v7, %s4569_s23  ;;  %2810 = vrot.lane.b32.xlu0 %v6806_v5, %s4569_s23  ;;  %v7367_v60 = vpop.permute.xlu0 %2563 }
 0x431   : > { %9101 = vst [vmem:[#allocation91_spill] sm:$0xff] %v7367_v60 }
 0x432   : > { %v7377_v21 = vpop.permute.xlu1 %2569 }
 0x433   : > { %9104 = vst [vmem:[#allocation122_spill] sm:$0xff] %v7377_v21 }
 0x434   : > { %2816 = vrot.lane.b32.xlu1 %v6857_v20, %s4569_s23  ;;  %2814 = vrot.lane.b32.xlu0 %v6830_v35, %s4569_s23  ;;  %v7375_v4 = vpop.permute.xlu0 %2567 }
 0x435   : > { %9103 = vst [vmem:[#allocation30_spill] sm:$0xff] %v7375_v4 }
 0x438   : > { %2820 = vrot.lane.b32.xlu1 %v6881_v43, %s4569_s23  ;;  %2818 = vrot.lane.b32.xlu0 %v6854_v26, %s4569_s23 }
 0x43a   : > { %v7383_v39 = vpop.permute.xlu0 %2571  ;;  %v7385_v60 = vpop.permute.xlu1 %2573 }
 0x43b   : > { %9105 = vst [vmem:[#allocation140_spill] sm:$0xff] %v7383_v39  ;;  %9106 = vst [vmem:[#allocation141_spill] sm:$0xff] %v7385_v60 }
 0x43c   : > { %2824 = vrot.lane.b32.xlu1 %v6904_v6, %s4569_s23  ;;  %2822 = vrot.lane.b32.xlu0 %v6878_v10, %s4569_s23 }
 0x440   : > { %2828 = vrot.lane.b32.xlu1 %v6932_v49, %s4569_s23  ;;  %2826 = vrot.lane.b32.xlu0 %v6901_v48, %s4569_s23 }
 0x441   : > { %v7391_v27 = vpop.permute.xlu0 %2575  ;;  %v7393_v4 = vpop.permute.xlu1 %2577 }
 0x442   : > { %9107 = vst [vmem:[#allocation7_spill] sm:$0xff] %v7391_v27  ;;  %9108 = vst [vmem:[#allocation8_spill] sm:$0xff] %v7393_v4  ;;  %v2242_v4 = vmul.f32 %v7201_v11, %v6698_v36  ;;  %v7427_v36 = vmul.f32 %v6694_v25, %v7226_v54  ;;  %v3643_v54 = vld [vmem:[%s8393_s3 + $0x20] sm:$0xf] }
 0x443   : > { %4297 = vmatprep.subr.msk.mxu1 %vm1622_vm2, %v3643_v54 }
 0x444   : > { %2832 = vrot.lane.b32.xlu1 %v6956_v61, %s4569_s23  ;;  %2830 = vrot.lane.b32.xlu0 %v6929_v59, %s4569_s23  ;;  %v2325_v30 = vrot.slane %v2242_v4, 7  ;;  %9113 = vst [vmem:[#allocation93_spill] sm:$0xff] %v7427_v36  ;;  %v8578_v4 = vrot.slane %v7427_v36, 7 }
 0x445   : > { %4298 = vmatpush3.msk.msra.mxu1 %vm1622_vm2, %v3643_v54  ;;  %v3640_v54 = vld [vmem:[%s8393_s3 + $0x8] sm:$0xff] }
 0x446   : > { %v7448_v25 = vsel %vm2277_vm12, %v2325_v30, %v8578_v4 }
 0x447   : > { %9115 = vst [vmem:[#allocation31_spill] sm:$0xff] %v7448_v25 }
 0x448   : > { %2836 = vrot.lane.b32.xlu1 %v6980_v9, %s4569_s23  ;;  %2834 = vrot.lane.b32.xlu0 %v6953_v38, %s4569_s23 }
 0x449   : > { %v7399_v21 = vpop.permute.xlu0 %2579  ;;  %v7401_v39 = vpop.permute.xlu1 %2581 }
 0x44a   : > { %9109 = vst [vmem:[#allocation17_spill] sm:$0xff] %v7399_v21  ;;  %9110 = vst [vmem:[#allocation18_spill] sm:$0xff] %v7401_v39 }
 0x44c   : > { %2840 = vrot.lane.b32.xlu1 %v7004_v44, %s4569_s23  ;;  %2838 = vrot.lane.b32.xlu0 %v6977_v55, %s4569_s23 }
 0x450   : > { %2844 = vrot.lane.b32.xlu1 %v7028_v62, %s4569_s23  ;;  %2842 = vrot.lane.b32.xlu0 %v7001_v24, %s4569_s23 }
 0x452   : > { %v7407_v60 = vpop.permute.xlu0 %2583  ;;  %v7409_v27 = vpop.permute.xlu1 %2585 }
 0x453   : > { %9111 = vst [vmem:[#allocation62_spill] sm:$0xff] %v7407_v60  ;;  %9112 = vst [vmem:[#allocation63_spill] sm:$0xff] %v7409_v27  ;;  %v7434_v27 = vsel %vm2277_vm12, 0.0, %v2325_v30  ;;  %v3642_v30 = vld [vmem:[%s8393_s3 + $0x18] sm:$0xff] }
 0x454   : > { %2848 = vrot.lane.b32.xlu1 %v7052_v13, %s4569_s23  ;;  %2846 = vrot.lane.b32.xlu0 %v7025_v33, %s4569_s23  ;;  %9114 = vst [vmem:[#allocation94_spill] sm:$0xff] %v7434_v27 }
 0x455   : > { %4299 = vmatprep.subr.mxu1 %v3642_v30 }
 0x456   : > { %v7417_v39 = vpop.permute.xlu0 %4380  ;;  %v7419_v21 = vpop.permute.xlu1 %2703  ;;  %4300 = vmatpush3.msra.mxu1 %v3642_v30  ;;  %v3639_v30 = vld [vmem:[%s8393_s3] sm:$0xff] }
 0x458   : > { %2852 = vrot.lane.b32.xlu1 %v7079_v47, %s4569_s23  ;;  %2850 = vrot.lane.b32.xlu0 %v7049_v32, %s4569_s23 }
 0x45a   : > { %v7429_v11 = vpop.permute.xlu0 %2705  ;;  %v7431_v60 = vpop.permute.xlu1 %2707 }
 0x45c   : > { %2854 = vrot.lane.b32.xlu0 %v7076_v14, %s4569_s23  ;;  %2856 = vrot.lane.b32.xlu1 %v7434_v27, %s4569_s23 }
 0x45e   : > { %v7441_v47 = vpop.permute.xlu0 %2709  ;;  %v7443_v32 = vpop.permute.xlu1 %2711 }
 0x460   : > { %2898 = vrot.lane.b32.xlu1 %v6758_v19, %s4570_s24  ;;  %2858 = vrot.lane.b32.xlu0 %v7448_v25, %s4569_s23  ;;  %v3641_v19 = vld [vmem:[%s8393_s3 + $0x10] sm:$0xff] }
 0x461   : > { %4301 = vmatprep.subr.mxu1 %v3641_v19 }
 0x462   : > { %v7458_v27 = vpop.permute.xlu0 %2713  ;;  %v7460_v14 = vpop.permute.xlu1 %2715  ;;  %4302 = vmatpush3.msra.mxu1 %v3641_v19 }
 0x463   : > { %4303 = vmatprep.subr.mxu1 %v3640_v54 }
 0x464   : > { %2999 = vrot.lane.b32.xlu1 %v7101_v29, %s4571_s25  ;;  %2900 = vrot.lane.b32.xlu0 %v6749_v42, %s4570_s24 }
 0x465   : > { %4304 = vmatpush3.msra.mxu1 %v3640_v54 }
 0x466   : > { %v7473_v4 = vpop.permute.xlu0 %2717  ;;  %v7475_v36 = vpop.permute.xlu1 %2719  ;;  %4305 = vmatprep.subr.mxu1 %v3639_v30 }
 0x467   : > { %9116 = vst [vmem:[#allocation123_spill] sm:$0xff] %v7475_v36  ;;  %4306 = vmatpush3.msra.mxu1 %v3639_v30 }
 0x468   : > { %3001 = vrot.lane.b32.xlu0 %v7114_v52, %s4571_s25  ;;  %3095 = vrot.lane.b32.xlu1 %v6764_v3, %s4572_s26 }
 0x46a   : > { %v7484_v42 = vpop.permute.xlu0 %2721  ;;  %v7486_v29 = vpop.permute.xlu1 %2723 }
 0x46b   : > { %9117 = vst [vmem:[#allocation142_spill] sm:$0xff] %v7484_v42  ;;  %9118 = vst [vmem:[#allocation143_spill] sm:$0xff] %v7486_v29  ;;  %v9149_v42 = vld [vmem:[#allocation2_spill] sm:$0xff] }
 0x46c   : > { %3097 = vrot.lane.b32.xlu0 %v6761_v40, %s4572_s26  ;;  %3191 = vrot.lane.b32.xlu1 %v6786_v37, %s4573_s27 }
 0x46e   : > { %v7495_v52 = vpop.permute.xlu0 %2725  ;;  %v7497_v19 = vpop.permute.xlu1 %2727 }
 0x46f   : > { %9119 = vst [vmem:[#allocation9_spill] sm:$0xff] %v7495_v52  ;;  %9120 = vst [vmem:[#allocation10_spill] sm:$0xff] %v7497_v19 }
 0x470   : > { %2902 = vrot.lane.b32.xlu0 %v6786_v37, %s4570_s24  ;;  %3193 = vrot.lane.b32.xlu1 %v6783_v63, %s4573_s27 }
 0x472   : > { %v7503_v25 = vpop.permute.xlu0 %2729  ;;  %v7505_v54 = vpop.permute.xlu1 %2731 }
 0x473   : > { %9121 = vst [vmem:[#allocation37_spill] sm:$0xff] %v7503_v25  ;;  %9122 = vst [vmem:[#allocation19_spill] sm:$0xff] %v7505_v54 }
 0x474   : > { %3287 = vrot.lane.b32.xlu0 %v7111_v0, %s4574_s12  ;;  %2904 = vrot.lane.b32.xlu1 %v6783_v63, %s4570_s24 }
 0x476   : > { %v7511_v52 = vpop.permute.xlu0 %2733  ;;  %v7513_v19 = vpop.permute.xlu1 %2735 }
 0x477   : > { %9123 = vst [vmem:[#allocation64_spill] sm:$0xff] %v7511_v52  ;;  %9124 = vst [vmem:[#allocation65_spill] sm:$0xff] %v7513_v19 }
 0x478   : > { %3003 = vrot.lane.b32.xlu0 %v7111_v0, %s4571_s25  ;;  %3289 = vrot.lane.b32.xlu1 %v7127_v22, %s4574_s12  ;;  %v9129_v0 = vld [vmem:[#allocation40_spill] sm:$0xff] }
 0x47a   : > { %v7519_v37 = vpop.permute.xlu0 %2737  ;;  %v7521_v30 = vpop.permute.xlu1 %2739 }
 0x47b   : > { %9125 = vst [vmem:[#allocation95_spill] sm:$0xff] %v7519_v37  ;;  %9126 = vst [vmem:[#allocation96_spill] sm:$0xff] %v7521_v30 }
 0x47c   : > { %3005 = vrot.lane.b32.xlu0 %v7127_v22, %s4571_s25  ;;  %3099 = vrot.lane.b32.xlu1 %v6779_v12, %s4572_s26  ;;  %v9132_v22 = vld [vmem:[#allocation105_spill] sm:$0xff] }
 0x47e   : > { %v7527_v63 = vpop.permute.xlu0 %2741  ;;  %v7529_v52 = vpop.permute.xlu1 %2743 }
 0x47f   : > { %9127 = vst [vmem:[#allocation32_spill] sm:$0xff] %v7527_v63  ;;  %9128 = vst [vmem:[#allocation124_spill] sm:$0xff] %v7529_v52 }
 0x480   : > { %3101 = vrot.lane.b32.xlu0 %v6776_v58, %s4572_s26  ;;  %3195 = vrot.lane.b32.xlu1 %v9129_v0, %s4573_s27 }
 0x482   : > { %v7535_v19 = vpop.permute.xlu0 %2745  ;;  %v7537_v37 = vpop.permute.xlu1 %2747 }
 0x483   : > { %9130 = vst [vmem:[#allocation144_spill] sm:$0xff] %v7535_v19  ;;  %9131 = vst [vmem:[#allocation145_spill] sm:$0xff] %v7537_v37 }
 0x484   : > { %2906 = vrot.lane.b32.xlu0 %v9129_v0, %s4570_s24  ;;  %3197 = vrot.lane.b32.xlu1 %v9132_v22, %s4573_s27 }
 0x486   : > { %v7543_v30 = vpop.permute.xlu0 %2749  ;;  %v7545_v63 = vpop.permute.xlu1 %2751 }
 0x487   : > { %9133 = vst [vmem:[#allocation11_spill] sm:$0xff] %v7543_v30  ;;  %9134 = vst [vmem:[#allocation12_spill] sm:$0xff] %v7545_v63 }
 0x488   : > { %3291 = vrot.lane.b32.xlu0 %v7124_v31, %s4574_s12  ;;  %2908 = vrot.lane.b32.xlu1 %v9132_v22, %s4570_s24 }
 0x48a   : > { %v7551_v52 = vpop.permute.xlu0 %2753  ;;  %v7553_v19 = vpop.permute.xlu1 %2755 }
 0x48b   : > { %9135 = vst [vmem:[#allocation20_spill] sm:$0xff] %v7551_v52  ;;  %9136 = vst [vmem:[#allocation38_spill] sm:$0xff] %v7553_v19 }
 0x48c   : > { %3007 = vrot.lane.b32.xlu0 %v7124_v31, %s4571_s25  ;;  %3293 = vrot.lane.b32.xlu1 %v7140_v57, %s4574_s12  ;;  %v9140_v31 = vld [vmem:[#allocation41_spill] sm:$0xff] }
 0x48e   : > { %v7559_v0 = vpop.permute.xlu0 %2757  ;;  %v7561_v30 = vpop.permute.xlu1 %2759 }
 0x48f   : > { %9137 = vst [vmem:[#allocation66_spill] sm:$0xff] %v7559_v0  ;;  %9138 = vst [vmem:[#allocation67_spill] sm:$0xff] %v7561_v30 }
 0x490   : > { %3009 = vrot.lane.b32.xlu0 %v7140_v57, %s4571_s25  ;;  %3103 = vrot.lane.b32.xlu1 %v6809_v50, %s4572_s26  ;;  %v9141_v57 = vld [vmem:[#allocation106_spill] sm:$0xff] }
 0x492   : > { %v7567_v22 = vpop.permute.xlu0 %2761  ;;  %v7569_v52 = vpop.permute.xlu1 %2796 }
 0x493   : > { %9139 = vst [vmem:[#allocation97_spill] sm:$0xff] %v7567_v22 }
 0x494   : > { %3105 = vrot.lane.b32.xlu0 %v6806_v5, %s4572_s26  ;;  %3199 = vrot.lane.b32.xlu1 %v9140_v31, %s4573_s27 }
 0x496   : > { %v7575_v19 = vpop.permute.xlu0 %2798  ;;  %v7577_v0 = vpop.permute.xlu1 %2800 }
 0x498   : > { %2910 = vrot.lane.b32.xlu0 %v9140_v31, %s4570_s24  ;;  %3201 = vrot.lane.b32.xlu1 %v9141_v57, %s4573_s27 }
 0x49a   : > { %v7583_v30 = vpop.permute.xlu0 %2802  ;;  %v7585_v22 = vpop.permute.xlu1 %2804 }
 0x49c   : > { %3295 = vrot.lane.b32.xlu0 %v7137_v15, %s4574_s12  ;;  %2912 = vrot.lane.b32.xlu1 %v9141_v57, %s4570_s24 }
 0x49e   : > { %v7591_v63 = vpop.permute.xlu0 %2806  ;;  %v7593_v37 = vpop.permute.xlu1 %2808 }
 0x4a0   : > { %3011 = vrot.lane.b32.xlu0 %v7137_v15, %s4571_s25  ;;  %3297 = vrot.lane.b32.xlu1 %v7153_v8, %s4574_s12  ;;  %v9143_v15 = vld [vmem:[#allocation77_spill] sm:$0xff] }
 0x4a2   : > { %v7599_v31 = vpop.permute.xlu0 %2810  ;;  %v7601_v54 = vpop.permute.xlu1 %2812 }
 0x4a4   : > { %3013 = vrot.lane.b32.xlu0 %v7153_v8, %s4571_s25  ;;  %3107 = vrot.lane.b32.xlu1 %v6833_v7, %s4572_s26  ;;  %v9146_v8 = vld [vmem:[#allocation76_spill] sm:$0xff] }
 0x4a6   : > { %v7607_v57 = vpop.permute.xlu0 %2814  ;;  %v7609_v25 = vpop.permute.xlu1 %2816 }
 0x4a7   : > { %9142 = vst [vmem:[#allocation98_spill] sm:$0xff] %v7609_v25  ;;  %v9177_v25 = vld [vmem:[#allocation74_spill] sm:$0xff] }
 0x4a8   : > { %3109 = vrot.lane.b32.xlu0 %v6830_v35, %s4572_s26  ;;  %3203 = vrot.lane.b32.xlu1 %v9143_v15, %s4573_s27 }
 0x4aa   : > { %v7615_v29 = vpop.permute.xlu0 %2818  ;;  %v7617_v13 = vpop.permute.xlu1 %2820 }
 0x4ab   : > { %9144 = vst [vmem:[#allocation125_spill] sm:$0xff] %v7615_v29  ;;  %9145 = vst [vmem:[#allocation126_spill] sm:$0xff] %v7617_v13 }
 0x4ac   : > { %2914 = vrot.lane.b32.xlu0 %v9143_v15, %s4570_s24  ;;  %3205 = vrot.lane.b32.xlu1 %v9146_v8, %s4573_s27  ;;  %v9152_v15 = vld [vmem:[#allocation27_spill] sm:$0xff] }
 0x4ae   : > { %v7623_v18 = vpop.permute.xlu0 %2822  ;;  %v7625_v34 = vpop.permute.xlu1 %2824 }
 0x4af   : > { %9147 = vst [vmem:[#allocation146_spill] sm:$0xff] %v7623_v18  ;;  %9148 = vst [vmem:[#allocation147_spill] sm:$0xff] %v7625_v34 }
 0x4b0   : > { %3299 = vrot.lane.b32.xlu0 %v9149_v42, %s4574_s12  ;;  %2916 = vrot.lane.b32.xlu1 %v9146_v8, %s4570_s24 }
 0x4b2   : > { %v7631_v33 = vpop.permute.xlu0 %2826  ;;  %v7633_v29 = vpop.permute.xlu1 %2828 }
 0x4b3   : > { %9150 = vst [vmem:[#allocation13_spill] sm:$0xff] %v7631_v33  ;;  %9151 = vst [vmem:[#allocation14_spill] sm:$0xff] %v7633_v29 }
 0x4b4   : > { %3015 = vrot.lane.b32.xlu0 %v9149_v42, %s4571_s25  ;;  %3301 = vrot.lane.b32.xlu1 %v9152_v15, %s4574_s12  ;;  %v9157_v42 = vld [vmem:[#allocation46_spill] sm:$0xff] }
 0x4b6   : > { %v7639_v13 = vpop.permute.xlu0 %2830  ;;  %v7641_v18 = vpop.permute.xlu1 %2832 }
 0x4b7   : > { %9153 = vst [vmem:[#allocation21_spill] sm:$0xff] %v7639_v13  ;;  %9154 = vst [vmem:[#allocation22_spill] sm:$0xff] %v7641_v18 }
 0x4b8   : > { %3017 = vrot.lane.b32.xlu0 %v9152_v15, %s4571_s25  ;;  %3111 = vrot.lane.b32.xlu1 %v6857_v20, %s4572_s26  ;;  %v9160_v15 = vld [vmem:[#allocation133_spill] sm:$0xff] }
 0x4ba   : > { %v7647_v8 = vpop.permute.xlu0 %2834  ;;  %v7649_v33 = vpop.permute.xlu1 %2836 }
 0x4bb   : > { %9155 = vst [vmem:[#allocation68_spill] sm:$0xff] %v7647_v8  ;;  %9156 = vst [vmem:[#allocation69_spill] sm:$0xff] %v7649_v33  ;;  %v9163_v33 = vld [vmem:[#allocation86_spill] sm:$0xff] }
 0x4bc   : > { %3113 = vrot.lane.b32.xlu0 %v6854_v26, %s4572_s26  ;;  %3207 = vrot.lane.b32.xlu1 %v9157_v42, %s4573_s27 }
 0x4be   : > { %v7655_v29 = vpop.permute.xlu0 %2838  ;;  %v7657_v13 = vpop.permute.xlu1 %2840 }
 0x4bf   : > { %9158 = vst [vmem:[#allocation99_spill] sm:$0xff] %v7655_v29  ;;  %9159 = vst [vmem:[#allocation100_spill] sm:$0xff] %v7657_v13 }
 0x4c0   : > { %2918 = vrot.lane.b32.xlu0 %v9157_v42, %s4570_s24  ;;  %3209 = vrot.lane.b32.xlu1 %v9160_v15, %s4573_s27  ;;  %v9166_v42 = vld [vmem:[#allocation56_spill] sm:$0xff] }
 0x4c2   : > { %v7663_v18 = vpop.permute.xlu0 %2842  ;;  %v7665_v8 = vpop.permute.xlu1 %2844 }
 0x4c3   : > { %9161 = vst [vmem:[#allocation127_spill] sm:$0xff] %v7663_v18  ;;  %9162 = vst [vmem:[#allocation128_spill] sm:$0xff] %v7665_v8 }
 0x4c4   : > { %3303 = vrot.lane.b32.xlu0 %v9163_v33, %s4574_s12  ;;  %2920 = vrot.lane.b32.xlu1 %v9160_v15, %s4570_s24 }
 0x4c6   : > { %v7671_v34 = vpop.permute.xlu0 %2846  ;;  %v7673_v29 = vpop.permute.xlu1 %2848 }
 0x4c7   : > { %9164 = vst [vmem:[#allocation148_spill] sm:$0xff] %v7671_v34  ;;  %9165 = vst [vmem:[#allocation149_spill] sm:$0xff] %v7673_v29 }
 0x4c8   : > { %3019 = vrot.lane.b32.xlu0 %v9163_v33, %s4571_s25  ;;  %3305 = vrot.lane.b32.xlu1 %v9166_v42, %s4574_s12  ;;  %v9171_v33 = vld [vmem:[#allocation79_spill] sm:$0xff] }
 0x4ca   : > { %v7679_v13 = vpop.permute.xlu0 %2850  ;;  %v7681_v18 = vpop.permute.xlu1 %2852 }
 0x4cb   : > { %9167 = vst [vmem:[#allocation154_spill] sm:$0xff] %v7679_v13  ;;  %9168 = vst [vmem:[#allocation155_spill] sm:$0xff] %v7681_v18 }
 0x4cc   : > { %3021 = vrot.lane.b32.xlu0 %v9166_v42, %s4571_s25  ;;  %3115 = vrot.lane.b32.xlu1 %v6881_v43, %s4572_s26  ;;  %v9173_v42 = vld [vmem:[#allocation78_spill] sm:$0xff]  ;;  %v9175_v43 = vld [vmem:[#allocation33_spill] sm:$0xff] }
 0x4cd   : > { %v4377_v26 = vunpack.i.l.bf16 %v9175_v43  ;;  %v4378_v46 = vunpack.i.h.bf16 %v9175_v43 }
 0x4ce   : > { %v7687_v15 = vpop.permute.xlu0 %2854  ;;  %v7689_v34 = vpop.permute.xlu1 %2856 }
 0x4cf   : > { %9169 = vst [vmem:[#allocation39_spill] sm:$0xff] %v7687_v15  ;;  %9170 = vst [vmem:[#allocation23_spill] sm:$0xff] %v7689_v34  ;;  %v9174_v15 = vld [vmem:[#allocation119_spill] sm:$0xff]  ;;  %v3383_v36 = vsel %vm1256_vm3, %v9177_v25, %v4377_v26  ;;  %v3384_v26 = vsel %vm1256_vm3, %v9178_v45, %v4378_v46 }
 0x4d0   : > { %3117 = vrot.lane.b32.xlu0 %v6878_v10, %s4572_s26  ;;  %3211 = vrot.lane.b32.xlu1 %v9171_v33, %s4573_s27 }
 0x4d2   : > { %v7695_v29 = vpop.permute.xlu0 %2858  ;;  %v2899_v13 = vpop.permute.xlu1 %2898 }
 0x4d3   : > { %9172 = vst [vmem:[#allocation70_spill] sm:$0xff] %v7695_v29  ;;  %v4382_v29 = vunpack.i.l.bf16 %v7417_v39 }
 0x4d4   : > { %2922 = vrot.lane.b32.xlu0 %v9171_v33, %s4570_s24  ;;  %3213 = vrot.lane.b32.xlu1 %v9173_v42, %s4573_s27  ;;  %v9176_v33 = vld [vmem:[#allocation87_spill] sm:$0xff] }
 0x4d6   : > { %v2901_v18 = vpop.permute.xlu0 %2900  ;;  %v3000_v8 = vpop.permute.xlu1 %2999 }
 0x4d8   : > { %3307 = vrot.lane.b32.xlu0 %v9174_v15, %s4574_s12  ;;  %2924 = vrot.lane.b32.xlu1 %v9173_v42, %s4570_s24  ;;  %v3415_v42 = vsel %vm1289_vm4, %v3383_v36, %v4382_v29 }
 0x4d9   : > { %v3447_v62 = vsel %vm1322_vm5, %v3415_v42, %v7569_v52 }
 0x4da   : > { %v3002_v34 = vpop.permute.xlu0 %3001  ;;  %v3096_v10 = vpop.permute.xlu1 %3095  ;;  %v3479_v43 = vsel %vm1355_vm6, %v3447_v62, %v2899_v13 }
 0x4db   : > { %v3511_v25 = vsel %vm1388_vm7, %v3479_v43, %v3000_v8  ;;  %v9181_v43 = vld [vmem:[#allocation57_spill] sm:$0xff] }
 0x4dc   : > { %3023 = vrot.lane.b32.xlu0 %v9174_v15, %s4571_s25  ;;  %3309 = vrot.lane.b32.xlu1 %v9176_v33, %s4574_s12  ;;  %v4383_v15 = vunpack.i.h.bf16 %v7417_v39  ;;  %v3543_v36 = vsel %vm1421_vm8, %v3511_v25, %v3096_v10 }
 0x4de   : > { %v3098_v20 = vpop.permute.xlu0 %3097  ;;  %v3192_v35 = vpop.permute.xlu1 %3191  ;;  %v3416_v39 = vsel %vm1289_vm4, %v3384_v26, %v4383_v15  ;;  %v9180_v15 = vld [vmem:[#allocation110_spill] sm:$0xff] }
 0x4df   : > { %v3448_v29 = vsel %vm1322_vm5, %v3416_v39, %v7575_v19  ;;  %v3575_v62 = vsel %vm1454_vm9, %v3543_v36, %v3192_v35  ;;  %v3385_v39 = vsel %vm1256_vm3, %v6742_v56, %v7241_v16  ;;  %v3386_v56 = vsel %vm1256_vm3, %v6739_v17, %v7243_v41 }
 0x4e0   : > { %3025 = vrot.lane.b32.xlu0 %v9176_v33, %s4571_s25  ;;  %3119 = vrot.lane.b32.xlu1 %v6904_v6, %s4572_s26  ;;  %v9179_v33 = vld [vmem:[#allocation112_spill] sm:$0xff]  ;;  %v3480_v46 = vsel %vm1355_vm6, %v3448_v29, %v2901_v18  ;;  %v3417_v36 = vsel %vm1289_vm4, %v3385_v39, %v7419_v21  ;;  %v3418_v21 = vsel %vm1289_vm4, %v3386_v56, %v7429_v11 }
 0x4e1   : > { %v3512_v42 = vsel %vm1388_vm7, %v3480_v46, %v3002_v34  ;;  %v3449_v29 = vsel %vm1322_vm5, %v3417_v36, %v7577_v0  ;;  %v9184_v11 = vld [vmem:[#allocation48_spill] sm:$0xff]  ;;  %v3387_v39 = vsel %vm1256_vm3, %v6764_v3, %v7263_v51 }
 0x4e2   : > { %v2903_v7 = vpop.permute.xlu0 %2902  ;;  %v3194_v23 = vpop.permute.xlu1 %3193  ;;  %v3544_v10 = vsel %vm1421_vm8, %v3512_v42, %v3098_v20  ;;  %v9182_v20 = vld [vmem:[#allocation28_spill] sm:$0xff]  ;;  %v3419_v36 = vsel %vm1289_vm4, %v3387_v39, %v7431_v60  ;;  %v9192_v39 = vld [vmem:[#allocation114_spill] sm:$0xff] }
 0x4e3   : > { %v3576_v35 = vsel %vm1454_vm9, %v3544_v10, %v3194_v23  ;;  %v3481_v46 = vsel %vm1355_vm6, %v3449_v29, %v2903_v7  ;;  %v3450_v7 = vsel %vm1322_vm5, %v3418_v21, %v7583_v30  ;;  %v3451_v29 = vsel %vm1322_vm5, %v3419_v36, %v7585_v22 }
 0x4e4   : > { %3121 = vrot.lane.b32.xlu0 %v6901_v48, %s4572_s26  ;;  %3215 = vrot.lane.b32.xlu1 %v9179_v33, %s4573_s27 }
 0x4e6   : > { %v3288_v13 = vpop.permute.xlu0 %3287  ;;  %v2905_v52 = vpop.permute.xlu1 %2904 }
 0x4e7   : > { %v3607_v8 = vsel %vm1487_vm10, %v3575_v62, %v3288_v13  ;;  %v3482_v41 = vsel %vm1355_vm6, %v3450_v7, %v2905_v52 }
 0x4e8   : > { %2926 = vrot.lane.b32.xlu0 %v9179_v33, %s4570_s24  ;;  %3217 = vrot.lane.b32.xlu1 %v9180_v15, %s4573_s27 }
 0x4e9   : > { %4307 = vmatprep.mubr.msk.f32.mxu1 %vm1525_vm11, %v3607_v8  ;;  %v9183_v8 = vld [vmem:[#allocation49_spill] sm:$0xff] }
 0x4ea   : > { %v3004_v25 = vpop.permute.xlu0 %3003  ;;  %v3290_v19 = vpop.permute.xlu1 %3289 }
 0x4eb   : > { %v3608_v18 = vsel %vm1487_vm10, %v3576_v35, %v3290_v19  ;;  %v3513_v16 = vsel %vm1388_vm7, %v3481_v46, %v3004_v25 }
 0x4ec   : > { %3311 = vrot.lane.b32.xlu0 %v9181_v43, %s4574_s12  ;;  %2928 = vrot.lane.b32.xlu1 %v9180_v15, %s4570_s24 }
 0x4ed   : > { %4308 = vmatmul.mubr.msk.f32.vlgmr.msra.gmra.mxu1 %vm1525_vm11, %v3608_v18 }
 0x4ee   : > { %v3006_v34 = vpop.permute.xlu0 %3005  ;;  %v3100_v26 = vpop.permute.xlu1 %3099 }
 0x4ef   : > { %v3545_v0 = vsel %vm1421_vm8, %v3513_v16, %v3100_v26  ;;  %v3514_v35 = vsel %vm1388_vm7, %v3482_v41, %v3006_v34  ;;  %v9187_v16 = vld [vmem:[#allocation4_spill] sm:$0xff] }
 0x4f0   : > { %3027 = vrot.lane.b32.xlu0 %v9181_v43, %s4571_s25  ;;  %3313 = vrot.lane.b32.xlu1 %v9182_v20, %s4574_s12  ;;  %v9185_v43 = vld [vmem:[#allocation88_spill] sm:$0xff]  ;;  %v3388_v3 = vsel %vm1256_vm3, %v6761_v40, %v9187_v16 }
 0x4f1   : > { %v3420_v60 = vsel %vm1289_vm4, %v3388_v3, %v7441_v47  ;;  %v9189_v47 = vld [vmem:[#allocation80_spill] sm:$0xff] }
 0x4f2   : > { %v3102_v23 = vpop.permute.xlu0 %3101  ;;  %v3196_v33 = vpop.permute.xlu1 %3195 }
 0x4f3   : > { %v3577_v42 = vsel %vm1454_vm9, %v3545_v0, %v3196_v33  ;;  %v3546_v25 = vsel %vm1421_vm8, %v3514_v35, %v3102_v23 }
 0x4f4   : > { %3029 = vrot.lane.b32.xlu0 %v9182_v20, %s4571_s25  ;;  %3123 = vrot.lane.b32.xlu1 %v6932_v49, %s4572_s26  ;;  %v9186_v20 = vld [vmem:[#allocation120_spill] sm:$0xff] }
 0x4f6   : > { %v2907_v62 = vpop.permute.xlu0 %2906  ;;  %v3198_v13 = vpop.permute.xlu1 %3197 }
 0x4f7   : > { %v3578_v30 = vsel %vm1454_vm9, %v3546_v25, %v3198_v13  ;;  %v3483_v56 = vsel %vm1355_vm6, %v3451_v29, %v2907_v62  ;;  %v3452_v62 = vsel %vm1322_vm5, %v3420_v60, %v7591_v63  ;;  %v9194_v60 = vld [vmem:[#allocation136_spill] sm:$0xff] }
 0x4f8   : > { %3125 = vrot.lane.b32.xlu0 %v6929_v59, %s4572_s26  ;;  %3219 = vrot.lane.b32.xlu1 %v9183_v8, %s4573_s27 }
 0x4fa   : > { %v3292_v15 = vpop.permute.xlu0 %3291  ;;  %v2909_v17 = vpop.permute.xlu1 %2908 }
 0x4fb   : > { %v3609_v10 = vsel %vm1487_vm10, %v3577_v42, %v3292_v15  ;;  %v3484_v7 = vsel %vm1355_vm6, %v3452_v62, %v2909_v17 }
 0x4fc   : > { %2930 = vrot.lane.b32.xlu0 %v9183_v8, %s4570_s24  ;;  %3221 = vrot.lane.b32.xlu1 %v9184_v11, %s4573_s27  ;;  %v9188_v8 = vld [vmem:[#allocation81_spill] sm:$0xff] }
 0x4fd   : > { %4310 = vmatprep.mubr.msk.f32.mxu1 %vm1525_vm11, %v3609_v10 }
 0x4fe   : > { %v3008_v19 = vpop.permute.xlu0 %3007  ;;  %v3294_v18 = vpop.permute.xlu1 %3293 }
 0x4ff   : > { %v3610_v52 = vsel %vm1487_vm10, %v3578_v30, %v3294_v18  ;;  %v3515_v51 = vsel %vm1388_vm7, %v3483_v56, %v3008_v19  ;;  %v9191_v19 = vld [vmem:[#allocation111_spill] sm:$0xff] }
 0x500   : > { %3315 = vrot.lane.b32.xlu0 %v9185_v43, %s4574_s12  ;;  %2932 = vrot.lane.b32.xlu1 %v9184_v11, %s4570_s24  ;;  %v9190_v11 = vld [vmem:[#allocation109_spill] sm:$0xff] }
 0x501   : > { %4311 = vmatmul.mubr.msk.f32.gmra.mxu1 %vm1525_vm11, %v3610_v52 }
 0x502   : > { %v3010_v34 = vpop.permute.xlu0 %3009  ;;  %v3104_v26 = vpop.permute.xlu1 %3103 }
 0x503   : > { %v3547_v22 = vsel %vm1421_vm8, %v3515_v51, %v3104_v26  ;;  %v3516_v15 = vsel %vm1388_vm7, %v3484_v7, %v3010_v34  ;;  %v3391_v7 = vsel %vm1256_vm3, %v6809_v50, %v7308_v2  ;;  %v3392_v50 = vsel %vm1256_vm3, %v6806_v5, %v7310_v53 }
 0x504   : > { %3031 = vrot.lane.b32.xlu0 %v9185_v43, %s4571_s25  ;;  %3317 = vrot.lane.b32.xlu1 %v9186_v20, %s4574_s12  ;;  %v3389_v43 = vsel %vm1256_vm3, %v6779_v12, %v7288_v28  ;;  %v3390_v12 = vsel %vm1256_vm3, %v6776_v58, %v7290_v1 }
 0x505   : > { %v3421_v34 = vsel %vm1289_vm4, %v3389_v43, %v7443_v32  ;;  %v3422_v32 = vsel %vm1289_vm4, %v3390_v12, %v7458_v27  ;;  %v9193_v27 = vld [vmem:[#allocation113_spill] sm:$0xff] }
 0x506   : > { %v3106_v23 = vpop.permute.xlu0 %3105  ;;  %v3200_v33 = vpop.permute.xlu1 %3199  ;;  %v3453_v26 = vsel %vm1322_vm5, %v3421_v34, %v7593_v37  ;;  %v3454_v36 = vsel %vm1322_vm5, %v3422_v32, %v7599_v31  ;;  %v9198_v34 = vld [vmem:[#allocation137_spill] sm:$0xff] }
 0x507   : > { %v3579_v21 = vsel %vm1454_vm9, %v3547_v22, %v3200_v33  ;;  %v3548_v41 = vsel %vm1421_vm8, %v3516_v15, %v3106_v23 }
 0x508   : > { %3033 = vrot.lane.b32.xlu0 %v9186_v20, %s4571_s25  ;;  %3127 = vrot.lane.b32.xlu1 %v6956_v61, %s4572_s26 }
 0x50a   : > { %v2911_v13 = vpop.permute.xlu0 %2910  ;;  %v3202_v46 = vpop.permute.xlu1 %3201 }
 0x50b   : > { %v3580_v63 = vsel %vm1454_vm9, %v3548_v41, %v3202_v46  ;;  %v3485_v33 = vsel %vm1355_vm6, %v3453_v26, %v2911_v13 }
 0x50c   : > { %3129 = vrot.lane.b32.xlu0 %v6953_v38, %s4572_s26  ;;  %3223 = vrot.lane.b32.xlu1 %v9188_v8, %s4573_s27 }
 0x50e   : > { %v3296_v0 = vpop.permute.xlu0 %3295  ;;  %v2913_v40 = vpop.permute.xlu1 %2912 }
 0x50f   : > { %v3611_v42 = vsel %vm1487_vm10, %v3579_v21, %v3296_v0  ;;  %v3486_v1 = vsel %vm1355_vm6, %v3454_v36, %v2913_v40  ;;  %v9195_v21 = vld [vmem:[#allocation3_spill] sm:$0xff] }
 0x510   : > { %2934 = vrot.lane.b32.xlu0 %v9188_v8, %s4570_s24  ;;  %3225 = vrot.lane.b32.xlu1 %v9189_v47, %s4573_s27  ;;  %v9203_v36 = vld [vmem:[#allocation123_spill] sm:$0xff] }
 0x511   : > { %4313 = vmatprep.mubr.msk.f32.mxu1 %vm1525_vm11, %v3611_v42  ;;  %v3423_v42 = vsel %vm1289_vm4, %v3391_v7, %v7460_v14  ;;  %v3424_v14 = vsel %vm1289_vm4, %v3392_v50, %v7473_v4  ;;  %v9197_v4 = vld [vmem:[#allocation50_spill] sm:$0xff] }
 0x512   : > { %v3012_v10 = vpop.permute.xlu0 %3011  ;;  %v3298_v35 = vpop.permute.xlu1 %3297  ;;  %v3455_v15 = vsel %vm1322_vm5, %v3423_v42, %v7601_v54 }
 0x513   : > { %v3612_v17 = vsel %vm1487_vm10, %v3580_v63, %v3298_v35  ;;  %v3517_v28 = vsel %vm1388_vm7, %v3485_v33, %v3012_v10  ;;  %v9196_v10 = vld [vmem:[#allocation135_spill] sm:$0xff]  ;;  %v3456_v35 = vsel %vm1322_vm5, %v3424_v14, %v7607_v57 }
 0x514   : > { %3319 = vrot.lane.b32.xlu0 %v9190_v11, %s4574_s12  ;;  %2936 = vrot.lane.b32.xlu1 %v9189_v47, %s4570_s24 }
 0x515   : > { %4314 = vmatmul.mubr.msk.f32.gmra.mxu1 %vm1525_vm11, %v3612_v17 }
 0x516   : > { %v3014_v25 = vpop.permute.xlu0 %3013  ;;  %v3108_v30 = vpop.permute.xlu1 %3107 }
 0x517   : > { %v3549_v37 = vsel %vm1421_vm8, %v3517_v28, %v3108_v30  ;;  %v3518_v56 = vsel %vm1388_vm7, %v3486_v1, %v3014_v25  ;;  %v9200_v28 = vld [vmem:[#allocation29_spill] sm:$0xff] }
 0x518   : > { %3035 = vrot.lane.b32.xlu0 %v9190_v11, %s4571_s25  ;;  %3321 = vrot.lane.b32.xlu1 %v9191_v19, %s4574_s12 }
 0x51a   : > { %v3110_v18 = vpop.permute.xlu0 %3109  ;;  %v3204_v52 = vpop.permute.xlu1 %3203 }
 0x51b   : > { %v3581_v29 = vsel %vm1454_vm9, %v3549_v37, %v3204_v52  ;;  %v3550_v16 = vsel %vm1421_vm8, %v3518_v56, %v3110_v18  ;;  %v9202_v37 = vld [vmem:[#allocation82_spill] sm:$0xff] }
 0x51c   : > { %3037 = vrot.lane.b32.xlu0 %v9191_v19, %s4571_s25  ;;  %3131 = vrot.lane.b32.xlu1 %v6980_v9, %s4572_s26 }
 0x51e   : > { %v2915_v20 = vpop.permute.xlu0 %2914  ;;  %v3206_v23 = vpop.permute.xlu1 %3205 }
 0x51f   : > { %v3582_v31 = vsel %vm1454_vm9, %v3550_v16, %v3206_v23  ;;  %v3487_v63 = vsel %vm1355_vm6, %v3455_v15, %v2915_v20  ;;  %v9199_v23 = vld [vmem:[#allocation15_spill] sm:$0xff] }
 0x520   : > { %3133 = vrot.lane.b32.xlu0 %v6977_v55, %s4572_s26  ;;  %3227 = vrot.lane.b32.xlu1 %v9192_v39, %s4573_s27  ;;  %v9206_v16 = vld [vmem:[#allocation43_spill] sm:$0xff] }
 0x522   : > { %v3300_v13 = vpop.permute.xlu0 %3299  ;;  %v2917_v58 = vpop.permute.xlu1 %2916 }
 0x523   : > { %v3613_v46 = vsel %vm1487_vm10, %v3581_v29, %v3300_v13  ;;  %v3488_v53 = vsel %vm1355_vm6, %v3456_v35, %v2917_v58  ;;  %v9204_v13 = vld [vmem:[#allocation98_spill] sm:$0xff] }
 0x524   : > { %2938 = vrot.lane.b32.xlu0 %v9192_v39, %s4570_s24  ;;  %3229 = vrot.lane.b32.xlu1 %v9193_v27, %s4573_s27  ;;  %v9201_v39 = vld [vmem:[#allocation132_spill] sm:$0xff]  ;;  %v9212_v35 = vld [vmem:[#allocation34_spill] sm:$0xff] }
 0x525   : > { %4316 = vmatprep.mubr.msk.f32.mxu1 %vm1525_vm11, %v3613_v46  ;;  %v3393_v32 = vsel %vm1256_vm3, %v9201_v39, %v9200_v28 }
 0x526   : > { %v3016_v3 = vpop.permute.xlu0 %3015  ;;  %v3302_v51 = vpop.permute.xlu1 %3301  ;;  %v3425_v29 = vsel %vm1289_vm4, %v3393_v32, %v9203_v36  ;;  %v9221_v32 = vld [vmem:[#allocation116_spill] sm:$0xff] }
 0x527   : > { %v3614_v8 = vsel %vm1487_vm10, %v3582_v31, %v3302_v51  ;;  %v3519_v2 = vsel %vm1388_vm7, %v3487_v63, %v3016_v3  ;;  %v3457_v58 = vsel %vm1322_vm5, %v3425_v29, %v9204_v13  ;;  %v9207_v51 = vld [vmem:[#allocation51_spill] sm:$0xff]  ;;  %v9222_v36 = vld [vmem:[#allocation84_spill] sm:$0xff]  ;;  %v9223_v29 = vld [vmem:[#allocation9_spill] sm:$0xff] }
 0x528   : > { %3323 = vrot.lane.b32.xlu0 %v9194_v60, %s4574_s12  ;;  %2940 = vrot.lane.b32.xlu1 %v9193_v27, %s4570_s24  ;;  %v9205_v27 = vld [vmem:[#allocation121_spill] sm:$0xff]  ;;  %v9211_v63 = vld [vmem:[#allocation83_spill] sm:$0xff] }
 0x529   : > { %4317 = vmatmul.mubr.msk.f32.gmra.mxu1 %vm1525_vm11, %v3614_v8  ;;  %v3394_v31 = vsel %vm1256_vm3, %v9206_v16, %v9205_v27  ;;  %v9208_v8 = vld [vmem:[#allocation115_spill] sm:$0xff] }
 0x52a   : > { %v3018_v22 = vpop.permute.xlu0 %3017  ;;  %v3112_v62 = vpop.permute.xlu1 %3111 }
 0x52b   : > { %v3551_v54 = vsel %vm1421_vm8, %v3519_v2, %v3112_v62  ;;  %v3520_v30 = vsel %vm1388_vm7, %v3488_v53, %v3018_v22 }
 0x52c   : > { %3039 = vrot.lane.b32.xlu0 %v9194_v60, %s4571_s25  ;;  %3325 = vrot.lane.b32.xlu1 %v9195_v21, %s4574_s12  ;;  %v9209_v60 = vld [vmem:[#allocation142_spill] sm:$0xff] }
 0x52d   : > { %v3426_v22 = vsel %vm1289_vm4, %v3394_v31, %v9209_v60  ;;  %v9225_v60 = vld [vmem:[#allocation53_spill] sm:$0xff] }
 0x52e   : > { %v3114_v0 = vpop.permute.xlu0 %3113  ;;  %v3208_v40 = vpop.permute.xlu1 %3207 }
 0x52f   : > { %v3583_v17 = vsel %vm1454_vm9, %v3551_v54, %v3208_v40  ;;  %v3552_v19 = vsel %vm1421_vm8, %v3520_v30, %v3114_v0  ;;  %v9214_v30 = vld [vmem:[#allocation138_spill] sm:$0xff] }
 0x530   : > { %3041 = vrot.lane.b32.xlu0 %v9195_v21, %s4571_s25  ;;  %3135 = vrot.lane.b32.xlu1 %v7004_v44, %s4572_s26  ;;  %v9210_v21 = vld [vmem:[#allocation125_spill] sm:$0xff] }
 0x531   : > { %v3458_v0 = vsel %vm1322_vm5, %v3426_v22, %v9210_v21 }
 0x532   : > { %v2919_v47 = vpop.permute.xlu0 %2918  ;;  %v3210_v41 = vpop.permute.xlu1 %3209 }
 0x533   : > { %v3584_v57 = vsel %vm1454_vm9, %v3552_v19, %v3210_v41  ;;  %v3489_v56 = vsel %vm1355_vm6, %v3457_v58, %v2919_v47 }
 0x534   : > { %3137 = vrot.lane.b32.xlu0 %v7001_v24, %s4572_s26  ;;  %3231 = vrot.lane.b32.xlu1 %v9196_v10, %s4573_s27 }
 0x536   : > { %v3304_v11 = vpop.permute.xlu0 %3303  ;;  %v2921_v5 = vpop.permute.xlu1 %2920 }
 0x537   : > { %v3615_v25 = vsel %vm1487_vm10, %v3583_v17, %v3304_v11  ;;  %v3490_v15 = vsel %vm1355_vm6, %v3458_v0, %v2921_v5  ;;  %v9213_v5 = vld [vmem:[#allocation58_spill] sm:$0xff] }
 0x538   : > { %2942 = vrot.lane.b32.xlu0 %v9196_v10, %s4570_s24  ;;  %3233 = vrot.lane.b32.xlu1 %v9197_v4, %s4573_s27 }
 0x539   : > { %4319 = vmatprep.mubr.msk.f32.mxu1 %vm1525_vm11, %v3615_v25 }
 0x53a   : > { %v3020_v18 = vpop.permute.xlu0 %3019  ;;  %v3306_v52 = vpop.permute.xlu1 %3305 }
 0x53b   : > { %v3616_v43 = vsel %vm1487_vm10, %v3584_v57, %v3306_v52  ;;  %v3521_v3 = vsel %vm1388_vm7, %v3489_v56, %v3020_v18  ;;  %v9216_v57 = vld [vmem:[#allocation52_spill] sm:$0xff]  ;;  %v9217_v18 = vld [vmem:[#allocation143_spill] sm:$0xff] }
 0x53c   : > { %3327 = vrot.lane.b32.xlu0 %v9198_v34, %s4574_s12  ;;  %2944 = vrot.lane.b32.xlu1 %v9197_v4, %s4570_s24  ;;  %v9215_v4 = vld [vmem:[#allocation108_spill] sm:$0xff] }
 0x53d   : > { %4320 = vmatmul.mubr.msk.f32.gmra.mxu1 %vm1525_vm11, %v3616_v43  ;;  %v3395_v19 = vsel %vm1256_vm3, %v9215_v4, %v9214_v30  ;;  %v9218_v43 = vld [vmem:[#allocation126_spill] sm:$0xff] }
 0x53e   : > { %v3022_v26 = vpop.permute.xlu0 %3021  ;;  %v3116_v20 = vpop.permute.xlu1 %3115  ;;  %v3427_v52 = vsel %vm1289_vm4, %v3395_v19, %v9217_v18  ;;  %v9233_v30 = vld [vmem:[#allocation6_spill] sm:$0xff] }
 0x53f   : > { %v3553_v62 = vsel %vm1421_vm8, %v3521_v3, %v3116_v20  ;;  %v3522_v41 = vsel %vm1388_vm7, %v3490_v15, %v3022_v26  ;;  %v9234_v4 = vld [vmem:[#allocation134_spill] sm:$0xff] }
 0x540   : > { %3043 = vrot.lane.b32.xlu0 %v9198_v34, %s4571_s25  ;;  %3329 = vrot.lane.b32.xlu1 %v9199_v23, %s4574_s12  ;;  %v3459_v34 = vsel %vm1322_vm5, %v3427_v52, %v9218_v43  ;;  %v3398_v19 = vsel %vm1256_vm3, %v9234_v4, %v9233_v30  ;;  %v9235_v52 = vld [vmem:[#allocation85_spill] sm:$0xff]  ;;  %v9236_v43 = vld [vmem:[#allocation54_spill] sm:$0xff] }
 0x542   : > { %v3118_v33 = vpop.permute.xlu0 %3117  ;;  %v3212_v12 = vpop.permute.xlu1 %3211 }
 0x543   : > { %v3585_v40 = vsel %vm1454_vm9, %v3553_v62, %v3212_v12  ;;  %v3554_v50 = vsel %vm1421_vm8, %v3522_v41, %v3118_v33  ;;  %v9219_v33 = vld [vmem:[#allocation139_spill] sm:$0xff] }
 0x544   : > { %3045 = vrot.lane.b32.xlu0 %v9199_v23, %s4571_s25  ;;  %3139 = vrot.lane.b32.xlu1 %v9202_v37, %s4572_s26  ;;  %v9220_v12 = vld [vmem:[#allocation107_spill] sm:$0xff] }
 0x545   : > { %v3396_v28 = vsel %vm1256_vm3, %v9220_v12, %v9219_v33  ;;  %v9238_v33 = vld [vmem:[#allocation13_spill] sm:$0xff] }
 0x546   : > { %v2923_v1 = vpop.permute.xlu0 %2922  ;;  %v3214_v46 = vpop.permute.xlu1 %3213  ;;  %v3428_v13 = vsel %vm1289_vm4, %v3396_v28, %v9223_v29 }
 0x547   : > { %v3586_v2 = vsel %vm1454_vm9, %v3554_v50, %v3214_v46  ;;  %v3491_v23 = vsel %vm1355_vm6, %v3459_v34, %v2923_v1  ;;  %v9224_v46 = vld [vmem:[#allocation146_spill] sm:$0xff]  ;;  %v9228_v50 = vld [vmem:[#allocation5_spill] sm:$0xff] }
 0x548   : > { %3141 = vrot.lane.b32.xlu0 %v9207_v51, %s4572_s26  ;;  %3235 = vrot.lane.b32.xlu1 %v9208_v8, %s4573_s27  ;;  %v3460_v1 = vsel %vm1322_vm5, %v3428_v13, %v9224_v46  ;;  %v9237_v34 = vld [vmem:[#allocation37_spill] sm:$0xff] }
 0x54a   : > { %v3308_v7 = vpop.permute.xlu0 %3307  ;;  %v2925_v42 = vpop.permute.xlu1 %2924 }
 0x54b   : > { %v3617_v47 = vsel %vm1487_vm10, %v3585_v40, %v3308_v7  ;;  %v3492_v31 = vsel %vm1355_vm6, %v3460_v1, %v2925_v42  ;;  %v9226_v7 = vld [vmem:[#allocation45_spill] sm:$0xff] }
 0x54c   : > { %2946 = vrot.lane.b32.xlu0 %v9208_v8, %s4570_s24  ;;  %3237 = vrot.lane.b32.xlu1 %v9211_v63, %s4573_s27 }
 0x54d   : > { %4322 = vmatprep.mubr.msk.f32.mxu1 %vm1525_vm11, %v3617_v47  ;;  %v9227_v47 = vld [vmem:[#allocation89_spill] sm:$0xff] }
 0x54e   : > { %v3024_v10 = vpop.permute.xlu0 %3023  ;;  %v3310_v14 = vpop.permute.xlu1 %3309 }
 0x54f   : > { %v3618_v54 = vsel %vm1487_vm10, %v3586_v2, %v3310_v14  ;;  %v3523_v39 = vsel %vm1388_vm7, %v3491_v23, %v3024_v10  ;;  %v9229_v2 = vld [vmem:[#allocation47_spill] sm:$0xff]  ;;  %v9230_v14 = vld [vmem:[#allocation117_spill] sm:$0xff] }
 0x550   : > { %3331 = vrot.lane.b32.xlu0 %v9212_v35, %s4574_s12  ;;  %2948 = vrot.lane.b32.xlu1 %v9211_v63, %s4570_s24  ;;  %v3397_v10 = vsel %vm1256_vm3, %v9229_v2, %v9228_v50 }
 0x551   : > { %4323 = vmatmul.mubr.msk.f32.gmra.mxu1 %vm1525_vm11, %v3618_v54  ;;  %v9231_v54 = vld [vmem:[#allocation10_spill] sm:$0xff] }
 0x552   : > { %v3026_v17 = vpop.permute.xlu0 %3025  ;;  %v3120_v11 = vpop.permute.xlu1 %3119 }
 0x553   : > { %v3555_v58 = vsel %vm1421_vm8, %v3523_v39, %v3120_v11  ;;  %v3524_v8 = vsel %vm1388_vm7, %v3492_v31, %v3026_v17  ;;  %v9232_v17 = vld [vmem:[#allocation147_spill] sm:$0xff] }
 0x554   : > { %3047 = vrot.lane.b32.xlu0 %v9212_v35, %s4571_s25  ;;  %3333 = vrot.lane.b32.xlu1 %v9213_v5, %s4574_s12  ;;  %v3429_v35 = vsel %vm1289_vm4, %v3397_v10, %v9231_v54  ;;  %v9240_v31 = vld [vmem:[#allocation59_spill] sm:$0xff]  ;;  %v9248_v10 = vld [vmem:[#allocation14_spill] sm:$0xff] }
 0x555   : > { %v3461_v11 = vsel %vm1322_vm5, %v3429_v35, %v9232_v17 }
 0x556   : > { %v3122_v53 = vpop.permute.xlu0 %3121  ;;  %v3216_v25 = vpop.permute.xlu1 %3215 }
 0x557   : > { %v3587_v56 = vsel %vm1454_vm9, %v3555_v58, %v3216_v25  ;;  %v3556_v22 = vsel %vm1421_vm8, %v3524_v8, %v3122_v53  ;;  %v9239_v58 = vld [vmem:[#allocation118_spill] sm:$0xff] }
 0x558   : > { %3049 = vrot.lane.b32.xlu0 %v9213_v5, %s4571_s25  ;;  %3143 = vrot.lane.b32.xlu1 %v9216_v57, %s4572_s26 }
 0x55a   : > { %v2927_v26 = vpop.permute.xlu0 %2926  ;;  %v3218_v20 = vpop.permute.xlu1 %3217 }
 0x55b   : > { %v3588_v62 = vsel %vm1454_vm9, %v3556_v22, %v3218_v20  ;;  %v3493_v25 = vsel %vm1355_vm6, %v3461_v11, %v2927_v26  ;;  %v3430_v20 = vsel %vm1289_vm4, %v3398_v19, %v9237_v34  ;;  %v9250_v19 = vld [vmem:[#allocation64_spill] sm:$0xff]  ;;  %v9251_v34 = vld [vmem:[#allocation21_spill] sm:$0xff] }
 0x55c   : > { %3145 = vrot.lane.b32.xlu0 %v9221_v32, %s4572_s26  ;;  %3239 = vrot.lane.b32.xlu1 %v9222_v36, %s4573_s27  ;;  %v3462_v26 = vsel %vm1322_vm5, %v3430_v20, %v9238_v33 }
 0x55e   : > { %v3312_v27 = vpop.permute.xlu0 %3311  ;;  %v2929_v16 = vpop.permute.xlu1 %2928 }
 0x55f   : > { %v3619_v3 = vsel %vm1487_vm10, %v3587_v56, %v3312_v27 }
 0x560   : > { %2950 = vrot.lane.b32.xlu0 %v9222_v36, %s4570_s24  ;;  %3241 = vrot.lane.b32.xlu1 %v9225_v60, %s4573_s27  ;;  %v3494_v36 = vsel %vm1355_vm6, %v3462_v26, %v2929_v16 }
 0x561   : > { %4325 = vmatprep.mubr.msk.f32.mxu1 %vm1525_vm11, %v3619_v3 }
 0x562   : > { %v3028_v21 = vpop.permute.xlu0 %3027  ;;  %v3314_v0 = vpop.permute.xlu1 %3313 }
 0x563   : > { %v3620_v40 = vsel %vm1487_vm10, %v3588_v62, %v3314_v0  ;;  %v3525_v18 = vsel %vm1388_vm7, %v3493_v25, %v3028_v21  ;;  %v9242_v21 = vld [vmem:[#allocation94_spill] sm:$0xff] }
 0x564   : > { %3335 = vrot.lane.b32.xlu0 %v9226_v7, %s4574_s12  ;;  %2952 = vrot.lane.b32.xlu1 %v9225_v60, %s4570_s24  ;;  %v9241_v60 = vld [vmem:[#allocation90_spill] sm:$0xff]  ;;  %v2893_v0 = vrot.slane %v9242_v21, 1 }
 0x565   : > { %4326 = vmatmul.mubr.msk.f32.gmra.mxu1 %vm1525_vm11, %v3620_v40  ;;  %v9243_v40 = vld [vmem:[#allocation31_spill] sm:$0xff] }
 0x566   : > { %v3030_v42 = vpop.permute.xlu0 %3029  ;;  %v3124_v15 = vpop.permute.xlu1 %3123  ;;  %v2995_v26 = vrot.slane %v9243_v40, 2 }
 0x567   : > { %v3557_v23 = vsel %vm1421_vm8, %v3525_v18, %v3124_v15  ;;  %v3526_v13 = vsel %vm1388_vm7, %v3494_v36, %v3030_v42  ;;  %v9244_v42 = vld [vmem:[#allocation16_spill] sm:$0xff] }
 0x568   : > { %3051 = vrot.lane.b32.xlu0 %v9226_v7, %s4571_s25  ;;  %3337 = vrot.lane.b32.xlu1 %v9227_v47, %s4574_s12  ;;  %v2894_v7 = vrot.slane %v9243_v40, 1  ;;  %v3399_v15 = vsel %vm1256_vm3, %v6904_v6, %v9244_v42  ;;  %v9255_v42 = vld [vmem:[#allocation22_spill] sm:$0xff] }
 0x56a   : > { %v3126_v41 = vpop.permute.xlu0 %3125  ;;  %v3220_v63 = vpop.permute.xlu1 %3219  ;;  %v2895_v11 = vsel %vm300_vm0, %v2893_v0, %v2894_v7 }
 0x56b   : > { %v3589_v12 = vsel %vm1454_vm9, %v3557_v23, %v3220_v63  ;;  %v3558_v46 = vsel %vm1421_vm8, %v3526_v13, %v3126_v41  ;;  %v9246_v63 = vld [vmem:[#allocation93_spill] sm:$0xff] }
 0x56c   : > { %3053 = vrot.lane.b32.xlu0 %v9227_v47, %s4571_s25  ;;  %3147 = vrot.lane.b32.xlu1 %v9230_v14, %s4572_s26  ;;  %v9245_v47 = vld [vmem:[#allocation19_spill] sm:$0xff]  ;;  %v9247_v50 = vrot.slane %v9246_v63, 7  ;;  %v9256_v63 = vld [vmem:[#allocation61_spill] sm:$0xff] }
 0x56d   : > { %v3431_v41 = vsel %vm1289_vm4, %v3399_v15, %v9245_v47 }
 0x56e   : > { %v2931_v5 = vpop.permute.xlu0 %2930  ;;  %v3222_v53 = vpop.permute.xlu1 %3221  ;;  %v2410_v2 = vsel %vm2277_vm12, %v9247_v50, 0.0  ;;  %v3463_v54 = vsel %vm1322_vm5, %v3431_v41, %v9248_v10  ;;  %v3402_v50 = vsel %vm1256_vm3, %v6929_v59, %v9256_v63  ;;  %v9258_v10 = vld [vmem:[#allocation55_spill] sm:$0xff] }
 0x56f   : > { %v3590_v1 = vsel %vm1454_vm9, %v3558_v46, %v3222_v53  ;;  %v3495_v6 = vsel %vm1355_vm6, %v3463_v54, %v2931_v5  ;;  %v9249_v53 = vld [vmem:[#allocation35_spill] sm:$0xff]  ;;  %v2896_v4 = vrot.slane %v2410_v2, 1  ;;  %v2994_v5 = vrot.slane %v9242_v21, 2 }
 0x570   : > { %3149 = vrot.lane.b32.xlu0 %v9235_v52, %s4572_s26  ;;  %3243 = vrot.lane.b32.xlu1 %v9236_v43, %s4573_s27  ;;  %v3400_v25 = vsel %vm1256_vm3, %v6901_v48, %v9249_v53  ;;  %v9259_v54 = vld [vmem:[#allocation95_spill] sm:$0xff] }
 0x571   : > { %v3432_v18 = vsel %vm1289_vm4, %v3400_v25, %v9250_v19  ;;  %v2897_v36 = vsel %vm300_vm0, %v2894_v7, %v2896_v4 }
 0x572   : > { %v3316_v28 = vpop.permute.xlu0 %3315  ;;  %v2933_v39 = vpop.permute.xlu1 %2932  ;;  %v3464_v20 = vsel %vm1322_vm5, %v3432_v18, %v9251_v34 }
 0x573   : > { %v3621_v29 = vsel %vm1487_vm10, %v3589_v12, %v3316_v28  ;;  %v3496_v12 = vsel %vm1355_vm6, %v3464_v20, %v2933_v39 }
 0x574   : > { %2954 = vrot.lane.b32.xlu0 %v9236_v43, %s4570_s24  ;;  %3245 = vrot.lane.b32.xlu1 %v9239_v58, %s4573_s27 }
 0x575   : > { %4328 = vmatprep.mubr.msk.f32.mxu1 %vm1525_vm11, %v3621_v29 }
 0x576   : > { %v3032_v56 = vpop.permute.xlu0 %3031  ;;  %v3318_v27 = vpop.permute.xlu1 %3317 }
 0x577   : > { %v3622_v16 = vsel %vm1487_vm10, %v3590_v1, %v3318_v27  ;;  %v3527_v30 = vsel %vm1388_vm7, %v3495_v6, %v3032_v56  ;;  %v2996_v56 = vsel %vm477_vm1, %v2994_v5, %v2995_v26  ;;  %v2997_v27 = vrot.slane %v2410_v2, 2  ;;  %v9257_v2 = vld [vmem:[#allocation75_spill] sm:$0xff] }
 0x578   : > { %3339 = vrot.lane.b32.xlu0 %v9240_v31, %s4574_s12  ;;  %2956 = vrot.lane.b32.xlu1 %v9239_v58, %s4570_s24 }
 0x579   : > { %4329 = vmatmul.mubr.msk.f32.gmra.mxu1 %vm1525_vm11, %v3622_v16 }
 0x57a   : > { %v3034_v3 = vpop.permute.xlu0 %3033  ;;  %v3128_v8 = vpop.permute.xlu1 %3127 }
 0x57b   : > { %v3559_v43 = vsel %vm1421_vm8, %v3527_v30, %v3128_v8  ;;  %v3528_v29 = vsel %vm1388_vm7, %v3496_v12, %v3034_v3  ;;  %v2998_v3 = vsel %vm477_vm1, %v2995_v26, %v2997_v27  ;;  %v9252_v8 = vld [vmem:[#allocation74_spill] sm:$0xff]  ;;  %v9261_v12 = vld [vmem:[#allocation91_spill] sm:$0xff] }
 0x57c   : > { %3055 = vrot.lane.b32.xlu0 %v9240_v31, %s4571_s25  ;;  %3341 = vrot.lane.b32.xlu1 %v9241_v60, %s4574_s12 }
 0x57e   : > { %v3130_v22 = vpop.permute.xlu0 %3129  ;;  %v3224_v62 = vpop.permute.xlu1 %3223 }
 0x57f   : > { %v3591_v48 = vsel %vm1454_vm9, %v3559_v43, %v3224_v62  ;;  %v3560_v13 = vsel %vm1421_vm8, %v3528_v29, %v3130_v22 }
 0x580   : > { %3057 = vrot.lane.b32.xlu0 %v9241_v60, %s4571_s25  ;;  %3151 = vrot.lane.b32.xlu1 %v9242_v21, %s4572_s26  ;;  %v4384_v60 = vpack.i.bf16 %v9178_v45, %v9252_v8  ;;  %v9253_v21 = vld [vmem:[#allocation60_spill] sm:$0xff] }
 0x581   : > { %v3401_v0 = vsel %vm1256_vm3, %v6932_v49, %v9253_v21 }
 0x582   : > { %v2935_v35 = vpop.permute.xlu0 %2934  ;;  %v3226_v17 = vpop.permute.xlu1 %3225 }
 0x583   : > { %v3592_v58 = vsel %vm1454_vm9, %v3560_v13, %v3226_v17  ;;  %v3434_v17 = vsel %vm1289_vm4, %v3402_v50, %v9259_v54  ;;  %v9263_v13 = vld [vmem:[#allocation69_spill] sm:$0xff]  ;;  %v9267_v54 = vld [vmem:[#allocation30_spill] sm:$0xff] }
 0x584   : > { %3153 = vrot.lane.b32.xlu0 %v9243_v40, %s4572_s26  ;;  %3247 = vrot.lane.b32.xlu1 %v2895_v11, %s4573_s27  ;;  %v9254_v40 = vld [vmem:[#allocation65_spill] sm:$0xff] }
 0x585   : > { %v3433_v7 = vsel %vm1289_vm4, %v3401_v0, %v9254_v40 }
 0x586   : > { %v3320_v23 = vpop.permute.xlu0 %3319  ;;  %v2937_v33 = vpop.permute.xlu1 %2936  ;;  %v3465_v15 = vsel %vm1322_vm5, %v3433_v7, %v9255_v42 }
 0x587   : > { %v3623_v28 = vsel %vm1487_vm10, %v3591_v48, %v3320_v23  ;;  %v3497_v45 = vsel %vm1355_vm6, %v3465_v15, %v2935_v35 }
 0x588   : > { %2958 = vrot.lane.b32.xlu0 %v2895_v11, %s4570_s24  ;;  %3249 = vrot.lane.b32.xlu1 %v2897_v36, %s4573_s27  ;;  %v9260_v11 = vld [vmem:[#allocation68_spill] sm:$0xff] }
 0x589   : > { %4331 = vmatprep.mubr.msk.f32.mxu1 %vm1525_vm11, %v3623_v28  ;;  %v3466_v35 = vsel %vm1322_vm5, %v3434_v17, %v9260_v11  ;;  %v3403_v28 = vsel %vm1256_vm3, %v6956_v61, %v9261_v12  ;;  %v3405_v17 = vsel %vm1256_vm3, %v6980_v9, %v9267_v54 }
 0x58a   : > { %v3036_v46 = vpop.permute.xlu0 %3035  ;;  %v3322_v1 = vpop.permute.xlu1 %3321  ;;  %v3498_v30 = vsel %vm1355_vm6, %v3466_v35, %v2937_v33  ;;  %v9269_v35 = vld [vmem:[#allocation100_spill] sm:$0xff] }
 0x58b   : > { %v3624_v39 = vsel %vm1487_vm10, %v3592_v58, %v3322_v1  ;;  %v3529_v49 = vsel %vm1388_vm7, %v3497_v45, %v3036_v46 }
 0x58c   : > { %3343 = vrot.lane.b32.xlu0 %v2996_v56, %s4574_s12  ;;  %2960 = vrot.lane.b32.xlu1 %v2897_v36, %s4570_s24  ;;  %s4164_s24 = sshll.u32 %s9298_s16, 8  ;;  %v9262_v36 = vld [vmem:[#allocation96_spill] sm:$0xff] }
 0x58d   : > { %4332 = vmatmul.mubr.msk.f32.gmra.mxu1 %vm1525_vm11, %v3624_v39  ;;  %v3435_v29 = vsel %vm1289_vm4, %v3403_v28, %v9262_v36 }
 0x58e   : > { %v3038_v16 = vpop.permute.xlu0 %3037  ;;  %v3132_v31 = vpop.permute.xlu1 %3131  ;;  %v3467_v58 = vsel %vm1322_vm5, %v3435_v29, %v9263_v13 }
 0x58f   : > { %v3561_v6 = vsel %vm1421_vm8, %v3529_v49, %v3132_v31  ;;  %v3530_v19 = vsel %vm1388_vm7, %v3498_v30, %v3038_v16  ;;  %v9265_v16 = vld [vmem:[#allocation32_spill] sm:$0xff] }
 0x590   : > { %3059 = vrot.lane.b32.xlu0 %v2996_v56, %s4571_s25  ;;  %3345 = vrot.lane.b32.xlu1 %v2998_v3, %s4574_s12  ;;  %v9264_v56 = vld [vmem:[#allocation92_spill] sm:$0xff] }
 0x591   : > { %v3404_v61 = vsel %vm1256_vm3, %v6953_v38, %v9264_v56 }
 0x592   : > { %v3134_v22 = vpop.permute.xlu0 %3133  ;;  %v3228_v62 = vpop.permute.xlu1 %3227  ;;  %v3436_v31 = vsel %vm1289_vm4, %v3404_v61, %v9265_v16  ;;  %v9273_v16 = vld [vmem:[#allocation140_spill] sm:$0xff] }
 0x593   : > { %v3593_v53 = vsel %vm1454_vm9, %v3561_v6, %v3228_v62  ;;  %v3562_v18 = vsel %vm1421_vm8, %v3530_v19, %v3134_v22  ;;  %v9268_v6 = vld [vmem:[#allocation124_spill] sm:$0xff] }
 0x594   : > { %3061 = vrot.lane.b32.xlu0 %v2998_v3, %s4571_s25  ;;  %4385 = vrot.lane.b32.xlu1 %v4384_v60, %s4572_s26  ;;  %v9266_v60 = vld [vmem:[#allocation99_spill] sm:$0xff]  ;;  %v3437_v11 = vsel %vm1289_vm4, %v3405_v17, %v9268_v6 }
 0x595   : > { %v3468_v22 = vsel %vm1322_vm5, %v3436_v31, %v9266_v60  ;;  %v3407_v31 = vsel %vm1256_vm3, %v7004_v44, %v9273_v16  ;;  %v9275_v60 = vld [vmem:[#allocation128_spill] sm:$0xff] }
 0x596   : > { %v2939_v47 = vpop.permute.xlu0 %2938  ;;  %v3230_v41 = vpop.permute.xlu1 %3229 }
 0x597   : > { %v3594_v43 = vsel %vm1454_vm9, %v3562_v18, %v3230_v41  ;;  %v3499_v39 = vsel %vm1355_vm6, %v3467_v58, %v2939_v47 }
 0x598   : > { %4390 = vrot.lane.b32.xlu0 %v9257_v2, %s4573_s27  ;;  %4395 = vrot.lane.b32.xlu1 %v9258_v10, %s4574_s12  ;;  %s8173_s27 = scalar_lea.vmem %s8394_s4, %s4164_s24 }
 0x59a   : > { %v3324_v25 = vpop.permute.xlu0 %3323  ;;  %v2941_v59 = vpop.permute.xlu1 %2940 }
 0x59b   : > { %v3625_v4 = vsel %vm1487_vm10, %v3593_v53, %v3324_v25  ;;  %v3500_v40 = vsel %vm1355_vm6, %v3468_v22, %v2941_v59  ;;  %v3469_v53 = vsel %vm1322_vm5, %v3437_v11, %v9269_v35 }
 0x59c   : > { %4334 = vmatprep.mubr.msk.f32.mxu1 %vm1525_vm11, %v3625_v4  ;;  %v9270_v4 = vld [vmem:[#allocation122_spill] sm:$0xff] }
 0x59d   : > { %v3406_v19 = vsel %vm1256_vm3, %v6977_v55, %v9270_v4 }
 0x59e   : > { %v3040_v5 = vpop.permute.xlu0 %3039  ;;  %v3326_v34 = vpop.permute.xlu1 %3325 }
 0x59f   : > { %v3626_v20 = vsel %vm1487_vm10, %v3594_v43, %v3326_v34  ;;  %v3531_v27 = vsel %vm1388_vm7, %v3499_v39, %v3040_v5  ;;  %v9271_v43 = vld [vmem:[#allocation144_spill] sm:$0xff] }
 0x5a0   : > { %4335 = vmatmul.mubr.msk.f32.gmra.mxu1 %vm1525_vm11, %v3626_v20  ;;  %v3438_v9 = vsel %vm1289_vm4, %v3406_v19, %v9271_v43  ;;  %v9272_v20 = vld [vmem:[#allocation127_spill] sm:$0xff]  ;;  %v9280_v43 = vld [vmem:[#allocation12_spill] sm:$0xff] }
 0x5a1   : > { %v9279_v19 = vld [vmem:[#allocation7_spill] sm:$0xff] }
 0x5a2   : > { %v3042_v48 = vpop.permute.xlu0 %3041  ;;  %v3136_v23 = vpop.permute.xlu1 %3135 }
 0x5a3   : > { %v3563_v3 = vsel %vm1421_vm8, %v3531_v27, %v3136_v23  ;;  %v3532_v42 = vsel %vm1388_vm7, %v3500_v40, %v3042_v48  ;;  %v3470_v48 = vsel %vm1322_vm5, %v3438_v9, %v9272_v20  ;;  %v9276_v40 = vld [vmem:[#allocation141_spill] sm:$0xff] }
 0x5a6   : > { %v3138_v26 = vpop.permute.xlu0 %3137  ;;  %v3232_v33 = vpop.permute.xlu1 %3231 }
 0x5a7   : > { %v3595_v62 = vsel %vm1454_vm9, %v3563_v3, %v3232_v33  ;;  %v3564_v15 = vsel %vm1421_vm8, %v3532_v42, %v3138_v26  ;;  %v9274_v3 = vld [vmem:[#allocation145_spill] sm:$0xff]  ;;  %v9277_v42 = vld [vmem:[#allocation11_spill] sm:$0xff] }
 0x5aa   : > { %v2943_v46 = vpop.permute.xlu0 %2942  ;;  %v3234_v1 = vpop.permute.xlu1 %3233 }
 0x5ab   : > { %v3596_v47 = vsel %vm1454_vm9, %v3564_v15, %v3234_v1  ;;  %v3501_v30 = vsel %vm1355_vm6, %v3469_v53, %v2943_v46 }
 0x5ad   : > { %v4309_v8 = vpop.f32.mrf.mxu1 }
 0x5ae   : > { %3969 = vst.msk [vmem:[%s8173_s27 + $0x8] sm:$0xff] %vm1256_vm3, %v4309_v8  ;;  %v3328_v21 = vpop.permute.xlu0 %3327  ;;  %v2945_v0 = vpop.permute.xlu1 %2944  ;;  %v3439_v8 = vsel %vm1289_vm4, %v3407_v31, %v9274_v3 }
 0x5af   : > { %v3627_v38 = vsel %vm1487_vm10, %v3595_v62, %v3328_v21  ;;  %v3809_v7 = vpop.f32.mrf.mxu1  ;;  %v3502_v12 = vsel %vm1355_vm6, %v3470_v48, %v2945_v0  ;;  %v3471_v22 = vsel %vm1322_vm5, %v3439_v8, %v9275_v60 }
 0x5b0   : > { %3968 = vst.msk [vmem:[%s8173_s27] sm:$0xff] %vm1256_vm3, %v3809_v7  ;;  %4337 = vmatprep.mubr.msk.f32.mxu1 %vm1525_vm11, %v3627_v38  ;;  %v3408_v38 = vsel %vm1256_vm3, %v7001_v24, %v9276_v40 }
 0x5b1   : > { %v3440_v44 = vsel %vm1289_vm4, %v3408_v38, %v9277_v42  ;;  %v9286_v38 = vld [vmem:[#allocation38_spill] sm:$0xff]  ;;  %v9287_v42 = vld [vmem:[#allocation155_spill] sm:$0xff] }
 0x5b2   : > { %v3044_v41 = vpop.permute.xlu0 %3043  ;;  %v3330_v45 = vpop.permute.xlu1 %3329 }
 0x5b3   : > { %v3628_v63 = vsel %vm1487_vm10, %v3596_v47, %v3330_v45  ;;  %v3533_v18 = vsel %vm1388_vm7, %v3501_v30, %v3044_v41  ;;  %v9278_v41 = vld [vmem:[#allocation148_spill] sm:$0xff] }
 0x5b4   : > { %4338 = vmatmul.mubr.msk.f32.gmra.mxu1 %vm1525_vm11, %v3628_v63  ;;  %v3472_v45 = vsel %vm1322_vm5, %v3440_v44, %v9278_v41 }
 0x5b6   : > { %v3046_v50 = vpop.permute.xlu0 %3045  ;;  %v3140_v49 = vpop.permute.xlu1 %3139 }
 0x5b7   : > { %v3565_v5 = vsel %vm1421_vm8, %v3533_v18, %v3140_v49  ;;  %v3534_v36 = vsel %vm1388_vm7, %v3502_v12, %v3046_v50  ;;  %v3409_v18 = vsel %vm1256_vm3, %v9202_v37, %v9279_v19 }
 0x5b8   : > { %v3441_v9 = vsel %vm1289_vm4, %v3409_v18, %v9280_v43  ;;  %v9291_v43 = vld [vmem:[#allocation63_spill] sm:$0xff] }
 0x5ba   : > { %v3142_v2 = vpop.permute.xlu0 %3141  ;;  %v3236_v10 = vpop.permute.xlu1 %3235 }
 0x5bb   : > { %v3597_v23 = vsel %vm1454_vm9, %v3565_v5, %v3236_v10  ;;  %v3566_v29 = vsel %vm1421_vm8, %v3534_v36, %v3142_v2  ;;  %v9281_v5 = vld [vmem:[#allocation149_spill] sm:$0xff] }
 0x5be   : > { %v2947_v25 = vpop.permute.xlu0 %2946  ;;  %v3238_v59 = vpop.permute.xlu1 %3237 }
 0x5bf   : > { %v3598_v13 = vsel %vm1454_vm9, %v3566_v29, %v3238_v59  ;;  %v3503_v0 = vsel %vm1355_vm6, %v3471_v22, %v2947_v25  ;;  %v9284_v29 = vld [vmem:[#allocation154_spill] sm:$0xff] }
 0x5c1   : > { %v4312_v34 = vpop.f32.mrf.mxu1 }
 0x5c2   : > { %3971 = vst.msk [vmem:[%s8173_s27 + $0x18] sm:$0xff] %vm1256_vm3, %v4312_v34  ;;  %v3332_v26 = vpop.permute.xlu0 %3331  ;;  %v2949_v33 = vpop.permute.xlu1 %2948  ;;  %v3473_v34 = vsel %vm1322_vm5, %v3441_v9, %v9281_v5  ;;  %v3414_v9 = vsel %vm1256_vm3, %v9235_v52, %v9291_v43  ;;  %v9292_v5 = vld [vmem:[#allocation62_spill] sm:$0xff] }
 0x5c3   : > { %v3629_v55 = vsel %vm1487_vm10, %v3597_v23, %v3332_v26  ;;  %v3819_v28 = vpop.f32.mrf.mxu1  ;;  %v3504_v2 = vsel %vm1355_vm6, %v3472_v45, %v2949_v33  ;;  %v9282_v26 = vld [vmem:[#allocation8_spill] sm:$0xff]  ;;  %v9288_v45 = vld [vmem:[#allocation18_spill] sm:$0xff] }
 0x5c4   : > { %3970 = vst.msk [vmem:[%s8173_s27 + $0x10] sm:$0xff] %vm1256_vm3, %v3819_v28  ;;  %4340 = vmatprep.mubr.msk.f32.mxu1 %vm1525_vm11, %v3629_v55  ;;  %v3410_v33 = vsel %vm1256_vm3, %v9207_v51, %v9282_v26  ;;  %v9283_v55 = vld [vmem:[#allocation20_spill] sm:$0xff] }
 0x5c5   : > { %v3442_v37 = vsel %vm1289_vm4, %v3410_v33, %v9283_v55  ;;  %v9294_v33 = vld [vmem:[#allocation67_spill] sm:$0xff]  ;;  %v9295_v55 = vld [vmem:[#allocation70_spill] sm:$0xff] }
 0x5c6   : > { %v3048_v58 = vpop.permute.xlu0 %3047  ;;  %v3334_v46 = vpop.permute.xlu1 %3333 }
 0x5c7   : > { %v3630_v1 = vsel %vm1487_vm10, %v3598_v13, %v3334_v46  ;;  %v3535_v7 = vsel %vm1388_vm7, %v3503_v0, %v3048_v58  ;;  %v3474_v13 = vsel %vm1322_vm5, %v3442_v37, %v9284_v29  ;;  %v9285_v0 = vld [vmem:[#allocation17_spill] sm:$0xff] }
 0x5c8   : > { %4341 = vmatmul.mubr.msk.f32.gmra.mxu1 %vm1525_vm11, %v3630_v1  ;;  %v3411_v40 = vsel %vm1256_vm3, %v9216_v57, %v9285_v0 }
 0x5ca   : > { %v3050_v39 = vpop.permute.xlu0 %3049  ;;  %v3144_v56 = vpop.permute.xlu1 %3143 }
 0x5cb   : > { %v3567_v15 = vsel %vm1421_vm8, %v3535_v7, %v3144_v56  ;;  %v3536_v54 = vsel %vm1388_vm7, %v3504_v2, %v3050_v39  ;;  %v3443_v7 = vsel %vm1289_vm4, %v3411_v40, %v9286_v38 }
 0x5cc   : > { %v3475_v44 = vsel %vm1322_vm5, %v3443_v7, %v9287_v42 }
 0x5ce   : > { %v3146_v61 = vpop.permute.xlu0 %3145  ;;  %v3240_v27 = vpop.permute.xlu1 %3239 }
 0x5cf   : > { %v3599_v63 = vsel %vm1454_vm9, %v3567_v15, %v3240_v27  ;;  %v3568_v17 = vsel %vm1421_vm8, %v3536_v54, %v3146_v61 }
 0x5d2   : > { %v2951_v62 = vpop.permute.xlu0 %2950  ;;  %v3242_v21 = vpop.permute.xlu1 %3241 }
 0x5d3   : > { %v3600_v6 = vsel %vm1454_vm9, %v3568_v17, %v3242_v21  ;;  %v3505_v23 = vsel %vm1355_vm6, %v3473_v34, %v2951_v62  ;;  %v3413_v34 = vsel %vm1256_vm3, %v9230_v14, %v9292_v5 }
 0x5d5   : > { %v4315_v47 = vpop.f32.mrf.mxu1 }
 0x5d6   : > { %3973 = vst.msk [vmem:[%s8173_s27 + $0x28] sm:$0xff] %vm1256_vm3, %v4315_v47  ;;  %v3336_v50 = vpop.permute.xlu0 %3335  ;;  %v2953_v49 = vpop.permute.xlu1 %2952 }
 0x5d7   : > { %v3631_v24 = vsel %vm1487_vm10, %v3599_v63, %v3336_v50  ;;  %v3829_v10 = vpop.f32.mrf.mxu1  ;;  %v3506_v39 = vsel %vm1355_vm6, %v3474_v13, %v2953_v49  ;;  %v3412_v63 = vsel %vm1256_vm3, %v9221_v32, %v9288_v45  ;;  %v9289_v49 = vld [vmem:[#allocation66_spill] sm:$0xff] }
 0x5d8   : > { %3972 = vst.msk [vmem:[%s8173_s27 + $0x20] sm:$0xff] %vm1256_vm3, %v3829_v10  ;;  %4343 = vmatprep.mubr.msk.f32.mxu1 %vm1525_vm11, %v3631_v24  ;;  %v3444_v57 = vsel %vm1289_vm4, %v3412_v63, %v9289_v49  ;;  %v9290_v10 = vld [vmem:[#allocation39_spill] sm:$0xff] }
 0x5d9   : > { %v3476_v54 = vsel %vm1322_vm5, %v3444_v57, %v9290_v10 }
 0x5da   : > { %v3052_v11 = vpop.permute.xlu0 %3051  ;;  %v3338_v35 = vpop.permute.xlu1 %3337 }
 0x5db   : > { %v3632_v53 = vsel %vm1487_vm10, %v3600_v6, %v3338_v35  ;;  %v3537_v12 = vsel %vm1388_vm7, %v3505_v23, %v3052_v11 }
 0x5dc   : > { %4344 = vmatmul.mubr.msk.f32.gmra.mxu1 %vm1525_vm11, %v3632_v53 }
 0x5de   : > { %v3054_v25 = vpop.permute.xlu0 %3053  ;;  %v3148_v59 = vpop.permute.xlu1 %3147 }
 0x5df   : > { %v3569_v28 = vsel %vm1421_vm8, %v3537_v12, %v3148_v59  ;;  %v3538_v61 = vsel %vm1388_vm7, %v3506_v39, %v3054_v25  ;;  %v3445_v12 = vsel %vm1289_vm4, %v3413_v34, %v9294_v33 }
 0x5e2   : > { %v3150_v30 = vpop.permute.xlu0 %3149  ;;  %v3244_v4 = vpop.permute.xlu1 %3243 }
 0x5e3   : > { %v3601_v58 = vsel %vm1454_vm9, %v3569_v28, %v3244_v4  ;;  %v3570_v27 = vsel %vm1421_vm8, %v3538_v61, %v3150_v30  ;;  %v9296_v28 = vld [vmem:[#allocation23_spill] sm:$0xff] }
 0x5e6   : > { %v2955_v20 = vpop.permute.xlu0 %2954  ;;  %v3246_v48 = vpop.permute.xlu1 %3245 }
 0x5e7   : > { %v3602_v16 = vsel %vm1454_vm9, %v3570_v27, %v3246_v48  ;;  %v3507_v41 = vsel %vm1355_vm6, %v3475_v44, %v2955_v20  ;;  %v9293_v20 = vld [vmem:[#allocation97_spill] sm:$0xff] }
 0x5e8   : > { %v3446_v48 = vsel %vm1289_vm4, %v3414_v9, %v9293_v20 }
 0x5e9   : > { %v4318_v36 = vpop.f32.mrf.mxu1  ;;  %v3478_v37 = vsel %vm1322_vm5, %v3446_v48, %v9295_v55 }
 0x5ea   : > { %3975 = vst.msk [vmem:[%s8173_s27 + $0x38] sm:$0xff] %vm1256_vm3, %v4318_v36  ;;  %v3340_v46 = vpop.permute.xlu0 %3339  ;;  %v2957_v1 = vpop.permute.xlu1 %2956  ;;  %v3477_v36 = vsel %vm1322_vm5, %v3445_v12, %v9296_v28 }
 0x5eb   : > { %v3633_v51 = vsel %vm1487_vm10, %v3601_v58, %v3340_v46  ;;  %v3839_v56 = vpop.f32.mrf.mxu1  ;;  %v3508_v35 = vsel %vm1355_vm6, %v3476_v54, %v2957_v1 }
 0x5ec   : > { %3974 = vst.msk [vmem:[%s8173_s27 + $0x30] sm:$0xff] %vm1256_vm3, %v3839_v56  ;;  %4346 = vmatprep.mubr.msk.f32.mxu1 %vm1525_vm11, %v3633_v51 }
 0x5ee   : > { %v3056_v31 = vpop.permute.xlu0 %3055  ;;  %v3342_v3 = vpop.permute.xlu1 %3341 }
 0x5ef   : > { %v3634_v8 = vsel %vm1487_vm10, %v3602_v16, %v3342_v3  ;;  %v3539_v50 = vsel %vm1388_vm7, %v3507_v41, %v3056_v31 }
 0x5f0   : > { %4347 = vmatmul.mubr.msk.f32.gmra.mxu1 %vm1525_vm11, %v3634_v8 }
 0x5f2   : > { %v3058_v60 = vpop.permute.xlu0 %3057  ;;  %v3152_v22 = vpop.permute.xlu1 %3151 }
 0x5f3   : > { %v3571_v2 = vsel %vm1421_vm8, %v3539_v50, %v3152_v22  ;;  %v3540_v25 = vsel %vm1388_vm7, %v3508_v35, %v3058_v60 }
 0x5f6   : > { %v3154_v62 = vpop.permute.xlu0 %3153  ;;  %v3248_v21 = vpop.permute.xlu1 %3247 }
 0x5f7   : > { %v3603_v17 = vsel %vm1454_vm9, %v3571_v2, %v3248_v21  ;;  %v3572_v59 = vsel %vm1421_vm8, %v3540_v25, %v3154_v62 }
 0x5fa   : > { %v2959_v15 = vpop.permute.xlu0 %2958  ;;  %v3250_v47 = vpop.permute.xlu1 %3249 }
 0x5fb   : > { %v3604_v30 = vsel %vm1454_vm9, %v3572_v59, %v3250_v47  ;;  %v3509_v14 = vsel %vm1355_vm6, %v3477_v36, %v2959_v15 }
 0x5fd   : > { %v4321_v24 = vpop.f32.mrf.mxu1 }
 0x5fe   : > { %3977 = vst.msk [vmem:[%s8173_s27 + $0x48] sm:$0xff] %vm1256_vm3, %v4321_v24  ;;  %v3344_v6 = vpop.permute.xlu0 %3343  ;;  %v2961_v11 = vpop.permute.xlu1 %2960 }
 0x5ff   : > { %v3635_v32 = vsel %vm1487_vm10, %v3603_v17, %v3344_v6  ;;  %v3849_v53 = vpop.f32.mrf.mxu1  ;;  %v3510_v52 = vsel %vm1355_vm6, %v3478_v37, %v2961_v11 }
 0x600   : > { %3976 = vst.msk [vmem:[%s8173_s27 + $0x40] sm:$0xff] %vm1256_vm3, %v3849_v53  ;;  %4349 = vmatprep.mubr.msk.f32.mxu1 %vm1525_vm11, %v3635_v32 }
 0x602   : > { %v3060_v4 = vpop.permute.xlu0 %3059  ;;  %v3346_v19 = vpop.permute.xlu1 %3345 }
 0x603   : > { %v3636_v18 = vsel %vm1487_vm10, %v3604_v30, %v3346_v19  ;;  %v3541_v46 = vsel %vm1388_vm7, %v3509_v14, %v3060_v4 }
 0x604   : > { %4350 = vmatmul.mubr.msk.f32.gmra.mxu1 %vm1525_vm11, %v3636_v18 }
 0x606   : > { %v3062_v23 = vpop.permute.xlu0 %3061  ;;  %v4386_v26 = vpop.permute.xlu1 %4385 }
 0x607   : > { %v4388_v29 = vunpack.i.h.bf16 %v4386_v26  ;;  %v4387_v13 = vunpack.i.l.bf16 %v4386_v26  ;;  %v3542_v58 = vsel %vm1388_vm7, %v3510_v52, %v3062_v23 }
 0x609   : > { %v3574_v16 = vsel %vm1421_vm8, %v3542_v58, %v4388_v29  ;;  %v3573_v31 = vsel %vm1421_vm8, %v3541_v46, %v4387_v13 }
 0x60a   : > { %v4391_v1 = vpop.permute.xlu0 %4390  ;;  %v4396_v39 = vpop.permute.xlu1 %4395 }
 0x60b   : > { %v4393_v51 = vunpack.i.h.bf16 %v4391_v1  ;;  %v4392_v56 = vunpack.i.l.bf16 %v4391_v1  ;;  %v4398_v61 = vunpack.i.h.bf16 %v4396_v39  ;;  %v4397_v27 = vunpack.i.l.bf16 %v4396_v39 }
 0x60d   : > { %v3605_v3 = vsel %vm1454_vm9, %v3573_v31, %v4392_v56  ;;  %v3606_v8 = vsel %vm1454_vm9, %v3574_v16, %v4393_v51 }
 0x60e   : > { %v3637_v60 = vsel %vm1487_vm10, %v3605_v3, %v4397_v27  ;;  %v3638_v22 = vsel %vm1487_vm10, %v3606_v8, %v4398_v61 }
 0x60f   : > { %4352 = vmatprep.mubr.msk.f32.mxu1 %vm1525_vm11, %v3637_v60 }
 0x610   : > { %4353 = vmatmul.mubr.msk.f32.gmra.mxu1 %vm1525_vm11, %v3638_v22 }
 0x611   : > { %v4324_v62 = vpop.f32.mrf.mxu1 }
 0x612   : > { %3979 = vst.msk [vmem:[%s8173_s27 + $0x58] sm:$0xff] %vm1256_vm3, %v4324_v62 }
 0x613   : > { %v3859_v21 = vpop.f32.mrf.mxu1 }
 0x614   : > { %3978 = vst.msk [vmem:[%s8173_s27 + $0x50] sm:$0xff] %vm1256_vm3, %v3859_v21 }
 0x625   : > { %v4327_v0 = vpop.f32.mrf.mxu1 }
 0x626   : > { %3981 = vst.msk [vmem:[%s8173_s27 + $0x68] sm:$0xff] %vm1256_vm3, %v4327_v0 }
 0x627   : > { %v3869_v40 = vpop.f32.mrf.mxu1 }
 0x628   : > { %3980 = vst.msk [vmem:[%s8173_s27 + $0x60] sm:$0xff] %vm1256_vm3, %v3869_v40 }
 0x639   : > { %v4330_v38 = vpop.f32.mrf.mxu1 }
 0x63a   : > { %3983 = vst.msk [vmem:[%s8173_s27 + $0x78] sm:$0xff] %vm1256_vm3, %v4330_v38 }
 0x63b   : > { %v3879_v7 = vpop.f32.mrf.mxu1 }
 0x63c   : > { %3982 = vst.msk [vmem:[%s8173_s27 + $0x70] sm:$0xff] %vm1256_vm3, %v3879_v7 }
 0x64d   : > { %v4333_v42 = vpop.f32.mrf.mxu1 }
 0x64e   : > { %3985 = vst.msk [vmem:[%s8173_s27 + $0x88] sm:$0xff] %vm1256_vm3, %v4333_v42 }
 0x64f   : > { %v3889_v44 = vpop.f32.mrf.mxu1 }
 0x650   : > { %3984 = vst.msk [vmem:[%s8173_s27 + $0x80] sm:$0xff] %vm1256_vm3, %v3889_v44 }
 0x660   : > { %v4336_v15 = vpop.f32.mrf.mxu1 }
 0x661   : > { %3987 = vst.msk [vmem:[%s8173_s27 + $0x98] sm:$0xff] %vm1256_vm3, %v4336_v15 }
 0x662   : > { %v3899_v47 = vpop.f32.mrf.mxu1 }
 0x663   : > { %3986 = vst.msk [vmem:[%s8173_s27 + $0x90] sm:$0xff] %vm1256_vm3, %v3899_v47 }
 0x674   : > { %v4339_v41 = vpop.f32.mrf.mxu1 }
 0x675   : > { %3989 = vst.msk [vmem:[%s8173_s27 + $0xa8] sm:$0xff] %vm1256_vm3, %v4339_v41 }
 0x676   : > { %v3909_v45 = vpop.f32.mrf.mxu1 }
 0x677   : > { %3988 = vst.msk [vmem:[%s8173_s27 + $0xa0] sm:$0xff] %vm1256_vm3, %v3909_v45 }
 0x688   : > { %v4342_v63 = vpop.f32.mrf.mxu1 }
 0x689   : > { %3991 = vst.msk [vmem:[%s8173_s27 + $0xb8] sm:$0xff] %vm1256_vm3, %v4342_v63 }
 0x68a   : > { %v3919_v50 = vpop.f32.mrf.mxu1 }
 0x68b   : > { %3990 = vst.msk [vmem:[%s8173_s27 + $0xb0] sm:$0xff] %vm1256_vm3, %v3919_v50 }
 0x69c   : > { %v4345_v49 = vpop.f32.mrf.mxu1 }
 0x69d   : > { %3993 = vst.msk [vmem:[%s8173_s27 + $0xc8] sm:$0xff] %vm1256_vm3, %v4345_v49 }
 0x69e   : > { %v3929_v57 = vpop.f32.mrf.mxu1 }
 0x69f   : > { %3992 = vst.msk [vmem:[%s8173_s27 + $0xc0] sm:$0xff] %vm1256_vm3, %v3929_v57 }
 0x6b0   : > { %v4348_v2 = vpop.f32.mrf.mxu1 }
 0x6b1   : > { %3995 = vst.msk [vmem:[%s8173_s27 + $0xd8] sm:$0xff] %vm1256_vm3, %v4348_v2 }
 0x6b2   : > { %v3939_v24 = vpop.f32.mrf.mxu1 }
 0x6b3   : > { %3994 = vst.msk [vmem:[%s8173_s27 + $0xd0] sm:$0xff] %vm1256_vm3, %v3939_v24 }
 0x6c4   : > { %v4351_v10 = vpop.f32.mrf.mxu1 }
 0x6c5   : > { %3997 = vst.msk [vmem:[%s8173_s27 + $0xe8] sm:$0xff] %vm1256_vm3, %v4351_v10 }
 0x6c6   : > { %v3949_v54 = vpop.f32.mrf.mxu1 }
 0x6c7   : > { %3996 = vst.msk [vmem:[%s8173_s27 + $0xe0] sm:$0xff] %vm1256_vm3, %v3949_v54 }
 0x6d0   : > { %v4354_v17 = vpop.f32.mrf.mxu1 }
 0x6d1   : > { %3999 = vst.msk [vmem:[%s8173_s27 + $0xf8] sm:$0xff] %vm1256_vm3, %v4354_v17 }
 0x6d2   : > { %v3959_v6 = vpop.f32.mrf.mxu1 }
 0x6d3   : > { %3998 = vst.msk [vmem:[%s8173_s27 + $0xf0] sm:$0xff] %vm1256_vm3, %v3959_v6 }
 0x6d4 PF: > { %s14_s15 = sadd.s32 1, %s4565_s15  }
 0x6d5   : > { %p11_p4 = scmp.ge.s32.totalorder %s14_s15, 4  }
 0x6d7   :  { %13 = sbr.rel (!%p11_p4) target bundleno = 1 (0x1), region = 66 }

</bundles_post_ra>
